<compile_context>
chip_gen: v6e
topology: v6e:2x2x1
jax: 0.10.0
libtpu: 0.0.40
codegen_flags: <defaults>
</compile_context>

<pallas_src>
import jax
import jax.numpy as jnp
from jax import lax
from jax.experimental import pallas as pl
from jax.experimental.pallas import tpu as pltpu

# ----------------------------- model config ---------------------------------
D_MODEL = 32           # hidden size (original 512; small demo size)
N_HEADS = 4
D_HEAD = D_MODEL // N_HEADS
D_FF = 64              # FFN inner size
VOCAB = 100            # original 30000
VOCAB_PAD = 128        # vocab padded to a full lane width (lane-dense logits)
N_SEG_PAD = 8          # segment table padded to 8 rows (only 0..2 used)
N_CLS = 2              # NSP classes
CLSF_PAD = 128         # NSP logits written into a lane-dense 128-wide slab
CLS_ROWS = 8           # NSP logits sublane-padded to a full (8, 128) vreg
N_LAYERS = 2
SEQ = 8
BATCH = 2
N_MASK = 4             # number of masked-LM positions per example
LN_EPS = 1e-5
NEG_INF = -1e9


# ----------------------------- in-kernel helpers -----------------------------
def _layernorm(x, gamma, beta):
    mu = jnp.mean(x, axis=-1, keepdims=True)
    var = jnp.mean((x - mu) ** 2, axis=-1, keepdims=True)
    return (x - mu) * lax.rsqrt(var + LN_EPS) * gamma + beta


def _gelu(x):
    # TODO(synk): PyTorch nn.GELU default is the exact erf form; tanh
    # approximation used here since lax.erf lowering in Mosaic is not
    # guaranteed — small numeric drift only.
    return jax.nn.gelu(x, approximate=True)


def _softmax(x):
    m = jnp.max(x, axis=-1, keepdims=True)
    e = jnp.exp(x - m)
    return e * pl.reciprocal(jnp.sum(e, axis=-1, keepdims=True), approx=True)


# ----------------------------- fused kernel ----------------------------------
def bert_fused_kernel(
        ids_b1s_ref, tok_ids_ref, seg_ids_ref, mpos_ref,
        tok_tab_ref, pos_tab_ref, seg_tab_ref,
        emb_g_ref, emb_b_ref,
        wqkv_ref, bqkv_ref, wo_ref, bo_ref,
        w1_ref, b1_ref, w2_ref, b2_ref, lng_ref, lnb_ref,
        fc_w_ref, fc_b_ref, clsf_w_ref, clsf_b_ref,
        lin_w_ref, lin_b_ref, norm_g_ref, norm_b_ref, dec_bias_ref,
        lm_ref, clsf_ref):
    f32 = jnp.float32
    B, _, S = ids_b1s_ref.shape
    BS = B * S
    BM = mpos_ref.shape[0]
    D = tok_tab_ref.shape[1]
    VP = tok_tab_ref.shape[0]

    # ---- embedding ----------------------------------------------------------
    # token gather as an in-kernel one-hot matmul (MXU)
    tok_oh = (tok_ids_ref[...] ==
              lax.broadcasted_iota(jnp.int32, (BS, VP), 1)).astype(f32)
    tok_emb = jnp.dot(tok_oh, tok_tab_ref[...], preferred_element_type=f32)  # (BS, D)
    # segment gather: only 3 live rows -> pure-VPU select, no MXU push
    seg_emb = jnp.where(seg_ids_ref[...] == 0, seg_tab_ref[0:1, :],
                        jnp.where(seg_ids_ref[...] == 1, seg_tab_ref[1:2, :],
                                  seg_tab_ref[2:3, :]))                       # (BS, D)
    # positional embedding: broadcast add over (B, S, D) (no concat)
    emb = ((tok_emb + seg_emb).reshape(B, S, D)
           + pos_tab_ref[...][None, :, :]).reshape(BS, D)
    x = _layernorm(emb, emb_g_ref[...], emb_b_ref[...])                       # (BS, D)

    # ---- additive key-padding mask built from int ids in-kernel -------------
    mask_add = jnp.where(ids_b1s_ref[...] == 0, NEG_INF, 0.0).astype(f32)     # (B,1,S)

    # ---- head masks: hoisted once, reused every head x layer (VPU only) -----
    lane = lax.broadcasted_iota(jnp.int32, (1, 1, D), 2)
    head_masks = [((lane >= h * D_HEAD) & (lane < (h + 1) * D_HEAD)).astype(f32)
                  for h in range(N_HEADS)]

    # ---- encoder layers (unrolled; stacked weights stay resident in VMEM) ---
    scale = 1.0 / float(D_HEAD) ** 0.5
    for l in range(N_LAYERS):
        # fused QKV projection: one (BS, D) x (D, 3D) MXU push
        qkv = jnp.dot(x, wqkv_ref[l], preferred_element_type=f32) + bqkv_ref[l]
        qkv3 = qkv.reshape(B, S, 3 * D)
        q3 = qkv3[:, :, 0:D]
        k3 = qkv3[:, :, D:2 * D]
        v3 = qkv3[:, :, 2 * D:3 * D]
        # head-masked full-width attention: no lane slicing, no lane concat;
        # each head's context lands in its own lane slice -> sum == concat.
        ctx3 = jnp.zeros((B, S, D), f32)
        for h in range(N_HEADS):
            hm = head_masks[h]
            scores = jnp.einsum('bqd,bkd->bqk', q3 * hm, k3,
                                preferred_element_type=f32) * scale          # (B,S,S)
            p = _softmax(scores + mask_add)
            ctx3 = ctx3 + jnp.einsum('bqk,bkd->bqd', p, v3 * hm,
                                     preferred_element_type=f32)             # (B,S,D)
        ctx = ctx3.reshape(BS, D)
        attn_out = jnp.dot(ctx, wo_ref[l], preferred_element_type=f32) + bo_ref[l]
        # PoswiseFeedForwardNet: LN(l2(gelu(l1(a))) + a), a = attention output.
        h1 = _gelu(jnp.dot(attn_out, w1_ref[l], preferred_element_type=f32)
                   + b1_ref[l])
        h2 = jnp.dot(h1, w2_ref[l], preferred_element_type=f32) + b2_ref[l]
        x = _layernorm(h2 + attn_out, lng_ref[l], lnb_ref[l])

    # ---- pooler + NSP classifier (CLS row = row b*S of flat activations) ----
    # (CLS_ROWS=8 rows so the final store is one full unmasked (8,128) vreg;
    #  rows >= B select nothing and are sliced off in the wrapper.)
    row_i = lax.broadcasted_iota(jnp.int32, (CLS_ROWS, BS), 0)
    col_i = lax.broadcasted_iota(jnp.int32, (CLS_ROWS, BS), 1)
    cls_sel = ((col_i == row_i * S) & (row_i < B)).astype(f32)                # (8, B*S)
    cls_vec = jnp.dot(cls_sel, x, preferred_element_type=f32)                 # (8, D)
    h_pooled = jnp.tanh(jnp.dot(cls_vec, fc_w_ref[...],
                                preferred_element_type=f32) + fc_b_ref[...])
    clsf_ref[...] = (jnp.dot(h_pooled, clsf_w_ref[...],
                             preferred_element_type=f32) + clsf_b_ref[...])   # (8,128)

    # ---- masked-LM head: gather -> linear+GELU+LN -> tied decoder -----------
    gather_oh = (mpos_ref[...] ==
                 lax.broadcasted_iota(jnp.int32, (BM, BS), 1)).astype(f32)
    h_m = jnp.dot(gather_oh, x, preferred_element_type=f32)                   # (B*M, D)
    h_m = _gelu(jnp.dot(h_m, lin_w_ref[...], preferred_element_type=f32)
                + lin_b_ref[...])
    h_m = _layernorm(h_m, norm_g_ref[...], norm_b_ref[...])
    # tied decoder: contract on the embedding axis of the single resident
    # vocab table (no pre-transposed duplicate).
    logits = lax.dot_general(h_m, tok_tab_ref[...],
                             dimension_numbers=(((1,), (1,)), ((), ())),
                             preferred_element_type=f32)                      # (B*M, VP)
    lm_ref[...] = logits + dec_bias_ref[...]


# ----------------------------- pallas_call wrapper ----------------------------
def _full(shape):
    nd = len(shape)
    return pl.BlockSpec(shape, lambda i, _nd=nd: (0,) * _nd)


def bert_forward(params, input_ids, segment_ids, masked_pos):
    B, S = input_ids.shape
    M = masked_pos.shape[1]

    # cheap host/XLA-side index plumbing (no f32 one-hots, no f32 masks)
    ids_b1s = input_ids.astype(jnp.int32).reshape(B, 1, S)
    tok_ids = input_ids.astype(jnp.int32).reshape(B * S, 1)
    seg_ids = segment_ids.astype(jnp.int32).reshape(B * S, 1)
    mpos = (masked_pos.astype(jnp.int32)
            + jnp.arange(B, dtype=jnp.int32)[:, None] * S).reshape(B * M, 1)

    inputs = [
        ids_b1s, tok_ids, seg_ids, mpos,
        params["tok_tab"], params["pos_tab"], params["seg_tab"],
        params["emb_g"], params["emb_b"],
        params["wqkv"], params["bqkv"], params["wo"], params["bo"],
        params["w1"], params["b1"], params["w2"], params["b2"],
        params["ln_g"], params["ln_b"],
        params["fc_w"], params["fc_b"], params["clsf_w"], params["clsf_b"],
        params["lin_w"], params["lin_b"], params["norm_g"], params["norm_b"],
        params["dec_bias"],
    ]

    lm_pad, clsf_pad = pl.pallas_call(
        bert_fused_kernel,
        out_shape=(jax.ShapeDtypeStruct((B * M, VOCAB_PAD), jnp.float32),
                   jax.ShapeDtypeStruct((CLS_ROWS, CLSF_PAD), jnp.float32)),
        grid=(1,),
        in_specs=[_full(a.shape) for a in inputs],
        out_specs=(_full((B * M, VOCAB_PAD)), _full((CLS_ROWS, CLSF_PAD))),
        compiler_params=pltpu.CompilerParams(
            dimension_semantics=("arbitrary",)),
    )(*inputs)

    logits_lm = lm_pad.reshape(B, M, VOCAB_PAD)[:, :, :VOCAB]
    logits_clsf = clsf_pad[:B, :N_CLS]
    return logits_lm, logits_clsf


# ----------------------------- parameter init --------------------------------
def init_params(key):
    def nrm(k, shape, scale=0.02):
        return (scale * jax.random.normal(k, shape)).astype(jnp.float32)

    ks = iter(jax.random.split(key, 16))
    zeros = lambda shape: jnp.zeros(shape, jnp.float32)
    ones = lambda shape: jnp.ones(shape, jnp.float32)

    clsf_w = zeros((D_MODEL, CLSF_PAD)).at[:, :N_CLS].set(
        nrm(next(ks), (D_MODEL, N_CLS)))

    return {
        # tok_tab rows >= VOCAB and seg_tab rows >= 3 are padding: the in-kernel
        # gathers/selects never touch them and padded decoder/NSP logits are
        # sliced off in the wrapper.
        "tok_tab": nrm(next(ks), (VOCAB_PAD, D_MODEL)),
        "pos_tab": nrm(next(ks), (SEQ, D_MODEL)),
        "seg_tab": nrm(next(ks), (N_SEG_PAD, D_MODEL)),
        "emb_g": ones((1, D_MODEL)), "emb_b": zeros((1, D_MODEL)),
        # per-layer weights stacked on a leading layer axis; QKV fused.
        "wqkv": nrm(next(ks), (N_LAYERS, D_MODEL, 3 * D_MODEL)),
        "bqkv": zeros((N_LAYERS, 1, 3 * D_MODEL)),
        "wo": nrm(next(ks), (N_LAYERS, D_MODEL, D_MODEL)),
        "bo": zeros((N_LAYERS, 1, D_MODEL)),
        "w1": nrm(next(ks), (N_LAYERS, D_MODEL, D_FF)),
        "b1": zeros((N_LAYERS, 1, D_FF)),
        "w2": nrm(next(ks), (N_LAYERS, D_FF, D_MODEL)),
        "b2": zeros((N_LAYERS, 1, D_MODEL)),
        "ln_g": ones((N_LAYERS, 1, D_MODEL)),
        "ln_b": zeros((N_LAYERS, 1, D_MODEL)),
        "fc_w": nrm(next(ks), (D_MODEL, D_MODEL)), "fc_b": zeros((1, D_MODEL)),
        "clsf_w": clsf_w, "clsf_b": zeros((1, CLSF_PAD)),
        "lin_w": nrm(next(ks), (D_MODEL, D_MODEL)), "lin_b": zeros((1, D_MODEL)),
        "norm_g": ones((1, D_MODEL)), "norm_b": zeros((1, D_MODEL)),
        "dec_bias": zeros((1, VOCAB_PAD)),  # decoder weight is tied to tok_tab
    }


# ----------------------------- demo -------------------------------------------
if __name__ == "__main__":
    root = jax.random.PRNGKey(0)
    k_par, k_ids, k_seg, k_pos = jax.random.split(root, 4)

    params = init_params(k_par)

    input_ids = jax.random.randint(k_ids, (BATCH, SEQ), 1, VOCAB, dtype=jnp.int32)
    # make the tail of the second sequence padding (id 0) to exercise the mask
    input_ids = input_ids.at[1, SEQ - 2:].set(0)
    segment_ids = jax.random.randint(k_seg, (BATCH, SEQ), 0, 2, dtype=jnp.int32)
    masked_pos = jax.random.randint(k_pos, (BATCH, N_MASK), 0, SEQ, dtype=jnp.int32)

    fwd = jax.jit(bert_forward)
    logits_lm, logits_clsf = fwd(params, input_ids, segment_ids, masked_pos)
    jax.block_until_ready((logits_lm, logits_clsf))

    assert logits_lm.shape == (BATCH, N_MASK, VOCAB)
    assert logits_clsf.shape == (BATCH, N_CLS)
    assert bool(jnp.isfinite(logits_lm).all()) and bool(jnp.isfinite(logits_clsf).all())
    print("KERNEL_OK")
</pallas_src>

<mosaic_0001>
module attributes {stable_mosaic.version = 11 : i64} {
  func.func @bert_fused_kernel(%arg0: i32, %arg1: memref<2x1x8xi32, #tpu.memory_space<vmem>>, %arg2: memref<16x1xi32, #tpu.memory_space<vmem>>, %arg3: memref<16x1xi32, #tpu.memory_space<vmem>>, %arg4: memref<8x1xi32, #tpu.memory_space<vmem>>, %arg5: memref<128x32xf32, #tpu.memory_space<vmem>>, %arg6: memref<8x32xf32, #tpu.memory_space<vmem>>, %arg7: memref<8x32xf32, #tpu.memory_space<vmem>>, %arg8: memref<1x32xf32, #tpu.memory_space<vmem>>, %arg9: memref<1x32xf32, #tpu.memory_space<vmem>>, %arg10: memref<2x32x96xf32, #tpu.memory_space<vmem>>, %arg11: memref<2x1x96xf32, #tpu.memory_space<vmem>>, %arg12: memref<2x32x32xf32, #tpu.memory_space<vmem>>, %arg13: memref<2x1x32xf32, #tpu.memory_space<vmem>>, %arg14: memref<2x32x64xf32, #tpu.memory_space<vmem>>, %arg15: memref<2x1x64xf32, #tpu.memory_space<vmem>>, %arg16: memref<2x64x32xf32, #tpu.memory_space<vmem>>, %arg17: memref<2x1x32xf32, #tpu.memory_space<vmem>>, %arg18: memref<2x1x32xf32, #tpu.memory_space<vmem>>, %arg19: memref<2x1x32xf32, #tpu.memory_space<vmem>>, %arg20: memref<32x32xf32, #tpu.memory_space<vmem>>, %arg21: memref<1x32xf32, #tpu.memory_space<vmem>>, %arg22: memref<32x128xf32, #tpu.memory_space<vmem>>, %arg23: memref<1x128xf32, #tpu.memory_space<vmem>>, %arg24: memref<32x32xf32, #tpu.memory_space<vmem>>, %arg25: memref<1x32xf32, #tpu.memory_space<vmem>>, %arg26: memref<1x32xf32, #tpu.memory_space<vmem>>, %arg27: memref<1x32xf32, #tpu.memory_space<vmem>>, %arg28: memref<1x128xf32, #tpu.memory_space<vmem>>, %arg29: memref<8x128xf32, #tpu.memory_space<vmem>>, %arg30: memref<8x128xf32, #tpu.memory_space<vmem>>) attributes {dimension_semantics = [#tpu.dimension_semantics<arbitrary>], iteration_bounds = array<i64: 1>, scalar_prefetch = 0 : i64, scratch_operands = 0 : i64, tpu.core_type = #tpu.core_type<tc>, window_params = [{pipeline_mode = #tpu.pipeline_mode<synchronous>, transform_indices = @transform_0, window_bounds = array<i64: 2, 1, 8>}, {pipeline_mode = #tpu.pipeline_mode<synchronous>, transform_indices = @transform_1, window_bounds = array<i64: 16, 1>}, {pipeline_mode = #tpu.pipeline_mode<synchronous>, transform_indices = @transform_2, window_bounds = array<i64: 16, 1>}, {pipeline_mode = #tpu.pipeline_mode<synchronous>, transform_indices = @transform_3, window_bounds = array<i64: 8, 1>}, {pipeline_mode = #tpu.pipeline_mode<synchronous>, transform_indices = @transform_4, window_bounds = array<i64: 128, 32>}, {pipeline_mode = #tpu.pipeline_mode<synchronous>, transform_indices = @transform_5, window_bounds = array<i64: 8, 32>}, {pipeline_mode = #tpu.pipeline_mode<synchronous>, transform_indices = @transform_6, window_bounds = array<i64: 8, 32>}, {pipeline_mode = #tpu.pipeline_mode<synchronous>, transform_indices = @transform_7, window_bounds = array<i64: 1, 32>}, {pipeline_mode = #tpu.pipeline_mode<synchronous>, transform_indices = @transform_8, window_bounds = array<i64: 1, 32>}, {pipeline_mode = #tpu.pipeline_mode<synchronous>, transform_indices = @transform_9, window_bounds = array<i64: 2, 32, 96>}, {pipeline_mode = #tpu.pipeline_mode<synchronous>, transform_indices = @transform_10, window_bounds = array<i64: 2, 1, 96>}, {pipeline_mode = #tpu.pipeline_mode<synchronous>, transform_indices = @transform_11, window_bounds = array<i64: 2, 32, 32>}, {pipeline_mode = #tpu.pipeline_mode<synchronous>, transform_indices = @transform_12, window_bounds = array<i64: 2, 1, 32>}, {pipeline_mode = #tpu.pipeline_mode<synchronous>, transform_indices = @transform_13, window_bounds = array<i64: 2, 32, 64>}, {pipeline_mode = #tpu.pipeline_mode<synchronous>, transform_indices = @transform_14, window_bounds = array<i64: 2, 1, 64>}, {pipeline_mode = #tpu.pipeline_mode<synchronous>, transform_indices = @transform_15, window_bounds = array<i64: 2, 64, 32>}, {pipeline_mode = #tpu.pipeline_mode<synchronous>, transform_indices = @transform_16, window_bounds = array<i64: 2, 1, 32>}, {pipeline_mode = #tpu.pipeline_mode<synchronous>, transform_indices = @transform_17, window_bounds = array<i64: 2, 1, 32>}, {pipeline_mode = #tpu.pipeline_mode<synchronous>, transform_indices = @transform_18, window_bounds = array<i64: 2, 1, 32>}, {pipeline_mode = #tpu.pipeline_mode<synchronous>, transform_indices = @transform_19, window_bounds = array<i64: 32, 32>}, {pipeline_mode = #tpu.pipeline_mode<synchronous>, transform_indices = @transform_20, window_bounds = array<i64: 1, 32>}, {pipeline_mode = #tpu.pipeline_mode<synchronous>, transform_indices = @transform_21, window_bounds = array<i64: 32, 128>}, {pipeline_mode = #tpu.pipeline_mode<synchronous>, transform_indices = @transform_22, window_bounds = array<i64: 1, 128>}, {pipeline_mode = #tpu.pipeline_mode<synchronous>, transform_indices = @transform_23, window_bounds = array<i64: 32, 32>}, {pipeline_mode = #tpu.pipeline_mode<synchronous>, transform_indices = @transform_24, window_bounds = array<i64: 1, 32>}, {pipeline_mode = #tpu.pipeline_mode<synchronous>, transform_indices = @transform_25, window_bounds = array<i64: 1, 32>}, {pipeline_mode = #tpu.pipeline_mode<synchronous>, transform_indices = @transform_26, window_bounds = array<i64: 1, 32>}, {pipeline_mode = #tpu.pipeline_mode<synchronous>, transform_indices = @transform_27, window_bounds = array<i64: 1, 128>}, {pipeline_mode = #tpu.pipeline_mode<synchronous>, transform_indices = @transform_28, window_bounds = array<i64: 8, 128>}, {pipeline_mode = #tpu.pipeline_mode<synchronous>, transform_indices = @transform_29, window_bounds = array<i64: 8, 128>}]} {
    %c0 = arith.constant 0 : index
    %c0_0 = arith.constant 0 : index
    %0 = vector.load %arg2[%c0, %c0_0] : memref<16x1xi32, #tpu.memory_space<vmem>>, vector<16x1xi32>
    %1 = tpu.iota {dimensions = array<i32: 1>} : vector<16x128xi32>
    %2 = vector.broadcast %0 : vector<16x1xi32> to vector<16x128xi32>
    %3 = arith.cmpi eq, %2, %1 : vector<16x128xi32>
    %4 = arith.extui %3 : vector<16x128xi1> to vector<16x128xi32>
    %5 = arith.sitofp %4 : vector<16x128xi32> to vector<16x128xf32>
    %c0_1 = arith.constant 0 : index
    %c0_2 = arith.constant 0 : index
    %6 = vector.load %arg5[%c0_1, %c0_2] : memref<128x32xf32, #tpu.memory_space<vmem>>, vector<128x32xf32>
    %cst = arith.constant dense<0.000000e+00> : vector<16x32xf32>
    %7 = tpu.matmul %5, %6, %cst {dimension_numbers = #tpu.dot_dimension_numbers<[1], [0], [0], [1], [0, 0, 1, 1], [], []>} : vector<16x128xf32>, vector<128x32xf32>, vector<16x32xf32> -> vector<16x32xf32>
    %c0_3 = arith.constant 0 : index
    %c0_4 = arith.constant 0 : index
    %8 = vector.load %arg3[%c0_3, %c0_4] : memref<16x1xi32, #tpu.memory_space<vmem>>, vector<16x1xi32>
    %c0_i32 = arith.constant 0 : i32
    %9 = vector.broadcast %c0_i32 : i32 to vector<16x1xi32>
    %10 = arith.cmpi eq, %8, %9 : vector<16x1xi32>
    %c0_5 = arith.constant 0 : index
    %c0_6 = arith.constant 0 : index
    %11 = vector.load %arg7[%c0_5, %c0_6] : memref<8x32xf32, #tpu.memory_space<vmem>>, vector<1x32xf32>
    %c0_7 = arith.constant 0 : index
    %c0_8 = arith.constant 0 : index
    %12 = vector.load %arg3[%c0_7, %c0_8] : memref<16x1xi32, #tpu.memory_space<vmem>>, vector<16x1xi32>
    %c1_i32 = arith.constant 1 : i32
    %13 = vector.broadcast %c1_i32 : i32 to vector<16x1xi32>
    %14 = arith.cmpi eq, %12, %13 : vector<16x1xi32>
    %c1 = arith.constant 1 : index
    %c0_9 = arith.constant 0 : index
    %15 = vector.load %arg7[%c1, %c0_9] : memref<8x32xf32, #tpu.memory_space<vmem>>, vector<1x32xf32>
    %c2 = arith.constant 2 : index
    %c0_10 = arith.constant 0 : index
    %16 = vector.load %arg7[%c2, %c0_10] : memref<8x32xf32, #tpu.memory_space<vmem>>, vector<1x32xf32>
    %17 = vector.shape_cast %14 : vector<16x1xi1> to vector<16x1xi1>
    %18 = vector.broadcast %17 : vector<16x1xi1> to vector<16x32xi1>
    %19 = vector.shape_cast %15 : vector<1x32xf32> to vector<1x32xf32>
    %20 = vector.broadcast %19 : vector<1x32xf32> to vector<16x32xf32>
    %21 = vector.shape_cast %16 : vector<1x32xf32> to vector<1x32xf32>
    %22 = vector.broadcast %21 : vector<1x32xf32> to vector<16x32xf32>
    %23 = arith.select %18, %20, %22 : vector<16x32xi1>, vector<16x32xf32>
    %24 = vector.shape_cast %10 : vector<16x1xi1> to vector<16x1xi1>
    %25 = vector.broadcast %24 : vector<16x1xi1> to vector<16x32xi1>
    %26 = vector.shape_cast %11 : vector<1x32xf32> to vector<1x32xf32>
    %27 = vector.broadcast %26 : vector<1x32xf32> to vector<16x32xf32>
    %28 = arith.select %25, %27, %23 : vector<16x32xi1>, vector<16x32xf32>
    %29 = arith.addf %7, %28 : vector<16x32xf32>
    %30 = vector.shape_cast %29 : vector<16x32xf32> to vector<2x8x32xf32>
    %c0_11 = arith.constant 0 : index
    %c0_12 = arith.constant 0 : index
    %31 = vector.load %arg6[%c0_11, %c0_12] : memref<8x32xf32, #tpu.memory_space<vmem>>, vector<8x32xf32>
    %32 = vector.shape_cast %31 : vector<8x32xf32> to vector<1x8x32xf32>
    %33 = vector.broadcast %32 : vector<1x8x32xf32> to vector<2x8x32xf32>
    %34 = arith.addf %30, %33 : vector<2x8x32xf32>
    %35 = vector.shape_cast %34 : vector<2x8x32xf32> to vector<16x32xf32>
    %c0_13 = arith.constant 0 : index
    %c0_14 = arith.constant 0 : index
    %36 = vector.load %arg8[%c0_13, %c0_14] : memref<1x32xf32, #tpu.memory_space<vmem>>, vector<1x32xf32>
    %c0_15 = arith.constant 0 : index
    %c0_16 = arith.constant 0 : index
    %37 = vector.load %arg9[%c0_15, %c0_16] : memref<1x32xf32, #tpu.memory_space<vmem>>, vector<1x32xf32>
    %cst_17 = arith.constant dense<0.000000e+00> : vector<16xf32>
    %38 = vector.multi_reduction <add>, %35, %cst_17 [1] : vector<16x32xf32> to vector<16xf32>
    %39 = vector.shape_cast %38 : vector<16xf32> to vector<16x1xf32>
    %cst_18 = arith.constant 3.200000e+01 : f32
    %40 = vector.broadcast %cst_18 : f32 to vector<16x1xf32>
    %41 = arith.divf %39, %40 : vector<16x1xf32>
    %42 = vector.broadcast %41 : vector<16x1xf32> to vector<16x32xf32>
    %43 = arith.subf %35, %42 : vector<16x32xf32>
    %44 = arith.mulf %43, %43 : vector<16x32xf32>
    %cst_19 = arith.constant dense<0.000000e+00> : vector<16xf32>
    %45 = vector.multi_reduction <add>, %44, %cst_19 [1] : vector<16x32xf32> to vector<16xf32>
    %46 = vector.shape_cast %45 : vector<16xf32> to vector<16x1xf32>
    %cst_20 = arith.constant 3.200000e+01 : f32
    %47 = vector.broadcast %cst_20 : f32 to vector<16x1xf32>
    %48 = arith.divf %46, %47 : vector<16x1xf32>
    %49 = vector.broadcast %41 : vector<16x1xf32> to vector<16x32xf32>
    %50 = arith.subf %35, %49 : vector<16x32xf32>
    %cst_21 = arith.constant 9.99999974E-6 : f32
    %51 = vector.broadcast %cst_21 : f32 to vector<16x1xf32>
    %52 = arith.addf %48, %51 : vector<16x1xf32>
    %53 = math.rsqrt %52 : vector<16x1xf32>
    %54 = vector.broadcast %53 : vector<16x1xf32> to vector<16x32xf32>
    %55 = arith.mulf %50, %54 : vector<16x32xf32>
    %56 = vector.broadcast %36 : vector<1x32xf32> to vector<16x32xf32>
    %57 = arith.mulf %55, %56 : vector<16x32xf32>
    %58 = vector.broadcast %37 : vector<1x32xf32> to vector<16x32xf32>
    %59 = arith.addf %57, %58 : vector<16x32xf32>
    %c0_22 = arith.constant 0 : index
    %c0_23 = arith.constant 0 : index
    %c0_24 = arith.constant 0 : index
    %60 = vector.load %arg1[%c0_22, %c0_23, %c0_24] : memref<2x1x8xi32, #tpu.memory_space<vmem>>, vector<2x1x8xi32>
    %c0_i32_25 = arith.constant 0 : i32
    %61 = vector.broadcast %c0_i32_25 : i32 to vector<2x1x8xi32>
    %62 = arith.cmpi eq, %60, %61 : vector<2x1x8xi32>
    %cst_26 = arith.constant -1.000000e+09 : f32
    %cst_27 = arith.constant 0.000000e+00 : f32
    %63 = vector.broadcast %cst_26 : f32 to vector<2x1x8xf32>
    %64 = vector.broadcast %cst_27 : f32 to vector<2x1x8xf32>
    %65 = arith.select %62, %63, %64 : vector<2x1x8xi1>, vector<2x1x8xf32>
    %66 = tpu.iota {dimensions = array<i32: 2>} : vector<1x1x32xi32>
    %c0_i32_28 = arith.constant 0 : i32
    %67 = vector.broadcast %c0_i32_28 : i32 to vector<1x1x32xi32>
    %68 = arith.cmpi sge, %66, %67 : vector<1x1x32xi32>
    %c8_i32 = arith.constant 8 : i32
    %69 = vector.broadcast %c8_i32 : i32 to vector<1x1x32xi32>
    %70 = arith.cmpi slt, %66, %69 : vector<1x1x32xi32>
    %71 = arith.andi %68, %70 : vector<1x1x32xi1>
    %72 = arith.extui %71 : vector<1x1x32xi1> to vector<1x1x32xi32>
    %73 = arith.sitofp %72 : vector<1x1x32xi32> to vector<1x1x32xf32>
    %c8_i32_29 = arith.constant 8 : i32
    %74 = vector.broadcast %c8_i32_29 : i32 to vector<1x1x32xi32>
    %75 = arith.cmpi sge, %66, %74 : vector<1x1x32xi32>
    %c16_i32 = arith.constant 16 : i32
    %76 = vector.broadcast %c16_i32 : i32 to vector<1x1x32xi32>
    %77 = arith.cmpi slt, %66, %76 : vector<1x1x32xi32>
    %78 = arith.andi %75, %77 : vector<1x1x32xi1>
    %79 = arith.extui %78 : vector<1x1x32xi1> to vector<1x1x32xi32>
    %80 = arith.sitofp %79 : vector<1x1x32xi32> to vector<1x1x32xf32>
    %c16_i32_30 = arith.constant 16 : i32
    %81 = vector.broadcast %c16_i32_30 : i32 to vector<1x1x32xi32>
    %82 = arith.cmpi sge, %66, %81 : vector<1x1x32xi32>
    %c24_i32 = arith.constant 24 : i32
    %83 = vector.broadcast %c24_i32 : i32 to vector<1x1x32xi32>
    %84 = arith.cmpi slt, %66, %83 : vector<1x1x32xi32>
    %85 = arith.andi %82, %84 : vector<1x1x32xi1>
    %86 = arith.extui %85 : vector<1x1x32xi1> to vector<1x1x32xi32>
    %87 = arith.sitofp %86 : vector<1x1x32xi32> to vector<1x1x32xf32>
    %c24_i32_31 = arith.constant 24 : i32
    %88 = vector.broadcast %c24_i32_31 : i32 to vector<1x1x32xi32>
    %89 = arith.cmpi sge, %66, %88 : vector<1x1x32xi32>
    %c32_i32 = arith.constant 32 : i32
    %90 = vector.broadcast %c32_i32 : i32 to vector<1x1x32xi32>
    %91 = arith.cmpi slt, %66, %90 : vector<1x1x32xi32>
    %92 = arith.andi %89, %91 : vector<1x1x32xi1>
    %93 = arith.extui %92 : vector<1x1x32xi1> to vector<1x1x32xi32>
    %94 = arith.sitofp %93 : vector<1x1x32xi32> to vector<1x1x32xf32>
    %c0_32 = arith.constant 0 : index
    %c0_33 = arith.constant 0 : index
    %c0_34 = arith.constant 0 : index
    %95 = vector.load %arg10[%c0_32, %c0_33, %c0_34] : memref<2x32x96xf32, #tpu.memory_space<vmem>>, vector<1x32x96xf32>
    %96 = vector.shape_cast %95 : vector<1x32x96xf32> to vector<32x96xf32>
    %cst_35 = arith.constant dense<0.000000e+00> : vector<16x96xf32>
    %97 = tpu.matmul %59, %96, %cst_35 {dimension_numbers = #tpu.dot_dimension_numbers<[1], [0], [0], [1], [0, 0, 1, 1], [], []>} : vector<16x32xf32>, vector<32x96xf32>, vector<16x96xf32> -> vector<16x96xf32>
    %c0_36 = arith.constant 0 : index
    %c0_37 = arith.constant 0 : index
    %c0_38 = arith.constant 0 : index
    %98 = vector.load %arg11[%c0_36, %c0_37, %c0_38] : memref<2x1x96xf32, #tpu.memory_space<vmem>>, vector<1x1x96xf32>
    %99 = vector.shape_cast %98 : vector<1x1x96xf32> to vector<1x96xf32>
    %100 = vector.broadcast %99 : vector<1x96xf32> to vector<16x96xf32>
    %101 = arith.addf %97, %100 : vector<16x96xf32>
    %102 = vector.shape_cast %101 : vector<16x96xf32> to vector<2x8x96xf32>
    %103 = vector.extract_strided_slice %102 {offsets = [0, 0, 0], sizes = [2, 8, 32], strides = [1, 1, 1]} : vector<2x8x96xf32> to vector<2x8x32xf32>
    %104 = vector.extract_strided_slice %102 {offsets = [0, 0, 32], sizes = [2, 8, 32], strides = [1, 1, 1]} : vector<2x8x96xf32> to vector<2x8x32xf32>
    %105 = vector.extract_strided_slice %102 {offsets = [0, 0, 64], sizes = [2, 8, 32], strides = [1, 1, 1]} : vector<2x8x96xf32> to vector<2x8x32xf32>
    %cst_39 = arith.constant 0.000000e+00 : f32
    %106 = vector.broadcast %cst_39 : f32 to vector<2x8x32xf32>
    %107 = vector.broadcast %73 : vector<1x1x32xf32> to vector<2x8x32xf32>
    %108 = arith.mulf %103, %107 : vector<2x8x32xf32>
    "tpu.trace_start"() <{level = 10 : i32, message = "bqd,bkd->bqk"}> : () -> ()
    %cst_40 = arith.constant dense<0.000000e+00> : vector<2x8x8xf32>
    %109 = tpu.matmul %108, %104, %cst_40 {dimension_numbers = #tpu.dot_dimension_numbers<[2], [2], [1], [1], [0, 0, 0, 1, 1, 1], [0], [0]>} : vector<2x8x32xf32>, vector<2x8x32xf32>, vector<2x8x8xf32> -> vector<2x8x8xf32>
    "tpu.trace_stop"() : () -> ()
    %cst_41 = arith.constant 0.353553385 : f32
    %110 = vector.broadcast %cst_41 : f32 to vector<2x8x8xf32>
    %111 = arith.mulf %109, %110 : vector<2x8x8xf32>
    %112 = vector.broadcast %65 : vector<2x1x8xf32> to vector<2x8x8xf32>
    %113 = arith.addf %111, %112 : vector<2x8x8xf32>
    %cst_42 = arith.constant dense<0xFF800000> : vector<2x8xf32>
    %114 = vector.multi_reduction <maximumf>, %113, %cst_42 [2] : vector<2x8x8xf32> to vector<2x8xf32>
    %115 = vector.shape_cast %114 : vector<2x8xf32> to vector<2x8x1xf32>
    %116 = vector.broadcast %115 : vector<2x8x1xf32> to vector<2x8x8xf32>
    %117 = arith.subf %113, %116 : vector<2x8x8xf32>
    %118 = math.exp %117 : vector<2x8x8xf32>
    %cst_43 = arith.constant dense<0.000000e+00> : vector<2x8xf32>
    %119 = vector.multi_reduction <add>, %118, %cst_43 [2] : vector<2x8x8xf32> to vector<2x8xf32>
    %120 = vector.shape_cast %119 : vector<2x8xf32> to vector<2x8x1xf32>
    %121 = tpu.reciprocal %120 {approx = true} : vector<2x8x1xf32> -> vector<2x8x1xf32>
    %122 = vector.broadcast %121 : vector<2x8x1xf32> to vector<2x8x8xf32>
    %123 = arith.mulf %118, %122 : vector<2x8x8xf32>
    %124 = vector.broadcast %73 : vector<1x1x32xf32> to vector<2x8x32xf32>
    %125 = arith.mulf %105, %124 : vector<2x8x32xf32>
    "tpu.trace_start"() <{level = 10 : i32, message = "bqk,bkd->bqd"}> : () -> ()
    %cst_44 = arith.constant dense<0.000000e+00> : vector<2x8x32xf32>
    %126 = tpu.matmul %123, %125, %cst_44 {dimension_numbers = #tpu.dot_dimension_numbers<[2], [1], [1], [2], [0, 0, 0, 1, 1, 2], [0], [0]>} : vector<2x8x8xf32>, vector<2x8x32xf32>, vector<2x8x32xf32> -> vector<2x8x32xf32>
    "tpu.trace_stop"() : () -> ()
    %127 = arith.addf %106, %126 : vector<2x8x32xf32>
    %128 = vector.broadcast %80 : vector<1x1x32xf32> to vector<2x8x32xf32>
    %129 = arith.mulf %103, %128 : vector<2x8x32xf32>
    "tpu.trace_start"() <{level = 10 : i32, message = "bqd,bkd->bqk"}> : () -> ()
    %cst_45 = arith.constant dense<0.000000e+00> : vector<2x8x8xf32>
    %130 = tpu.matmul %129, %104, %cst_45 {dimension_numbers = #tpu.dot_dimension_numbers<[2], [2], [1], [1], [0, 0, 0, 1, 1, 1], [0], [0]>} : vector<2x8x32xf32>, vector<2x8x32xf32>, vector<2x8x8xf32> -> vector<2x8x8xf32>
    "tpu.trace_stop"() : () -> ()
    %cst_46 = arith.constant 0.353553385 : f32
    %131 = vector.broadcast %cst_46 : f32 to vector<2x8x8xf32>
    %132 = arith.mulf %130, %131 : vector<2x8x8xf32>
    %133 = vector.broadcast %65 : vector<2x1x8xf32> to vector<2x8x8xf32>
    %134 = arith.addf %132, %133 : vector<2x8x8xf32>
    %cst_47 = arith.constant dense<0xFF800000> : vector<2x8xf32>
    %135 = vector.multi_reduction <maximumf>, %134, %cst_47 [2] : vector<2x8x8xf32> to vector<2x8xf32>
    %136 = vector.shape_cast %135 : vector<2x8xf32> to vector<2x8x1xf32>
    %137 = vector.broadcast %136 : vector<2x8x1xf32> to vector<2x8x8xf32>
    %138 = arith.subf %134, %137 : vector<2x8x8xf32>
    %139 = math.exp %138 : vector<2x8x8xf32>
    %cst_48 = arith.constant dense<0.000000e+00> : vector<2x8xf32>
    %140 = vector.multi_reduction <add>, %139, %cst_48 [2] : vector<2x8x8xf32> to vector<2x8xf32>
    %141 = vector.shape_cast %140 : vector<2x8xf32> to vector<2x8x1xf32>
    %142 = tpu.reciprocal %141 {approx = true} : vector<2x8x1xf32> -> vector<2x8x1xf32>
    %143 = vector.broadcast %142 : vector<2x8x1xf32> to vector<2x8x8xf32>
    %144 = arith.mulf %139, %143 : vector<2x8x8xf32>
    %145 = vector.broadcast %80 : vector<1x1x32xf32> to vector<2x8x32xf32>
    %146 = arith.mulf %105, %145 : vector<2x8x32xf32>
    "tpu.trace_start"() <{level = 10 : i32, message = "bqk,bkd->bqd"}> : () -> ()
    %cst_49 = arith.constant dense<0.000000e+00> : vector<2x8x32xf32>
    %147 = tpu.matmul %144, %146, %cst_49 {dimension_numbers = #tpu.dot_dimension_numbers<[2], [1], [1], [2], [0, 0, 0, 1, 1, 2], [0], [0]>} : vector<2x8x8xf32>, vector<2x8x32xf32>, vector<2x8x32xf32> -> vector<2x8x32xf32>
    "tpu.trace_stop"() : () -> ()
    %148 = arith.addf %127, %147 : vector<2x8x32xf32>
    %149 = vector.broadcast %87 : vector<1x1x32xf32> to vector<2x8x32xf32>
    %150 = arith.mulf %103, %149 : vector<2x8x32xf32>
    "tpu.trace_start"() <{level = 10 : i32, message = "bqd,bkd->bqk"}> : () -> ()
    %cst_50 = arith.constant dense<0.000000e+00> : vector<2x8x8xf32>
    %151 = tpu.matmul %150, %104, %cst_50 {dimension_numbers = #tpu.dot_dimension_numbers<[2], [2], [1], [1], [0, 0, 0, 1, 1, 1], [0], [0]>} : vector<2x8x32xf32>, vector<2x8x32xf32>, vector<2x8x8xf32> -> vector<2x8x8xf32>
    "tpu.trace_stop"() : () -> ()
    %cst_51 = arith.constant 0.353553385 : f32
    %152 = vector.broadcast %cst_51 : f32 to vector<2x8x8xf32>
    %153 = arith.mulf %151, %152 : vector<2x8x8xf32>
    %154 = vector.broadcast %65 : vector<2x1x8xf32> to vector<2x8x8xf32>
    %155 = arith.addf %153, %154 : vector<2x8x8xf32>
    %cst_52 = arith.constant dense<0xFF800000> : vector<2x8xf32>
    %156 = vector.multi_reduction <maximumf>, %155, %cst_52 [2] : vector<2x8x8xf32> to vector<2x8xf32>
    %157 = vector.shape_cast %156 : vector<2x8xf32> to vector<2x8x1xf32>
    %158 = vector.broadcast %157 : vector<2x8x1xf32> to vector<2x8x8xf32>
    %159 = arith.subf %155, %158 : vector<2x8x8xf32>
    %160 = math.exp %159 : vector<2x8x8xf32>
    %cst_53 = arith.constant dense<0.000000e+00> : vector<2x8xf32>
    %161 = vector.multi_reduction <add>, %160, %cst_53 [2] : vector<2x8x8xf32> to vector<2x8xf32>
    %162 = vector.shape_cast %161 : vector<2x8xf32> to vector<2x8x1xf32>
    %163 = tpu.reciprocal %162 {approx = true} : vector<2x8x1xf32> -> vector<2x8x1xf32>
    %164 = vector.broadcast %163 : vector<2x8x1xf32> to vector<2x8x8xf32>
    %165 = arith.mulf %160, %164 : vector<2x8x8xf32>
    %166 = vector.broadcast %87 : vector<1x1x32xf32> to vector<2x8x32xf32>
    %167 = arith.mulf %105, %166 : vector<2x8x32xf32>
    "tpu.trace_start"() <{level = 10 : i32, message = "bqk,bkd->bqd"}> : () -> ()
    %cst_54 = arith.constant dense<0.000000e+00> : vector<2x8x32xf32>
    %168 = tpu.matmul %165, %167, %cst_54 {dimension_numbers = #tpu.dot_dimension_numbers<[2], [1], [1], [2], [0, 0, 0, 1, 1, 2], [0], [0]>} : vector<2x8x8xf32>, vector<2x8x32xf32>, vector<2x8x32xf32> -> vector<2x8x32xf32>
    "tpu.trace_stop"() : () -> ()
    %169 = arith.addf %148, %168 : vector<2x8x32xf32>
    %170 = vector.broadcast %94 : vector<1x1x32xf32> to vector<2x8x32xf32>
    %171 = arith.mulf %103, %170 : vector<2x8x32xf32>
    "tpu.trace_start"() <{level = 10 : i32, message = "bqd,bkd->bqk"}> : () -> ()
    %cst_55 = arith.constant dense<0.000000e+00> : vector<2x8x8xf32>
    %172 = tpu.matmul %171, %104, %cst_55 {dimension_numbers = #tpu.dot_dimension_numbers<[2], [2], [1], [1], [0, 0, 0, 1, 1, 1], [0], [0]>} : vector<2x8x32xf32>, vector<2x8x32xf32>, vector<2x8x8xf32> -> vector<2x8x8xf32>
    "tpu.trace_stop"() : () -> ()
    %cst_56 = arith.constant 0.353553385 : f32
    %173 = vector.broadcast %cst_56 : f32 to vector<2x8x8xf32>
    %174 = arith.mulf %172, %173 : vector<2x8x8xf32>
    %175 = vector.broadcast %65 : vector<2x1x8xf32> to vector<2x8x8xf32>
    %176 = arith.addf %174, %175 : vector<2x8x8xf32>
    %cst_57 = arith.constant dense<0xFF800000> : vector<2x8xf32>
    %177 = vector.multi_reduction <maximumf>, %176, %cst_57 [2] : vector<2x8x8xf32> to vector<2x8xf32>
    %178 = vector.shape_cast %177 : vector<2x8xf32> to vector<2x8x1xf32>
    %179 = vector.broadcast %178 : vector<2x8x1xf32> to vector<2x8x8xf32>
    %180 = arith.subf %176, %179 : vector<2x8x8xf32>
    %181 = math.exp %180 : vector<2x8x8xf32>
    %cst_58 = arith.constant dense<0.000000e+00> : vector<2x8xf32>
    %182 = vector.multi_reduction <add>, %181, %cst_58 [2] : vector<2x8x8xf32> to vector<2x8xf32>
    %183 = vector.shape_cast %182 : vector<2x8xf32> to vector<2x8x1xf32>
    %184 = tpu.reciprocal %183 {approx = true} : vector<2x8x1xf32> -> vector<2x8x1xf32>
    %185 = vector.broadcast %184 : vector<2x8x1xf32> to vector<2x8x8xf32>
    %186 = arith.mulf %181, %185 : vector<2x8x8xf32>
    %187 = vector.broadcast %94 : vector<1x1x32xf32> to vector<2x8x32xf32>
    %188 = arith.mulf %105, %187 : vector<2x8x32xf32>
    "tpu.trace_start"() <{level = 10 : i32, message = "bqk,bkd->bqd"}> : () -> ()
    %cst_59 = arith.constant dense<0.000000e+00> : vector<2x8x32xf32>
    %189 = tpu.matmul %186, %188, %cst_59 {dimension_numbers = #tpu.dot_dimension_numbers<[2], [1], [1], [2], [0, 0, 0, 1, 1, 2], [0], [0]>} : vector<2x8x8xf32>, vector<2x8x32xf32>, vector<2x8x32xf32> -> vector<2x8x32xf32>
    "tpu.trace_stop"() : () -> ()
    %190 = arith.addf %169, %189 : vector<2x8x32xf32>
    %191 = vector.shape_cast %190 : vector<2x8x32xf32> to vector<16x32xf32>
    %c0_60 = arith.constant 0 : index
    %c0_61 = arith.constant 0 : index
    %c0_62 = arith.constant 0 : index
    %192 = vector.load %arg12[%c0_60, %c0_61, %c0_62] : memref<2x32x32xf32, #tpu.memory_space<vmem>>, vector<1x32x32xf32>
    %193 = vector.shape_cast %192 : vector<1x32x32xf32> to vector<32x32xf32>
    %cst_63 = arith.constant dense<0.000000e+00> : vector<16x32xf32>
    %194 = tpu.matmul %191, %193, %cst_63 {dimension_numbers = #tpu.dot_dimension_numbers<[1], [0], [0], [1], [0, 0, 1, 1], [], []>} : vector<16x32xf32>, vector<32x32xf32>, vector<16x32xf32> -> vector<16x32xf32>
    %c0_64 = arith.constant 0 : index
    %c0_65 = arith.constant 0 : index
    %c0_66 = arith.constant 0 : index
    %195 = vector.load %arg13[%c0_64, %c0_65, %c0_66] : memref<2x1x32xf32, #tpu.memory_space<vmem>>, vector<1x1x32xf32>
    %196 = vector.shape_cast %195 : vector<1x1x32xf32> to vector<1x32xf32>
    %197 = vector.broadcast %196 : vector<1x32xf32> to vector<16x32xf32>
    %198 = arith.addf %194, %197 : vector<16x32xf32>
    %c0_67 = arith.constant 0 : index
    %c0_68 = arith.constant 0 : index
    %c0_69 = arith.constant 0 : index
    %199 = vector.load %arg14[%c0_67, %c0_68, %c0_69] : memref<2x32x64xf32, #tpu.memory_space<vmem>>, vector<1x32x64xf32>
    %200 = vector.shape_cast %199 : vector<1x32x64xf32> to vector<32x64xf32>
    %cst_70 = arith.constant dense<0.000000e+00> : vector<16x64xf32>
    %201 = tpu.matmul %198, %200, %cst_70 {dimension_numbers = #tpu.dot_dimension_numbers<[1], [0], [0], [1], [0, 0, 1, 1], [], []>} : vector<16x32xf32>, vector<32x64xf32>, vector<16x64xf32> -> vector<16x64xf32>
    %c0_71 = arith.constant 0 : index
    %c0_72 = arith.constant 0 : index
    %c0_73 = arith.constant 0 : index
    %202 = vector.load %arg15[%c0_71, %c0_72, %c0_73] : memref<2x1x64xf32, #tpu.memory_space<vmem>>, vector<1x1x64xf32>
    %203 = vector.shape_cast %202 : vector<1x1x64xf32> to vector<1x64xf32>
    %204 = vector.broadcast %203 : vector<1x64xf32> to vector<16x64xf32>
    %205 = arith.addf %201, %204 : vector<16x64xf32>
    %206 = arith.mulf %205, %205 : vector<16x64xf32>
    %207 = arith.mulf %205, %206 : vector<16x64xf32>
    %cst_74 = arith.constant 4.471500e-02 : f32
    %208 = vector.broadcast %cst_74 : f32 to vector<16x64xf32>
    %209 = arith.mulf %208, %207 : vector<16x64xf32>
    %210 = arith.addf %205, %209 : vector<16x64xf32>
    %cst_75 = arith.constant 0.797884583 : f32
    %211 = vector.broadcast %cst_75 : f32 to vector<16x64xf32>
    %212 = arith.mulf %211, %210 : vector<16x64xf32>
    %213 = math.tanh %212 : vector<16x64xf32>
    %cst_76 = arith.constant 1.000000e+00 : f32
    %214 = vector.broadcast %cst_76 : f32 to vector<16x64xf32>
    %215 = arith.addf %214, %213 : vector<16x64xf32>
    %cst_77 = arith.constant 5.000000e-01 : f32
    %216 = vector.broadcast %cst_77 : f32 to vector<16x64xf32>
    %217 = arith.mulf %216, %215 : vector<16x64xf32>
    %218 = arith.mulf %205, %217 : vector<16x64xf32>
    %c0_78 = arith.constant 0 : index
    %c0_79 = arith.constant 0 : index
    %c0_80 = arith.constant 0 : index
    %219 = vector.load %arg16[%c0_78, %c0_79, %c0_80] : memref<2x64x32xf32, #tpu.memory_space<vmem>>, vector<1x64x32xf32>
    %220 = vector.shape_cast %219 : vector<1x64x32xf32> to vector<64x32xf32>
    %cst_81 = arith.constant dense<0.000000e+00> : vector<16x32xf32>
    %221 = tpu.matmul %218, %220, %cst_81 {dimension_numbers = #tpu.dot_dimension_numbers<[1], [0], [0], [1], [0, 0, 1, 1], [], []>} : vector<16x64xf32>, vector<64x32xf32>, vector<16x32xf32> -> vector<16x32xf32>
    %c0_82 = arith.constant 0 : index
    %c0_83 = arith.constant 0 : index
    %c0_84 = arith.constant 0 : index
    %222 = vector.load %arg17[%c0_82, %c0_83, %c0_84] : memref<2x1x32xf32, #tpu.memory_space<vmem>>, vector<1x1x32xf32>
    %223 = vector.shape_cast %222 : vector<1x1x32xf32> to vector<1x32xf32>
    %224 = vector.broadcast %223 : vector<1x32xf32> to vector<16x32xf32>
    %225 = arith.addf %221, %224 : vector<16x32xf32>
    %226 = arith.addf %225, %198 : vector<16x32xf32>
    %c0_85 = arith.constant 0 : index
    %c0_86 = arith.constant 0 : index
    %c0_87 = arith.constant 0 : index
    %227 = vector.load %arg18[%c0_85, %c0_86, %c0_87] : memref<2x1x32xf32, #tpu.memory_space<vmem>>, vector<1x1x32xf32>
    %228 = vector.shape_cast %227 : vector<1x1x32xf32> to vector<1x32xf32>
    %c0_88 = arith.constant 0 : index
    %c0_89 = arith.constant 0 : index
    %c0_90 = arith.constant 0 : index
    %229 = vector.load %arg19[%c0_88, %c0_89, %c0_90] : memref<2x1x32xf32, #tpu.memory_space<vmem>>, vector<1x1x32xf32>
    %230 = vector.shape_cast %229 : vector<1x1x32xf32> to vector<1x32xf32>
    %cst_91 = arith.constant dense<0.000000e+00> : vector<16xf32>
    %231 = vector.multi_reduction <add>, %226, %cst_91 [1] : vector<16x32xf32> to vector<16xf32>
    %232 = vector.shape_cast %231 : vector<16xf32> to vector<16x1xf32>
    %cst_92 = arith.constant 3.200000e+01 : f32
    %233 = vector.broadcast %cst_92 : f32 to vector<16x1xf32>
    %234 = arith.divf %232, %233 : vector<16x1xf32>
    %235 = vector.broadcast %234 : vector<16x1xf32> to vector<16x32xf32>
    %236 = arith.subf %226, %235 : vector<16x32xf32>
    %237 = arith.mulf %236, %236 : vector<16x32xf32>
    %cst_93 = arith.constant dense<0.000000e+00> : vector<16xf32>
    %238 = vector.multi_reduction <add>, %237, %cst_93 [1] : vector<16x32xf32> to vector<16xf32>
    %239 = vector.shape_cast %238 : vector<16xf32> to vector<16x1xf32>
    %cst_94 = arith.constant 3.200000e+01 : f32
    %240 = vector.broadcast %cst_94 : f32 to vector<16x1xf32>
    %241 = arith.divf %239, %240 : vector<16x1xf32>
    %242 = vector.broadcast %234 : vector<16x1xf32> to vector<16x32xf32>
    %243 = arith.subf %226, %242 : vector<16x32xf32>
    %cst_95 = arith.constant 9.99999974E-6 : f32
    %244 = vector.broadcast %cst_95 : f32 to vector<16x1xf32>
    %245 = arith.addf %241, %244 : vector<16x1xf32>
    %246 = math.rsqrt %245 : vector<16x1xf32>
    %247 = vector.broadcast %246 : vector<16x1xf32> to vector<16x32xf32>
    %248 = arith.mulf %243, %247 : vector<16x32xf32>
    %249 = vector.broadcast %228 : vector<1x32xf32> to vector<16x32xf32>
    %250 = arith.mulf %248, %249 : vector<16x32xf32>
    %251 = vector.broadcast %230 : vector<1x32xf32> to vector<16x32xf32>
    %252 = arith.addf %250, %251 : vector<16x32xf32>
    %c1_96 = arith.constant 1 : index
    %c0_97 = arith.constant 0 : index
    %c0_98 = arith.constant 0 : index
    %253 = vector.load %arg10[%c1_96, %c0_97, %c0_98] : memref<2x32x96xf32, #tpu.memory_space<vmem>>, vector<1x32x96xf32>
    %254 = vector.shape_cast %253 : vector<1x32x96xf32> to vector<32x96xf32>
    %cst_99 = arith.constant dense<0.000000e+00> : vector<16x96xf32>
    %255 = tpu.matmul %252, %254, %cst_99 {dimension_numbers = #tpu.dot_dimension_numbers<[1], [0], [0], [1], [0, 0, 1, 1], [], []>} : vector<16x32xf32>, vector<32x96xf32>, vector<16x96xf32> -> vector<16x96xf32>
    %c1_100 = arith.constant 1 : index
    %c0_101 = arith.constant 0 : index
    %c0_102 = arith.constant 0 : index
    %256 = vector.load %arg11[%c1_100, %c0_101, %c0_102] : memref<2x1x96xf32, #tpu.memory_space<vmem>>, vector<1x1x96xf32>
    %257 = vector.shape_cast %256 : vector<1x1x96xf32> to vector<1x96xf32>
    %258 = vector.broadcast %257 : vector<1x96xf32> to vector<16x96xf32>
    %259 = arith.addf %255, %258 : vector<16x96xf32>
    %260 = vector.shape_cast %259 : vector<16x96xf32> to vector<2x8x96xf32>
    %261 = vector.extract_strided_slice %260 {offsets = [0, 0, 0], sizes = [2, 8, 32], strides = [1, 1, 1]} : vector<2x8x96xf32> to vector<2x8x32xf32>
    %262 = vector.extract_strided_slice %260 {offsets = [0, 0, 32], sizes = [2, 8, 32], strides = [1, 1, 1]} : vector<2x8x96xf32> to vector<2x8x32xf32>
    %263 = vector.extract_strided_slice %260 {offsets = [0, 0, 64], sizes = [2, 8, 32], strides = [1, 1, 1]} : vector<2x8x96xf32> to vector<2x8x32xf32>
    %cst_103 = arith.constant 0.000000e+00 : f32
    %264 = vector.broadcast %cst_103 : f32 to vector<2x8x32xf32>
    %265 = vector.broadcast %73 : vector<1x1x32xf32> to vector<2x8x32xf32>
    %266 = arith.mulf %261, %265 : vector<2x8x32xf32>
    "tpu.trace_start"() <{level = 10 : i32, message = "bqd,bkd->bqk"}> : () -> ()
    %cst_104 = arith.constant dense<0.000000e+00> : vector<2x8x8xf32>
    %267 = tpu.matmul %266, %262, %cst_104 {dimension_numbers = #tpu.dot_dimension_numbers<[2], [2], [1], [1], [0, 0, 0, 1, 1, 1], [0], [0]>} : vector<2x8x32xf32>, vector<2x8x32xf32>, vector<2x8x8xf32> -> vector<2x8x8xf32>
    "tpu.trace_stop"() : () -> ()
    %cst_105 = arith.constant 0.353553385 : f32
    %268 = vector.broadcast %cst_105 : f32 to vector<2x8x8xf32>
    %269 = arith.mulf %267, %268 : vector<2x8x8xf32>
    %270 = vector.broadcast %65 : vector<2x1x8xf32> to vector<2x8x8xf32>
    %271 = arith.addf %269, %270 : vector<2x8x8xf32>
    %cst_106 = arith.constant dense<0xFF800000> : vector<2x8xf32>
    %272 = vector.multi_reduction <maximumf>, %271, %cst_106 [2] : vector<2x8x8xf32> to vector<2x8xf32>
    %273 = vector.shape_cast %272 : vector<2x8xf32> to vector<2x8x1xf32>
    %274 = vector.broadcast %273 : vector<2x8x1xf32> to vector<2x8x8xf32>
    %275 = arith.subf %271, %274 : vector<2x8x8xf32>
    %276 = math.exp %275 : vector<2x8x8xf32>
    %cst_107 = arith.constant dense<0.000000e+00> : vector<2x8xf32>
    %277 = vector.multi_reduction <add>, %276, %cst_107 [2] : vector<2x8x8xf32> to vector<2x8xf32>
    %278 = vector.shape_cast %277 : vector<2x8xf32> to vector<2x8x1xf32>
    %279 = tpu.reciprocal %278 {approx = true} : vector<2x8x1xf32> -> vector<2x8x1xf32>
    %280 = vector.broadcast %279 : vector<2x8x1xf32> to vector<2x8x8xf32>
    %281 = arith.mulf %276, %280 : vector<2x8x8xf32>
    %282 = vector.broadcast %73 : vector<1x1x32xf32> to vector<2x8x32xf32>
    %283 = arith.mulf %263, %282 : vector<2x8x32xf32>
    "tpu.trace_start"() <{level = 10 : i32, message = "bqk,bkd->bqd"}> : () -> ()
    %cst_108 = arith.constant dense<0.000000e+00> : vector<2x8x32xf32>
    %284 = tpu.matmul %281, %283, %cst_108 {dimension_numbers = #tpu.dot_dimension_numbers<[2], [1], [1], [2], [0, 0, 0, 1, 1, 2], [0], [0]>} : vector<2x8x8xf32>, vector<2x8x32xf32>, vector<2x8x32xf32> -> vector<2x8x32xf32>
    "tpu.trace_stop"() : () -> ()
    %285 = arith.addf %264, %284 : vector<2x8x32xf32>
    %286 = vector.broadcast %80 : vector<1x1x32xf32> to vector<2x8x32xf32>
    %287 = arith.mulf %261, %286 : vector<2x8x32xf32>
    "tpu.trace_start"() <{level = 10 : i32, message = "bqd,bkd->bqk"}> : () -> ()
    %cst_109 = arith.constant dense<0.000000e+00> : vector<2x8x8xf32>
    %288 = tpu.matmul %287, %262, %cst_109 {dimension_numbers = #tpu.dot_dimension_numbers<[2], [2], [1], [1], [0, 0, 0, 1, 1, 1], [0], [0]>} : vector<2x8x32xf32>, vector<2x8x32xf32>, vector<2x8x8xf32> -> vector<2x8x8xf32>
    "tpu.trace_stop"() : () -> ()
    %cst_110 = arith.constant 0.353553385 : f32
    %289 = vector.broadcast %cst_110 : f32 to vector<2x8x8xf32>
    %290 = arith.mulf %288, %289 : vector<2x8x8xf32>
    %291 = vector.broadcast %65 : vector<2x1x8xf32> to vector<2x8x8xf32>
    %292 = arith.addf %290, %291 : vector<2x8x8xf32>
    %cst_111 = arith.constant dense<0xFF800000> : vector<2x8xf32>
    %293 = vector.multi_reduction <maximumf>, %292, %cst_111 [2] : vector<2x8x8xf32> to vector<2x8xf32>
    %294 = vector.shape_cast %293 : vector<2x8xf32> to vector<2x8x1xf32>
    %295 = vector.broadcast %294 : vector<2x8x1xf32> to vector<2x8x8xf32>
    %296 = arith.subf %292, %295 : vector<2x8x8xf32>
    %297 = math.exp %296 : vector<2x8x8xf32>
    %cst_112 = arith.constant dense<0.000000e+00> : vector<2x8xf32>
    %298 = vector.multi_reduction <add>, %297, %cst_112 [2] : vector<2x8x8xf32> to vector<2x8xf32>
    %299 = vector.shape_cast %298 : vector<2x8xf32> to vector<2x8x1xf32>
    %300 = tpu.reciprocal %299 {approx = true} : vector<2x8x1xf32> -> vector<2x8x1xf32>
    %301 = vector.broadcast %300 : vector<2x8x1xf32> to vector<2x8x8xf32>
    %302 = arith.mulf %297, %301 : vector<2x8x8xf32>
    %303 = vector.broadcast %80 : vector<1x1x32xf32> to vector<2x8x32xf32>
    %304 = arith.mulf %263, %303 : vector<2x8x32xf32>
    "tpu.trace_start"() <{level = 10 : i32, message = "bqk,bkd->bqd"}> : () -> ()
    %cst_113 = arith.constant dense<0.000000e+00> : vector<2x8x32xf32>
    %305 = tpu.matmul %302, %304, %cst_113 {dimension_numbers = #tpu.dot_dimension_numbers<[2], [1], [1], [2], [0, 0, 0, 1, 1, 2], [0], [0]>} : vector<2x8x8xf32>, vector<2x8x32xf32>, vector<2x8x32xf32> -> vector<2x8x32xf32>
    "tpu.trace_stop"() : () -> ()
    %306 = arith.addf %285, %305 : vector<2x8x32xf32>
    %307 = vector.broadcast %87 : vector<1x1x32xf32> to vector<2x8x32xf32>
    %308 = arith.mulf %261, %307 : vector<2x8x32xf32>
    "tpu.trace_start"() <{level = 10 : i32, message = "bqd,bkd->bqk"}> : () -> ()
    %cst_114 = arith.constant dense<0.000000e+00> : vector<2x8x8xf32>
    %309 = tpu.matmul %308, %262, %cst_114 {dimension_numbers = #tpu.dot_dimension_numbers<[2], [2], [1], [1], [0, 0, 0, 1, 1, 1], [0], [0]>} : vector<2x8x32xf32>, vector<2x8x32xf32>, vector<2x8x8xf32> -> vector<2x8x8xf32>
    "tpu.trace_stop"() : () -> ()
    %cst_115 = arith.constant 0.353553385 : f32
    %310 = vector.broadcast %cst_115 : f32 to vector<2x8x8xf32>
    %311 = arith.mulf %309, %310 : vector<2x8x8xf32>
    %312 = vector.broadcast %65 : vector<2x1x8xf32> to vector<2x8x8xf32>
    %313 = arith.addf %311, %312 : vector<2x8x8xf32>
    %cst_116 = arith.constant dense<0xFF800000> : vector<2x8xf32>
    %314 = vector.multi_reduction <maximumf>, %313, %cst_116 [2] : vector<2x8x8xf32> to vector<2x8xf32>
    %315 = vector.shape_cast %314 : vector<2x8xf32> to vector<2x8x1xf32>
    %316 = vector.broadcast %315 : vector<2x8x1xf32> to vector<2x8x8xf32>
    %317 = arith.subf %313, %316 : vector<2x8x8xf32>
    %318 = math.exp %317 : vector<2x8x8xf32>
    %cst_117 = arith.constant dense<0.000000e+00> : vector<2x8xf32>
    %319 = vector.multi_reduction <add>, %318, %cst_117 [2] : vector<2x8x8xf32> to vector<2x8xf32>
    %320 = vector.shape_cast %319 : vector<2x8xf32> to vector<2x8x1xf32>
    %321 = tpu.reciprocal %320 {approx = true} : vector<2x8x1xf32> -> vector<2x8x1xf32>
    %322 = vector.broadcast %321 : vector<2x8x1xf32> to vector<2x8x8xf32>
    %323 = arith.mulf %318, %322 : vector<2x8x8xf32>
    %324 = vector.broadcast %87 : vector<1x1x32xf32> to vector<2x8x32xf32>
    %325 = arith.mulf %263, %324 : vector<2x8x32xf32>
    "tpu.trace_start"() <{level = 10 : i32, message = "bqk,bkd->bqd"}> : () -> ()
    %cst_118 = arith.constant dense<0.000000e+00> : vector<2x8x32xf32>
    %326 = tpu.matmul %323, %325, %cst_118 {dimension_numbers = #tpu.dot_dimension_numbers<[2], [1], [1], [2], [0, 0, 0, 1, 1, 2], [0], [0]>} : vector<2x8x8xf32>, vector<2x8x32xf32>, vector<2x8x32xf32> -> vector<2x8x32xf32>
    "tpu.trace_stop"() : () -> ()
    %327 = arith.addf %306, %326 : vector<2x8x32xf32>
    %328 = vector.broadcast %94 : vector<1x1x32xf32> to vector<2x8x32xf32>
    %329 = arith.mulf %261, %328 : vector<2x8x32xf32>
    "tpu.trace_start"() <{level = 10 : i32, message = "bqd,bkd->bqk"}> : () -> ()
    %cst_119 = arith.constant dense<0.000000e+00> : vector<2x8x8xf32>
    %330 = tpu.matmul %329, %262, %cst_119 {dimension_numbers = #tpu.dot_dimension_numbers<[2], [2], [1], [1], [0, 0, 0, 1, 1, 1], [0], [0]>} : vector<2x8x32xf32>, vector<2x8x32xf32>, vector<2x8x8xf32> -> vector<2x8x8xf32>
    "tpu.trace_stop"() : () -> ()
    %cst_120 = arith.constant 0.353553385 : f32
    %331 = vector.broadcast %cst_120 : f32 to vector<2x8x8xf32>
    %332 = arith.mulf %330, %331 : vector<2x8x8xf32>
    %333 = vector.broadcast %65 : vector<2x1x8xf32> to vector<2x8x8xf32>
    %334 = arith.addf %332, %333 : vector<2x8x8xf32>
    %cst_121 = arith.constant dense<0xFF800000> : vector<2x8xf32>
    %335 = vector.multi_reduction <maximumf>, %334, %cst_121 [2] : vector<2x8x8xf32> to vector<2x8xf32>
    %336 = vector.shape_cast %335 : vector<2x8xf32> to vector<2x8x1xf32>
    %337 = vector.broadcast %336 : vector<2x8x1xf32> to vector<2x8x8xf32>
    %338 = arith.subf %334, %337 : vector<2x8x8xf32>
    %339 = math.exp %338 : vector<2x8x8xf32>
    %cst_122 = arith.constant dense<0.000000e+00> : vector<2x8xf32>
    %340 = vector.multi_reduction <add>, %339, %cst_122 [2] : vector<2x8x8xf32> to vector<2x8xf32>
    %341 = vector.shape_cast %340 : vector<2x8xf32> to vector<2x8x1xf32>
    %342 = tpu.reciprocal %341 {approx = true} : vector<2x8x1xf32> -> vector<2x8x1xf32>
    %343 = vector.broadcast %342 : vector<2x8x1xf32> to vector<2x8x8xf32>
    %344 = arith.mulf %339, %343 : vector<2x8x8xf32>
    %345 = vector.broadcast %94 : vector<1x1x32xf32> to vector<2x8x32xf32>
    %346 = arith.mulf %263, %345 : vector<2x8x32xf32>
    "tpu.trace_start"() <{level = 10 : i32, message = "bqk,bkd->bqd"}> : () -> ()
    %cst_123 = arith.constant dense<0.000000e+00> : vector<2x8x32xf32>
    %347 = tpu.matmul %344, %346, %cst_123 {dimension_numbers = #tpu.dot_dimension_numbers<[2], [1], [1], [2], [0, 0, 0, 1, 1, 2], [0], [0]>} : vector<2x8x8xf32>, vector<2x8x32xf32>, vector<2x8x32xf32> -> vector<2x8x32xf32>
    "tpu.trace_stop"() : () -> ()
    %348 = arith.addf %327, %347 : vector<2x8x32xf32>
    %349 = vector.shape_cast %348 : vector<2x8x32xf32> to vector<16x32xf32>
    %c1_124 = arith.constant 1 : index
    %c0_125 = arith.constant 0 : index
    %c0_126 = arith.constant 0 : index
    %350 = vector.load %arg12[%c1_124, %c0_125, %c0_126] : memref<2x32x32xf32, #tpu.memory_space<vmem>>, vector<1x32x32xf32>
    %351 = vector.shape_cast %350 : vector<1x32x32xf32> to vector<32x32xf32>
    %cst_127 = arith.constant dense<0.000000e+00> : vector<16x32xf32>
    %352 = tpu.matmul %349, %351, %cst_127 {dimension_numbers = #tpu.dot_dimension_numbers<[1], [0], [0], [1], [0, 0, 1, 1], [], []>} : vector<16x32xf32>, vector<32x32xf32>, vector<16x32xf32> -> vector<16x32xf32>
    %c1_128 = arith.constant 1 : index
    %c0_129 = arith.constant 0 : index
    %c0_130 = arith.constant 0 : index
    %353 = vector.load %arg13[%c1_128, %c0_129, %c0_130] : memref<2x1x32xf32, #tpu.memory_space<vmem>>, vector<1x1x32xf32>
    %354 = vector.shape_cast %353 : vector<1x1x32xf32> to vector<1x32xf32>
    %355 = vector.broadcast %354 : vector<1x32xf32> to vector<16x32xf32>
    %356 = arith.addf %352, %355 : vector<16x32xf32>
    %c1_131 = arith.constant 1 : index
    %c0_132 = arith.constant 0 : index
    %c0_133 = arith.constant 0 : index
    %357 = vector.load %arg14[%c1_131, %c0_132, %c0_133] : memref<2x32x64xf32, #tpu.memory_space<vmem>>, vector<1x32x64xf32>
    %358 = vector.shape_cast %357 : vector<1x32x64xf32> to vector<32x64xf32>
    %cst_134 = arith.constant dense<0.000000e+00> : vector<16x64xf32>
    %359 = tpu.matmul %356, %358, %cst_134 {dimension_numbers = #tpu.dot_dimension_numbers<[1], [0], [0], [1], [0, 0, 1, 1], [], []>} : vector<16x32xf32>, vector<32x64xf32>, vector<16x64xf32> -> vector<16x64xf32>
    %c1_135 = arith.constant 1 : index
    %c0_136 = arith.constant 0 : index
    %c0_137 = arith.constant 0 : index
    %360 = vector.load %arg15[%c1_135, %c0_136, %c0_137] : memref<2x1x64xf32, #tpu.memory_space<vmem>>, vector<1x1x64xf32>
    %361 = vector.shape_cast %360 : vector<1x1x64xf32> to vector<1x64xf32>
    %362 = vector.broadcast %361 : vector<1x64xf32> to vector<16x64xf32>
    %363 = arith.addf %359, %362 : vector<16x64xf32>
    %364 = arith.mulf %363, %363 : vector<16x64xf32>
    %365 = arith.mulf %363, %364 : vector<16x64xf32>
    %cst_138 = arith.constant 4.471500e-02 : f32
    %366 = vector.broadcast %cst_138 : f32 to vector<16x64xf32>
    %367 = arith.mulf %366, %365 : vector<16x64xf32>
    %368 = arith.addf %363, %367 : vector<16x64xf32>
    %cst_139 = arith.constant 0.797884583 : f32
    %369 = vector.broadcast %cst_139 : f32 to vector<16x64xf32>
    %370 = arith.mulf %369, %368 : vector<16x64xf32>
    %371 = math.tanh %370 : vector<16x64xf32>
    %cst_140 = arith.constant 1.000000e+00 : f32
    %372 = vector.broadcast %cst_140 : f32 to vector<16x64xf32>
    %373 = arith.addf %372, %371 : vector<16x64xf32>
    %cst_141 = arith.constant 5.000000e-01 : f32
    %374 = vector.broadcast %cst_141 : f32 to vector<16x64xf32>
    %375 = arith.mulf %374, %373 : vector<16x64xf32>
    %376 = arith.mulf %363, %375 : vector<16x64xf32>
    %c1_142 = arith.constant 1 : index
    %c0_143 = arith.constant 0 : index
    %c0_144 = arith.constant 0 : index
    %377 = vector.load %arg16[%c1_142, %c0_143, %c0_144] : memref<2x64x32xf32, #tpu.memory_space<vmem>>, vector<1x64x32xf32>
    %378 = vector.shape_cast %377 : vector<1x64x32xf32> to vector<64x32xf32>
    %cst_145 = arith.constant dense<0.000000e+00> : vector<16x32xf32>
    %379 = tpu.matmul %376, %378, %cst_145 {dimension_numbers = #tpu.dot_dimension_numbers<[1], [0], [0], [1], [0, 0, 1, 1], [], []>} : vector<16x64xf32>, vector<64x32xf32>, vector<16x32xf32> -> vector<16x32xf32>
    %c1_146 = arith.constant 1 : index
    %c0_147 = arith.constant 0 : index
    %c0_148 = arith.constant 0 : index
    %380 = vector.load %arg17[%c1_146, %c0_147, %c0_148] : memref<2x1x32xf32, #tpu.memory_space<vmem>>, vector<1x1x32xf32>
    %381 = vector.shape_cast %380 : vector<1x1x32xf32> to vector<1x32xf32>
    %382 = vector.broadcast %381 : vector<1x32xf32> to vector<16x32xf32>
    %383 = arith.addf %379, %382 : vector<16x32xf32>
    %384 = arith.addf %383, %356 : vector<16x32xf32>
    %c1_149 = arith.constant 1 : index
    %c0_150 = arith.constant 0 : index
    %c0_151 = arith.constant 0 : index
    %385 = vector.load %arg18[%c1_149, %c0_150, %c0_151] : memref<2x1x32xf32, #tpu.memory_space<vmem>>, vector<1x1x32xf32>
    %386 = vector.shape_cast %385 : vector<1x1x32xf32> to vector<1x32xf32>
    %c1_152 = arith.constant 1 : index
    %c0_153 = arith.constant 0 : index
    %c0_154 = arith.constant 0 : index
    %387 = vector.load %arg19[%c1_152, %c0_153, %c0_154] : memref<2x1x32xf32, #tpu.memory_space<vmem>>, vector<1x1x32xf32>
    %388 = vector.shape_cast %387 : vector<1x1x32xf32> to vector<1x32xf32>
    %cst_155 = arith.constant dense<0.000000e+00> : vector<16xf32>
    %389 = vector.multi_reduction <add>, %384, %cst_155 [1] : vector<16x32xf32> to vector<16xf32>
    %390 = vector.shape_cast %389 : vector<16xf32> to vector<16x1xf32>
    %cst_156 = arith.constant 3.200000e+01 : f32
    %391 = vector.broadcast %cst_156 : f32 to vector<16x1xf32>
    %392 = arith.divf %390, %391 : vector<16x1xf32>
    %393 = vector.broadcast %392 : vector<16x1xf32> to vector<16x32xf32>
    %394 = arith.subf %384, %393 : vector<16x32xf32>
    %395 = arith.mulf %394, %394 : vector<16x32xf32>
    %cst_157 = arith.constant dense<0.000000e+00> : vector<16xf32>
    %396 = vector.multi_reduction <add>, %395, %cst_157 [1] : vector<16x32xf32> to vector<16xf32>
    %397 = vector.shape_cast %396 : vector<16xf32> to vector<16x1xf32>
    %cst_158 = arith.constant 3.200000e+01 : f32
    %398 = vector.broadcast %cst_158 : f32 to vector<16x1xf32>
    %399 = arith.divf %397, %398 : vector<16x1xf32>
    %400 = vector.broadcast %392 : vector<16x1xf32> to vector<16x32xf32>
    %401 = arith.subf %384, %400 : vector<16x32xf32>
    %cst_159 = arith.constant 9.99999974E-6 : f32
    %402 = vector.broadcast %cst_159 : f32 to vector<16x1xf32>
    %403 = arith.addf %399, %402 : vector<16x1xf32>
    %404 = math.rsqrt %403 : vector<16x1xf32>
    %405 = vector.broadcast %404 : vector<16x1xf32> to vector<16x32xf32>
    %406 = arith.mulf %401, %405 : vector<16x32xf32>
    %407 = vector.broadcast %386 : vector<1x32xf32> to vector<16x32xf32>
    %408 = arith.mulf %406, %407 : vector<16x32xf32>
    %409 = vector.broadcast %388 : vector<1x32xf32> to vector<16x32xf32>
    %410 = arith.addf %408, %409 : vector<16x32xf32>
    %411 = tpu.iota {dimensions = array<i32: 0>} : vector<8x16xi32>
    %412 = tpu.iota {dimensions = array<i32: 1>} : vector<8x16xi32>
    %c8_i32_160 = arith.constant 8 : i32
    %413 = vector.broadcast %c8_i32_160 : i32 to vector<8x16xi32>
    %414 = arith.muli %411, %413 : vector<8x16xi32>
    %415 = arith.cmpi eq, %412, %414 : vector<8x16xi32>
    %c2_i32 = arith.constant 2 : i32
    %416 = vector.broadcast %c2_i32 : i32 to vector<8x16xi32>
    %417 = arith.cmpi slt, %411, %416 : vector<8x16xi32>
    %418 = arith.andi %415, %417 : vector<8x16xi1>
    %419 = arith.extui %418 : vector<8x16xi1> to vector<8x16xi32>
    %420 = arith.sitofp %419 : vector<8x16xi32> to vector<8x16xf32>
    %cst_161 = arith.constant dense<0.000000e+00> : vector<8x32xf32>
    %421 = tpu.matmul %420, %410, %cst_161 {dimension_numbers = #tpu.dot_dimension_numbers<[1], [0], [0], [1], [0, 0, 1, 1], [], []>} : vector<8x16xf32>, vector<16x32xf32>, vector<8x32xf32> -> vector<8x32xf32>
    %c0_162 = arith.constant 0 : index
    %c0_163 = arith.constant 0 : index
    %422 = vector.load %arg20[%c0_162, %c0_163] : memref<32x32xf32, #tpu.memory_space<vmem>>, vector<32x32xf32>
    %cst_164 = arith.constant dense<0.000000e+00> : vector<8x32xf32>
    %423 = tpu.matmul %421, %422, %cst_164 {dimension_numbers = #tpu.dot_dimension_numbers<[1], [0], [0], [1], [0, 0, 1, 1], [], []>} : vector<8x32xf32>, vector<32x32xf32>, vector<8x32xf32> -> vector<8x32xf32>
    %c0_165 = arith.constant 0 : index
    %c0_166 = arith.constant 0 : index
    %424 = vector.load %arg21[%c0_165, %c0_166] : memref<1x32xf32, #tpu.memory_space<vmem>>, vector<1x32xf32>
    %425 = vector.broadcast %424 : vector<1x32xf32> to vector<8x32xf32>
    %426 = arith.addf %423, %425 : vector<8x32xf32>
    %427 = math.tanh %426 : vector<8x32xf32>
    %c0_167 = arith.constant 0 : index
    %c0_168 = arith.constant 0 : index
    %428 = vector.load %arg22[%c0_167, %c0_168] : memref<32x128xf32, #tpu.memory_space<vmem>>, vector<32x128xf32>
    %cst_169 = arith.constant dense<0.000000e+00> : vector<8x128xf32>
    %429 = tpu.matmul %427, %428, %cst_169 {dimension_numbers = #tpu.dot_dimension_numbers<[1], [0], [0], [1], [0, 0, 1, 1], [], []>} : vector<8x32xf32>, vector<32x128xf32>, vector<8x128xf32> -> vector<8x128xf32>
    %c0_170 = arith.constant 0 : index
    %c0_171 = arith.constant 0 : index
    %430 = vector.load %arg23[%c0_170, %c0_171] : memref<1x128xf32, #tpu.memory_space<vmem>>, vector<1x128xf32>
    %431 = vector.broadcast %430 : vector<1x128xf32> to vector<8x128xf32>
    %432 = arith.addf %429, %431 : vector<8x128xf32>
    %c0_172 = arith.constant 0 : index
    %c0_173 = arith.constant 0 : index
    %433 = vector.load %arg30[%c0_172, %c0_173] : memref<8x128xf32, #tpu.memory_space<vmem>>, vector<8x128xf32>
    tpu.vector_store %arg30[%c0_172, %c0_173], %432 {strides = array<i32>} : memref<8x128xf32, #tpu.memory_space<vmem>>, vector<8x128xf32>,
    %c0_174 = arith.constant 0 : index
    %c0_175 = arith.constant 0 : index
    %434 = vector.load %arg4[%c0_174, %c0_175] : memref<8x1xi32, #tpu.memory_space<vmem>>, vector<8x1xi32>
    %435 = tpu.iota {dimensions = array<i32: 1>} : vector<8x16xi32>
    %436 = vector.broadcast %434 : vector<8x1xi32> to vector<8x16xi32>
    %437 = arith.cmpi eq, %436, %435 : vector<8x16xi32>
    %438 = arith.extui %437 : vector<8x16xi1> to vector<8x16xi32>
    %439 = arith.sitofp %438 : vector<8x16xi32> to vector<8x16xf32>
    %cst_176 = arith.constant dense<0.000000e+00> : vector<8x32xf32>
    %440 = tpu.matmul %439, %410, %cst_176 {dimension_numbers = #tpu.dot_dimension_numbers<[1], [0], [0], [1], [0, 0, 1, 1], [], []>} : vector<8x16xf32>, vector<16x32xf32>, vector<8x32xf32> -> vector<8x32xf32>
    %c0_177 = arith.constant 0 : index
    %c0_178 = arith.constant 0 : index
    %441 = vector.load %arg24[%c0_177, %c0_178] : memref<32x32xf32, #tpu.memory_space<vmem>>, vector<32x32xf32>
    %cst_179 = arith.constant dense<0.000000e+00> : vector<8x32xf32>
    %442 = tpu.matmul %440, %441, %cst_179 {dimension_numbers = #tpu.dot_dimension_numbers<[1], [0], [0], [1], [0, 0, 1, 1], [], []>} : vector<8x32xf32>, vector<32x32xf32>, vector<8x32xf32> -> vector<8x32xf32>
    %c0_180 = arith.constant 0 : index
    %c0_181 = arith.constant 0 : index
    %443 = vector.load %arg25[%c0_180, %c0_181] : memref<1x32xf32, #tpu.memory_space<vmem>>, vector<1x32xf32>
    %444 = vector.broadcast %443 : vector<1x32xf32> to vector<8x32xf32>
    %445 = arith.addf %442, %444 : vector<8x32xf32>
    %446 = arith.mulf %445, %445 : vector<8x32xf32>
    %447 = arith.mulf %445, %446 : vector<8x32xf32>
    %cst_182 = arith.constant 4.471500e-02 : f32
    %448 = vector.broadcast %cst_182 : f32 to vector<8x32xf32>
    %449 = arith.mulf %448, %447 : vector<8x32xf32>
    %450 = arith.addf %445, %449 : vector<8x32xf32>
    %cst_183 = arith.constant 0.797884583 : f32
    %451 = vector.broadcast %cst_183 : f32 to vector<8x32xf32>
    %452 = arith.mulf %451, %450 : vector<8x32xf32>
    %453 = math.tanh %452 : vector<8x32xf32>
    %cst_184 = arith.constant 1.000000e+00 : f32
    %454 = vector.broadcast %cst_184 : f32 to vector<8x32xf32>
    %455 = arith.addf %454, %453 : vector<8x32xf32>
    %cst_185 = arith.constant 5.000000e-01 : f32
    %456 = vector.broadcast %cst_185 : f32 to vector<8x32xf32>
    %457 = arith.mulf %456, %455 : vector<8x32xf32>
    %458 = arith.mulf %445, %457 : vector<8x32xf32>
    %c0_186 = arith.constant 0 : index
    %c0_187 = arith.constant 0 : index
    %459 = vector.load %arg26[%c0_186, %c0_187] : memref<1x32xf32, #tpu.memory_space<vmem>>, vector<1x32xf32>
    %c0_188 = arith.constant 0 : index
    %c0_189 = arith.constant 0 : index
    %460 = vector.load %arg27[%c0_188, %c0_189] : memref<1x32xf32, #tpu.memory_space<vmem>>, vector<1x32xf32>
    %cst_190 = arith.constant dense<0.000000e+00> : vector<8xf32>
    %461 = vector.multi_reduction <add>, %458, %cst_190 [1] : vector<8x32xf32> to vector<8xf32>
    %462 = vector.shape_cast %461 : vector<8xf32> to vector<8x1xf32>
    %cst_191 = arith.constant 3.200000e+01 : f32
    %463 = vector.broadcast %cst_191 : f32 to vector<8x1xf32>
    %464 = arith.divf %462, %463 : vector<8x1xf32>
    %465 = vector.broadcast %464 : vector<8x1xf32> to vector<8x32xf32>
    %466 = arith.subf %458, %465 : vector<8x32xf32>
    %467 = arith.mulf %466, %466 : vector<8x32xf32>
    %cst_192 = arith.constant dense<0.000000e+00> : vector<8xf32>
    %468 = vector.multi_reduction <add>, %467, %cst_192 [1] : vector<8x32xf32> to vector<8xf32>
    %469 = vector.shape_cast %468 : vector<8xf32> to vector<8x1xf32>
    %cst_193 = arith.constant 3.200000e+01 : f32
    %470 = vector.broadcast %cst_193 : f32 to vector<8x1xf32>
    %471 = arith.divf %469, %470 : vector<8x1xf32>
    %472 = vector.broadcast %464 : vector<8x1xf32> to vector<8x32xf32>
    %473 = arith.subf %458, %472 : vector<8x32xf32>
    %cst_194 = arith.constant 9.99999974E-6 : f32
    %474 = vector.broadcast %cst_194 : f32 to vector<8x1xf32>
    %475 = arith.addf %471, %474 : vector<8x1xf32>
    %476 = math.rsqrt %475 : vector<8x1xf32>
    %477 = vector.broadcast %476 : vector<8x1xf32> to vector<8x32xf32>
    %478 = arith.mulf %473, %477 : vector<8x32xf32>
    %479 = vector.broadcast %459 : vector<1x32xf32> to vector<8x32xf32>
    %480 = arith.mulf %478, %479 : vector<8x32xf32>
    %481 = vector.broadcast %460 : vector<1x32xf32> to vector<8x32xf32>
    %482 = arith.addf %480, %481 : vector<8x32xf32>
    %c0_195 = arith.constant 0 : index
    %c0_196 = arith.constant 0 : index
    %483 = vector.load %arg5[%c0_195, %c0_196] : memref<128x32xf32, #tpu.memory_space<vmem>>, vector<128x32xf32>
    %cst_197 = arith.constant dense<0.000000e+00> : vector<8x128xf32>
    %484 = tpu.matmul %482, %483, %cst_197 {dimension_numbers = #tpu.dot_dimension_numbers<[1], [1], [0], [0], [0, 0, 1, 0], [], []>} : vector<8x32xf32>, vector<128x32xf32>, vector<8x128xf32> -> vector<8x128xf32>
    %c0_198 = arith.constant 0 : index
    %c0_199 = arith.constant 0 : index
    %485 = vector.load %arg28[%c0_198, %c0_199] : memref<1x128xf32, #tpu.memory_space<vmem>>, vector<1x128xf32>
    %486 = vector.broadcast %485 : vector<1x128xf32> to vector<8x128xf32>
    %487 = arith.addf %484, %486 : vector<8x128xf32>
    %c0_200 = arith.constant 0 : index
    %c0_201 = arith.constant 0 : index
    %488 = vector.load %arg29[%c0_200, %c0_201] : memref<8x128xf32, #tpu.memory_space<vmem>>, vector<8x128xf32>
    tpu.vector_store %arg29[%c0_200, %c0_201], %487 {strides = array<i32>} : memref<8x128xf32, #tpu.memory_space<vmem>>, vector<8x128xf32>,
    return
  }
  func.func @transform_0(%arg0: i32) -> (i32, i32, i32) {
    %c0_i32 = arith.constant 0 : i32
    %c0_i32_0 = arith.constant 0 : i32
    %c0_i32_1 = arith.constant 0 : i32
    %c0_i32_2 = arith.constant 0 : i32
    return %c0_i32, %c0_i32_0, %c0_i32_1 : i32, i32, i32
  }
  func.func @transform_1(%arg0: i32) -> (i32, i32) {
    %c0_i32 = arith.constant 0 : i32
    %c0_i32_0 = arith.constant 0 : i32
    %c0_i32_1 = arith.constant 0 : i32
    return %c0_i32, %c0_i32_0 : i32, i32
  }
  func.func @transform_2(%arg0: i32) -> (i32, i32) {
    %c0_i32 = arith.constant 0 : i32
    %c0_i32_0 = arith.constant 0 : i32
    %c0_i32_1 = arith.constant 0 : i32
    return %c0_i32, %c0_i32_0 : i32, i32
  }
  func.func @transform_3(%arg0: i32) -> (i32, i32) {
    %c0_i32 = arith.constant 0 : i32
    %c0_i32_0 = arith.constant 0 : i32
    %c0_i32_1 = arith.constant 0 : i32
    return %c0_i32, %c0_i32_0 : i32, i32
  }
  func.func @transform_4(%arg0: i32) -> (i32, i32) {
    %c0_i32 = arith.constant 0 : i32
    %c0_i32_0 = arith.constant 0 : i32
    %c0_i32_1 = arith.constant 0 : i32
    return %c0_i32, %c0_i32_0 : i32, i32
  }
  func.func @transform_5(%arg0: i32) -> (i32, i32) {
    %c0_i32 = arith.constant 0 : i32
    %c0_i32_0 = arith.constant 0 : i32
    %c0_i32_1 = arith.constant 0 : i32
    return %c0_i32, %c0_i32_0 : i32, i32
  }
  func.func @transform_6(%arg0: i32) -> (i32, i32) {
    %c0_i32 = arith.constant 0 : i32
    %c0_i32_0 = arith.constant 0 : i32
    %c0_i32_1 = arith.constant 0 : i32
    return %c0_i32, %c0_i32_0 : i32, i32
  }
  func.func @transform_7(%arg0: i32) -> (i32, i32) {
    %c0_i32 = arith.constant 0 : i32
    %c0_i32_0 = arith.constant 0 : i32
    %c0_i32_1 = arith.constant 0 : i32
    return %c0_i32, %c0_i32_0 : i32, i32
  }
  func.func @transform_8(%arg0: i32) -> (i32, i32) {
    %c0_i32 = arith.constant 0 : i32
    %c0_i32_0 = arith.constant 0 : i32
    %c0_i32_1 = arith.constant 0 : i32
    return %c0_i32, %c0_i32_0 : i32, i32
  }
  func.func @transform_9(%arg0: i32) -> (i32, i32, i32) {
    %c0_i32 = arith.constant 0 : i32
    %c0_i32_0 = arith.constant 0 : i32
    %c0_i32_1 = arith.constant 0 : i32
    %c0_i32_2 = arith.constant 0 : i32
    return %c0_i32, %c0_i32_0, %c0_i32_1 : i32, i32, i32
  }
  func.func @transform_10(%arg0: i32) -> (i32, i32, i32) {
    %c0_i32 = arith.constant 0 : i32
    %c0_i32_0 = arith.constant 0 : i32
    %c0_i32_1 = arith.constant 0 : i32
    %c0_i32_2 = arith.constant 0 : i32
    return %c0_i32, %c0_i32_0, %c0_i32_1 : i32, i32, i32
  }
  func.func @transform_11(%arg0: i32) -> (i32, i32, i32) {
    %c0_i32 = arith.constant 0 : i32
    %c0_i32_0 = arith.constant 0 : i32
    %c0_i32_1 = arith.constant 0 : i32
    %c0_i32_2 = arith.constant 0 : i32
    return %c0_i32, %c0_i32_0, %c0_i32_1 : i32, i32, i32
  }
  func.func @transform_12(%arg0: i32) -> (i32, i32, i32) {
    %c0_i32 = arith.constant 0 : i32
    %c0_i32_0 = arith.constant 0 : i32
    %c0_i32_1 = arith.constant 0 : i32
    %c0_i32_2 = arith.constant 0 : i32
    return %c0_i32, %c0_i32_0, %c0_i32_1 : i32, i32, i32
  }
  func.func @transform_13(%arg0: i32) -> (i32, i32, i32) {
    %c0_i32 = arith.constant 0 : i32
    %c0_i32_0 = arith.constant 0 : i32
    %c0_i32_1 = arith.constant 0 : i32
    %c0_i32_2 = arith.constant 0 : i32
    return %c0_i32, %c0_i32_0, %c0_i32_1 : i32, i32, i32
  }
  func.func @transform_14(%arg0: i32) -> (i32, i32, i32) {
    %c0_i32 = arith.constant 0 : i32
    %c0_i32_0 = arith.constant 0 : i32
    %c0_i32_1 = arith.constant 0 : i32
    %c0_i32_2 = arith.constant 0 : i32
    return %c0_i32, %c0_i32_0, %c0_i32_1 : i32, i32, i32
  }
  func.func @transform_15(%arg0: i32) -> (i32, i32, i32) {
    %c0_i32 = arith.constant 0 : i32
    %c0_i32_0 = arith.constant 0 : i32
    %c0_i32_1 = arith.constant 0 : i32
    %c0_i32_2 = arith.constant 0 : i32
    return %c0_i32, %c0_i32_0, %c0_i32_1 : i32, i32, i32
  }
  func.func @transform_16(%arg0: i32) -> (i32, i32, i32) {
    %c0_i32 = arith.constant 0 : i32
    %c0_i32_0 = arith.constant 0 : i32
    %c0_i32_1 = arith.constant 0 : i32
    %c0_i32_2 = arith.constant 0 : i32
    return %c0_i32, %c0_i32_0, %c0_i32_1 : i32, i32, i32
  }
  func.func @transform_17(%arg0: i32) -> (i32, i32, i32) {
    %c0_i32 = arith.constant 0 : i32
    %c0_i32_0 = arith.constant 0 : i32
    %c0_i32_1 = arith.constant 0 : i32
    %c0_i32_2 = arith.constant 0 : i32
    return %c0_i32, %c0_i32_0, %c0_i32_1 : i32, i32, i32
  }
  func.func @transform_18(%arg0: i32) -> (i32, i32, i32) {
    %c0_i32 = arith.constant 0 : i32
    %c0_i32_0 = arith.constant 0 : i32
    %c0_i32_1 = arith.constant 0 : i32
    %c0_i32_2 = arith.constant 0 : i32
    return %c0_i32, %c0_i32_0, %c0_i32_1 : i32, i32, i32
  }
  func.func @transform_19(%arg0: i32) -> (i32, i32) {
    %c0_i32 = arith.constant 0 : i32
    %c0_i32_0 = arith.constant 0 : i32
    %c0_i32_1 = arith.constant 0 : i32
    return %c0_i32, %c0_i32_0 : i32, i32
  }
  func.func @transform_20(%arg0: i32) -> (i32, i32) {
    %c0_i32 = arith.constant 0 : i32
    %c0_i32_0 = arith.constant 0 : i32
    %c0_i32_1 = arith.constant 0 : i32
    return %c0_i32, %c0_i32_0 : i32, i32
  }
  func.func @transform_21(%arg0: i32) -> (i32, i32) {
    %c0_i32 = arith.constant 0 : i32
    %c0_i32_0 = arith.constant 0 : i32
    %c0_i32_1 = arith.constant 0 : i32
    return %c0_i32, %c0_i32_0 : i32, i32
  }
  func.func @transform_22(%arg0: i32) -> (i32, i32) {
    %c0_i32 = arith.constant 0 : i32
    %c0_i32_0 = arith.constant 0 : i32
    %c0_i32_1 = arith.constant 0 : i32
    return %c0_i32, %c0_i32_0 : i32, i32
  }
  func.func @transform_23(%arg0: i32) -> (i32, i32) {
    %c0_i32 = arith.constant 0 : i32
    %c0_i32_0 = arith.constant 0 : i32
    %c0_i32_1 = arith.constant 0 : i32
    return %c0_i32, %c0_i32_0 : i32, i32
  }
  func.func @transform_24(%arg0: i32) -> (i32, i32) {
    %c0_i32 = arith.constant 0 : i32
    %c0_i32_0 = arith.constant 0 : i32
    %c0_i32_1 = arith.constant 0 : i32
    return %c0_i32, %c0_i32_0 : i32, i32
  }
  func.func @transform_25(%arg0: i32) -> (i32, i32) {
    %c0_i32 = arith.constant 0 : i32
    %c0_i32_0 = arith.constant 0 : i32
    %c0_i32_1 = arith.constant 0 : i32
    return %c0_i32, %c0_i32_0 : i32, i32
  }
  func.func @transform_26(%arg0: i32) -> (i32, i32) {
    %c0_i32 = arith.constant 0 : i32
    %c0_i32_0 = arith.constant 0 : i32
    %c0_i32_1 = arith.constant 0 : i32
    return %c0_i32, %c0_i32_0 : i32, i32
  }
  func.func @transform_27(%arg0: i32) -> (i32, i32) {
    %c0_i32 = arith.constant 0 : i32
    %c0_i32_0 = arith.constant 0 : i32
    %c0_i32_1 = arith.constant 0 : i32
    return %c0_i32, %c0_i32_0 : i32, i32
  }
  func.func @transform_28(%arg0: i32) -> (i32, i32) {
    %c0_i32 = arith.constant 0 : i32
    %c0_i32_0 = arith.constant 0 : i32
    %c0_i32_1 = arith.constant 0 : i32
    return %c0_i32, %c0_i32_0 : i32, i32
  }
  func.func @transform_29(%arg0: i32) -> (i32, i32) {
    %c0_i32 = arith.constant 0 : i32
    %c0_i32_0 = arith.constant 0 : i32
    %c0_i32_1 = arith.constant 0 : i32
    return %c0_i32, %c0_i32_0 : i32, i32
  }
}

</mosaic_0001>

<bundles_post_ra>
// kernel: bert_forward.1
= control target key start
LH: loop header
LB: loop body
LE: loop exit
PB: predicated region body
PF: predicated region fallthrough
CT: control target
= control target key end

     0   :  { %s5567_s6 = smov 1   ;;  %s5568_s10 = smov 2   ;;  %s6376_s0 = inlined_call_operand.smem [shape: u32[30], index: -1, kind: input, shape index: {}] }
   0x1   :  { %s5615_s5 = sld [smem:[%s6376_s0]]   ;;  %s5569_s14 = smov 3  }
   0x2   :  { %s5620_s9 = sld [smem:[%s6376_s0 + %s5567_s6]]   ;;  %s5570_s18 = smov 4  }
   0x3   :  { %s5625_s13 = sld [smem:[%s6376_s0 + %s5568_s10]]   ;;  %s5571_s22 = smov 5  }
   0x4   :  { %s5630_s17 = sld [smem:[%s6376_s0 + %s5569_s14]]   ;;  %s5572_s26 = smov 6  }
   0x5   :  { %s5635_s21 = sld [smem:[%s6376_s0 + %s5570_s18]]   ;;  %s5573_s30 = smov 7  }
   0x6   :  { %s5640_s25 = sld [smem:[%s6376_s0 + %s5571_s22]]   ;;  %s5574_s4 = smov 8  }
   0x7   :  { %s5645_s29 = sld [smem:[%s6376_s0 + %s5572_s26]]   ;;  %s5575_s10 = smov 9  }
   0x8   :  { %s5650_s3 = sld [smem:[%s6376_s0 + %s5573_s30]]   ;;  %s5576_s15 = smov 10  }
   0x9   :  { %s5655_s8 = sld [smem:[%s6376_s0 + %s5574_s4]]   ;;  %s5577_s20 = smov 11  }
   0xa   :  { %6386 = sst [smem:[#allocation15_spill]] %s5630_s17  ;;  %s5578_s26 = smov 12  }
   0xb   :  { %s5660_s14 = sld [smem:[%s6376_s0 + %s5575_s10]]   ;;  %s5579_s1 = smov 13  }
   0xc   :  { %s5665_s19 = sld [smem:[%s6376_s0 + %s5576_s15]]   ;;  %s5580_s7 = smov 14  }
   0xd   :  { %s5670_s24 = sld [smem:[%s6376_s0 + %s5577_s20]]   ;;  %s5581_s15 = smov 15  }
   0xe   :  { %s5675_s30 = sld [smem:[%s6376_s0 + %s5578_s26]]   ;;  %s5582_s22 = smov 16  }
   0xf   :  { %s5680_s6 = sld [smem:[%s6376_s0 + %s5579_s1]]   ;;  %s5583_s28 = smov 17  }
  0x10   :  { %s5685_s12 = sld [smem:[%s6376_s0 + %s5580_s7]]   ;;  %s5584_s7 = smov 18  }
  0x11   :  { %s5690_s20 = sld [smem:[%s6376_s0 + %s5581_s15]]   ;;  %s5585_s15 = smov 19  }
  0x12   :  { %s5695_s27 = sld [smem:[%s6376_s0 + %s5582_s22]]   ;;  %s5586_s22 = smov 20  }
  0x13   :  { %s5700_s4 = sld [smem:[%s6376_s0 + %s5583_s28]]   ;;  %s5587_s28 = smov 21  }
  0x14   :  { %6387 = sst [smem:[#allocation16_spill]] %s5675_s30 }
  0x15   :  { %s5705_s17 = sld [smem:[%s6376_s0 + %s5584_s7]]   ;;  %s5588_s7 = smov 22  }
  0x16   :  { %6388 = sst [smem:[#allocation17_spill]] %s5685_s12 }
  0x17   :  { %6389 = sst [smem:[#allocation18_spill]] %s5690_s20 }
  0x18   :  { %6390 = sst [smem:[#allocation19_spill]] %s5695_s27 }
  0x19   :  { %6391 = sst [smem:[#allocation20_spill]] %s5700_s4 }
  0x1a   :  { %s5710_s12 = sld [smem:[%s6376_s0 + %s5585_s15]]   ;;  %s5589_s15 = smov 23  }
  0x1b   :  { %6392 = sst [smem:[#allocation21_spill]] %s5705_s17 }
  0x1c   :  { %s5715_s27 = sld [smem:[%s6376_s0 + %s5586_s22]]   ;;  %s5590_s22 = smov 24  }
  0x1d   :  { %s5720_s4 = sld [smem:[%s6376_s0 + %s5587_s28]]   ;;  %s5591_s28 = smov 25  }
  0x1e   :  { %s5725_s17 = sld [smem:[%s6376_s0 + %s5588_s7]]   ;;  %s5592_s7 = smov 26  }
  0x1f   :  { %s5735_s20 = sld [smem:[%s6376_s0 + %s5590_s22]]   ;;  %s5594_s22 = smov 28  }
  0x20   :  { %6393 = sst [smem:[#allocation22_spill]] %s5710_s12 }
  0x21   :  { %s5730_s12 = sld [smem:[%s6376_s0 + %s5589_s15]]   ;;  %s5593_s15 = smov 27  }
  0x22   :  { %s5745_s30 = sld [smem:[%s6376_s0 + %s5592_s7]]  }
  0x23   :  { %6394 = sst [smem:[#allocation23_spill]] %s5720_s4 }
  0x24   :  { %s5740_s4 = sld [smem:[%s6376_s0 + %s5591_s28]]   ;;  %s5595_s28 = smov 29  }
  0x25   :  { %6396 = sst [smem:[#allocation25_spill]] %s5735_s20 }
  0x26   :  { %s5755_s20 = sld [smem:[%s6376_s0 + %s5594_s22]]  }
  0x27   :  { %6395 = sst [smem:[#allocation24_spill]] %s5730_s12 }
  0x28   :  { %s5750_s12 = sld [smem:[%s6376_s0 + %s5593_s15]]  }
  0x2a   :  { %6397 = sst [smem:[#allocation26_spill]] %s5740_s4 }
  0x2b   :  { %s5760_s4 = sld [smem:[%s6376_s0 + %s5595_s28]]  }
  0x2c   :  { %65 = vsyncpa [#allocation3], 0 }
  0x2d   :  { %66 = vsyncpa [#allocation6], 0 }
  0x2e   :  { %67 = vsyncpa [#allocation9], 0 }
  0x2f   :  { %68 = vsyncpa [#allocation4], 0  ;;  %s5596_s7 = smov [#allocation5]   ;;  %s5597_s11 = smov [#allocation2]  }
  0x30   :  { %s123_s10 = sshll.u32 %s5596_s7, 4  ;;  %s91_s15 = sshll.u32 %s5597_s11, 4  ;;  %s124_s10 = int_to_ptr.vmem [resolvable:$true] %s123_s10  ;;  %s92_s15 = int_to_ptr.vmem [resolvable:$true] %s91_s15 }
  0x31   :  { %s5467_s16 = scalar_lea.vmem %s124_s10, 16  ;;  %s5471_s18 = scalar_lea.vmem %s124_s10, 32 }
  0x32   :  { %p5468_p0 = scmp.ne.s32.totalorder %s124_s10, %s5467_s16  ;;  %p5472_p1 = scmp.lt.s32.totalorder %s124_s10, %s124_s10 }
  0x33   :  { %p5473_p2 = scmp.lt.s32.totalorder %s5471_s18, %s5467_s16 }
  0x35   :  { %p5474_p3 = por %p5473_p2, %p5472_p1 }
  0x37   :  { %p5475_p4 = pnand %p5474_p3, %p5468_p0 }
  0x39   :  { %5478 = shalt.err (!%p5475_p4)
}
  0x3a   :  { %126 = dma.hbm_to_vmem [thread:$0]  %s5715_s27, 16, %s124_s10, [#allocation6]  }
  0x3b   :  { %s5487_s0 = scalar_lea.vmem %s92_s15, 16  ;;  %s5491_s22 = scalar_lea.vmem %s92_s15, 32 }
  0x3c   :  { %p5488_p5 = scmp.ne.s32.totalorder %s92_s15, %s5487_s0  ;;  %p5492_p6 = scmp.lt.s32.totalorder %s92_s15, %s92_s15 }
  0x3d   :  { %p5493_p7 = scmp.lt.s32.totalorder %s5491_s22, %s5487_s0 }
  0x3f   :  { %p5494_p8 = por %p5493_p7, %p5492_p6 }
  0x41   :  { %p5495_p9 = pnand %p5494_p8, %p5488_p5 }
  0x43   :  { %5498 = shalt.err (!%p5495_p9)
}
  0x44   :  { %94 = dma.hbm_to_vmem [thread:$0]  %s5655_s8, 16, %s92_s15, [#allocation3]  }
  0x45   :  { %s5598_s23 = smov [#allocation7]   ;;  %s5599_s28 = smov [#allocation8]  }
  0x46   :  { %s135_s26 = sshll.u32 %s5598_s23, 4  ;;  %s153_s1 = sshll.u32 %s5599_s28, 4  ;;  %s136_s26 = int_to_ptr.vmem [resolvable:$true] %s135_s26  ;;  %s154_s1 = int_to_ptr.vmem [resolvable:$true] %s153_s1 }
  0x47   :  { %s5507_s2 = scalar_lea.vmem %s136_s26, 16  ;;  %s5511_s7 = scalar_lea.vmem %s136_s26, 32 }
  0x48   :  { %p5508_p10 = scmp.ne.s32.totalorder %s136_s26, %s5507_s2  ;;  %p5512_p11 = scmp.lt.s32.totalorder %s136_s26, %s136_s26 }
  0x49   :  { %p5513_p12 = scmp.lt.s32.totalorder %s5511_s7, %s5507_s2 }
  0x4b   :  { %p5514_p13 = por %p5513_p12, %p5512_p11 }
  0x4d   :  { %p5515_p0 = pnand %p5514_p13, %p5508_p10 }
  0x4f   :  { %5518 = shalt.err (!%p5515_p0)
}
  0x50   :  { %138 = dma.hbm_to_vmem [thread:$0]  %s5725_s17, 16, %s136_s26, [#allocation6]  }
  0x51   :  { %s5527_s27 = scalar_lea.vmem %s154_s1, 16  ;;  %s5531_s10 = scalar_lea.vmem %s154_s1, 32 }
  0x52   :  { %p5528_p1 = scmp.ne.s32.totalorder %s154_s1, %s5527_s27  ;;  %p5532_p2 = scmp.lt.s32.totalorder %s154_s1, %s154_s1 }
  0x53   :  { %p5533_p3 = scmp.lt.s32.totalorder %s5531_s10, %s5527_s27 }
  0x55   :  { %p5534_p4 = por %p5533_p3, %p5532_p2 }
  0x57   :  { %p5535_p5 = pnand %p5534_p4, %p5528_p1 }
  0x59   :  { %5538 = shalt.err (!%p5535_p5)
}
  0x5a   :  { %156 = dma.hbm_to_vmem [thread:$0]  %s5750_s12, 16, %s154_s1, [#allocation9]  }
  0x5b   :  { %5559 = dma.done.wait [#allocation3], 16  }
  0x5c   :  { %5560 = vsyncadd [#allocation3], 4294967280 }
  0x5d   :  { %5561 = dma.done.wait [#allocation6], 32  }
  0x5e   :  { %5562 = vsyncadd [#allocation6], 4294967264 }
  0x5f   :  { %5563 = dma.done.wait [#allocation9], 16  }
  0x60   :  { %5564 = vsyncadd [#allocation9], 4294967280  ;;  %v5600_v0 = vmov 0   ;;  %v169_v1 = vld [vmem:[%s5620_s9] sm:$0xff]  ;;  %v200_v3 = vld [vmem:[%s5635_s21 + $0x78] sm:$0xff]  ;;  %v171_v25 = vlaneseq  ;;  %v5601_v28 = vmov 1.0  }
  0x61   :  { %5367 = vset.pattern.permute.xlu0 %v5600_v0  ;;  %5368 = vset.pattern.permute.xlu1 %v5600_v0  ;;  %v201_v2 = vld [vmem:[%s5625_s13] sm:$0xff]  ;;  %v199_v4 = vld [vmem:[%s5635_s21 + $0x70] sm:$0xff]  ;;  %v170_v5 = vld [vmem:[%s5620_s9 + $0x8] sm:$0xff]  ;;  %vm326_vm10 = vcmask 261120   ;;  %vm5603_vm11 = vmmov 0   ;;  %s5604_s9 = smov 96  }
  0x62   :  { %174 = vperm.xlu0 %5367, %v169_v1   ;;  %vm206_vm0 = vcmp.eq.s32.totalorder %v201_v2, 1  ;;  %4946 = vmatprep.subr.mxu0 %v200_v3  ;;  %vm203_vm1 = vcmp.eq.s32.totalorder %v201_v2, 0  ;;  %v198_v7 = vld [vmem:[%s5635_s21 + $0x68] sm:$0xff]  ;;  %v197_v8 = vld [vmem:[%s5635_s21 + $0x60] sm:$0xff]  ;;  %v196_v10 = vld [vmem:[%s5635_s21 + $0x58] sm:$0xff]  ;;  %v5787_v26 = vand.u32 127, %v171_v25 }
  0x63   :  { %v210_v6 = vsel %vm206_vm0, 1, %v5600_v0  ;;  %4947 = vmatpush3.msra.mxu0 %v200_v3  ;;  %v230_v9 = vsel %vm203_vm1, 1, %v5600_v0  ;;  %v202_v11 = vld [vmem:[%s5625_s13 + $0x8] sm:$0xff]  ;;  %v195_v12 = vld [vmem:[%s5635_s21 + $0x50] sm:$0xff]  ;;  %v193_v16 = vld [vmem:[%s5635_s21 + $0x40] sm:$0xff]  ;;  %s6398_s13 = sld [smem:[#allocation16_spill]] }
  0x64   :  { %213 = vperm.xlu1 %5368, %v210_v6   ;;  %4948 = vmatprep.subr.mxu0 %v199_v4  ;;  %vm207_vm2 = vcmp.eq.s32.totalorder %v202_v11, 1  ;;  %vm204_vm3 = vcmp.eq.s32.totalorder %v202_v11, 0  ;;  %v194_v14 = vld [vmem:[%s5635_s21 + $0x48] sm:$0xff]  ;;  %v192_v17 = vld [vmem:[%s5635_s21 + $0x38] sm:$0xff]  ;;  %v191_v18 = vld [vmem:[%s5635_s21 + $0x30] sm:$0xff]  ;;  %vm377_vm12 = vcmp.lt.s32.totalorder %v5787_v26, 8 }
  0x65   :  { %4949 = vmatpush3.msra.mxu0 %v199_v4  ;;  %v211_v13 = vsel %vm207_vm2, 1, %v5600_v0  ;;  %v231_v15 = vsel %vm204_vm3, 1, %v5600_v0  ;;  %v190_v19 = vld [vmem:[%s5635_s21 + $0x28] sm:$0xff]  ;;  %v189_v20 = vld [vmem:[%s5635_s21 + $0x20] sm:$0xff]  ;;  %v188_v21 = vld [vmem:[%s5635_s21 + $0x18] sm:$0xff]  ;;  %vm381_vm13 = vcmp.ge.s32.totalorder %v5787_v26, 8 }
  0x66   :  { %177 = vperm.xlu0 %5367, %v170_v5   ;;  %4950 = vmatprep.subr.mxu0 %v198_v7  ;;  %v187_v22 = vld [vmem:[%s5635_s21 + $0x10] sm:$0xff]  ;;  %v186_v23 = vld [vmem:[%s5635_s21 + $0x8] sm:$0xff]  ;;  %v185_v24 = vld [vmem:[%s5635_s21] sm:$0xff]  ;;  %vm382_vm14 = vcmp.lt.s32.totalorder %v5787_v26, 16  ;;  %vm662_vm2 = vcmask 64512   ;;  %vm386_vm3 = vcmp.ge.s32.totalorder %v5787_v26, 16 }
  0x67   :  { %4951 = vmatpush3.msra.mxu0 %v198_v7  ;;  %v4627_v33 = vld [vmem:[%s5645_s29 + $0x1] ss:$0 sm:$0xff]  ;;  %v4628_v34 = vld [vmem:[%s5645_s29 + $0x2] ss:$0 sm:$0xff]  ;;  %v4629_v38 = vld [vmem:[%s5645_s29] ss:$0 sm:$0xff] }
  0x68   :  { %4952 = vmatprep.subr.mxu0 %v197_v8  ;;  %216 = vperm.xlu1 %5368, %v211_v13   ;;  %v321_v41 = vld [vmem:[%s5640_s25] sm:$0xff]  ;;  %v399_v60 = vld [vmem:[%s5660_s14 + $0x18] sm:$0xff]  ;;  %v398_v61 = vld [vmem:[%s5660_s14 + $0x10] sm:$0xff]  ;;  %s6399_s17 = sld [smem:[#allocation18_spill]] }
  0x69   :  { %4953 = vmatpush3.msra.mxu0 %v197_v8  ;;  %v397_v62 = vld [vmem:[%s5660_s14 + $0x8] sm:$0xff]  ;;  %v396_v63 = vld [vmem:[%s5660_s14] sm:$0xff]  ;;  %vm383_vm15 = vmand %vm381_vm13, %vm382_vm14  ;;  %s6400_s25 = sld [smem:[#allocation17_spill]]  ;;  %vm3984_vm13 = vcmask 130048  }
  0x6a   :  { %233 = vperm.xlu0 %5367, %v230_v9   ;;  %4954 = vmatprep.subr.mxu0 %v196_v10  ;;  %v4632_v7 = vld [vmem:[%s5650_s3] ss:$0 sm:$0xff]  ;;  %s6401_s29 = sld [smem:[#allocation19_spill]] }
  0x6b   :  { %4955 = vmatpush3.msra.mxu0 %v196_v10  ;;  %v4633_v9 = vld [vmem:[#allocation2] ss:$0 sm:$0xff]  ;;  %s6402_s3 = sld [smem:[#allocation20_spill]] }
  0x6c   :  { %4956 = vmatprep.subr.mxu0 %v195_v12  ;;  %236 = vperm.xlu1 %5368, %v231_v15   ;;  %s6403_s8 = sld [smem:[#allocation21_spill]] }
  0x6d   :  { %4957 = vmatpush3.msra.mxu0 %v195_v12  ;;  %s6408_s12 = sld [smem:[#allocation23_spill]] }
  0x6e   :  { %4958 = vmatprep.subr.mxu0 %v194_v14  ;;  %s6409_s11 = sld [smem:[#allocation26_spill]] }
  0x6f   :  { %4959 = vmatpush3.msra.mxu0 %v194_v14 }
  0x70   :  { %4960 = vmatprep.subr.mxu0 %v193_v16 }
  0x71   :  { %4961 = vmatpush3.msra.mxu0 %v193_v16  ;;  %v5602_v16 = vmov 0.0  }
  0x72   :  { %4962 = vmatprep.subr.mxu0 %v192_v17  ;;  %4997 = vmatprep.subr.mxu1 %v5602_v16 }
  0x73   :  { %4963 = vmatpush3.msra.mxu0 %v192_v17  ;;  %4999 = vmatprep.mubr.msk.f32.mxu1 %vm5603_vm11, %v5602_v16  ;;  %v4638_v17 = vld [vmem:[%s5665_s19] ss:$0 sm:$0xff] }
  0x74   :  { %4964 = vmatprep.subr.mxu0 %v191_v18 }
  0x75   :  { %4965 = vmatpush3.msra.mxu0 %v191_v18 }
  0x76   :  { %4966 = vmatprep.subr.mxu0 %v190_v19 }
  0x77   :  { %4967 = vmatpush3.msra.mxu0 %v190_v19 }
  0x78   :  { %4968 = vmatprep.subr.mxu0 %v189_v20 }
  0x79   :  { %4969 = vmatpush3.msra.mxu0 %v189_v20 }
  0x7a   :  { %4970 = vmatprep.subr.mxu0 %v188_v21 }
  0x7b   :  { %4971 = vmatpush3.msra.mxu0 %v188_v21 }
  0x7c   :  { %4972 = vmatprep.subr.mxu0 %v187_v22 }
  0x7d   :  { %4973 = vmatpush3.msra.mxu0 %v187_v22  ;;  %v5823_v22 = vsel %vm377_vm12, 1.0, %v5602_v16 }
  0x7e   :  { %4974 = vmatprep.subr.mxu0 %v186_v23 }
  0x7f   :  { %4975 = vmatpush3.msra.mxu0 %v186_v23 }
  0x80   :  { %4976 = vmatprep.subr.mxu0 %v185_v24 }
  0x81   :  { %4977 = vmatpush3.msra.mxu0 %v185_v24 }
  0x82   :  { %4981 = vmatprep.subr.mxu0 %v399_v60 }
  0xdd   :  { %v175_v27 = vpop.permute.xlu0 %174 }
  0xde   :  { %vm179_vm4 = vcmp.eq.s32.totalorder %v175_v27, %v5787_v26 }
  0xdf   :  { %4978 = vmatprep.mubr.msk.f32.mxu0 %vm179_vm4, %v5601_v28  ;;  %v214_v30 = vpop.permute.xlu1 %213  ;;  %vm387_vm4 = vcmp.lt.s32.totalorder %v5787_v26, 24 }
  0xe0   :  { %vm218_vm7 = vcmp.eq.s32.totalorder %v214_v30, 1 }
  0xe1   :  { %v178_v29 = vpop.permute.xlu0 %177  ;;  %v228_v37 = vsel %vm218_vm7, %v4627_v33, %v4628_v34  ;;  %vm392_vm7 = vcmp.lt.s32.totalorder %v5787_v26, 32 }
  0xe2   :  { %vm180_vm5 = vcmp.eq.s32.totalorder %v178_v29, %v5787_v26  ;;  %v5847_v29 = vsel %vm383_vm15, 1.0, %v5602_v16 }
  0xe3   :  { %4979 = vmatmul.mubr.msk.f32.vlgmr.msra.gmra.mxu0 %vm180_vm5, %v5601_v28  ;;  %v217_v31 = vpop.permute.xlu1 %216  ;;  %vm388_vm5 = vmand %vm386_vm3, %vm387_vm4 }
  0xe4   :  { %vm219_vm6 = vcmp.eq.s32.totalorder %v217_v31, 1  ;;  %4982 = vmatpush3.msra.mxu0 %v399_v60 }
  0xe5   :  { %v234_v35 = vpop.permute.xlu0 %233  ;;  %v229_v36 = vsel %vm219_vm6, %v4627_v33, %v4628_v34  ;;  %4983 = vmatprep.subr.mxu0 %v398_v61  ;;  %v5868_v33 = vshrl.u32 %v171_v25, 7  ;;  %v371_v34 = vld [vmem:[%s5615_s5 + $0x1] sm:$0x1]  ;;  %vm391_vm6 = vcmp.ge.s32.totalorder %v5787_v26, 24 }
  0xe6   :  { %vm238_vm9 = vcmp.eq.s32.totalorder %v234_v35, 1  ;;  %4984 = vmatpush3.msra.mxu0 %v398_v61  ;;  %vm373_vm1 = vcmp.eq.s32.totalorder %v371_v34, 0 }
  0xe7   :  { %v237_v32 = vpop.permute.xlu1 %236  ;;  %v244_v43 = vsel %vm238_vm9, %v4629_v38, %v228_v37  ;;  %4985 = vmatprep.subr.mxu0 %v397_v62  ;;  %vm2068_vm9 = vcmask 523264   ;;  %vm3980_vm14 = vcmp.lt.s32.totalorder %v5868_v33, 2 }
  0xe8   :  { %vm239_vm8 = vcmp.eq.s32.totalorder %v237_v32, 1  ;;  %4986 = vmatpush3.msra.mxu0 %v397_v62  ;;  %v370_v32 = vld [vmem:[%s5615_s5] sm:$0x1]  ;;  %s5605_s5 = smov 64  }
  0xe9   :  { %v245_v39 = vsel %vm239_vm8, %v4629_v38, %v229_v36  ;;  %4987 = vmatprep.subr.mxu0 %v396_v63  ;;  %vm372_vm0 = vcmp.eq.s32.totalorder %v370_v32, 0  ;;  %vm393_vm8 = vmand %vm391_vm6, %vm392_vm7 }
  0xea   :  { %4988 = vmatpush3.msra.mxu0 %v396_v63  ;;  %v374_v38 = vsel %vm372_vm0, -1e+09, %v5602_v16 }
  0xeb   :  { %4992 = vmatprep.subr.mxu0 %v5602_v16 }
 0x1a3   :  { %v4980_v40 = vpop.f32.mrf.mxu0 }
 0x1a4   :  { %v318_v42 = vadd.f32 %v4980_v40, %v245_v39  ;;  %v652_v39 = vsub.s32 0, %v5868_v33 }
 0x1a5   :  { %v312_v44 = vpop.f32.mrf.mxu0 }
 0x1a6   :  { %v313_v45 = vadd.f32 %v312_v44, %v244_v43  ;;  %v323_v46 = vadd.f32 %v321_v41, %v318_v42  ;;  %v5873_v44 = vrot.slane %v374_v38, %v652_v39 }
 0x1a8   :  { %v330_v47 = vsel %vm326_vm10, %v323_v46, 0.0  ;;  %v322_v48 = vadd.f32 %v321_v41, %v313_v45  ;;  %v375_v45 = vsel %vm373_vm1, -1e+09, %v5602_v16 }
 0x1a9   :  { %331 = vadd.xlane.f32.xlu1 %v330_v47 }
 0x1aa   :  { %v327_v49 = vsel %vm326_vm10, %v322_v48, 0.0 }
 0x1ab   :  { %328 = vadd.xlane.f32.xlu0 %v327_v49 }
 0x232   :  { %v332_v50 = vpop.xlane.xlu1 %331 }
 0x233   :  { %v335_v51 = vmul.f32 0.03125, %v332_v50 }
 0x234   :  { %v329_v52 = vpop.xlane.xlu0 %328 }
 0x235   :  { %v334_v53 = vmul.f32 0.03125, %v329_v52  ;;  %v337_v54 = vsub.f32 %v323_v46, %v335_v51 }
 0x237   :  { %v336_v55 = vsub.f32 %v322_v48, %v334_v53  ;;  %v339_v58 = vmul.f32 %v337_v54, %v337_v54  ;;  %v5877_v48 = vrot.slane %v375_v45, %v652_v39 }
 0x239   :  { %v338_v56 = vmul.f32 %v336_v55, %v336_v55  ;;  %v343_v59 = vsel %vm326_vm10, %v339_v58, 0.0 }
 0x23b   :  { %v340_v57 = vsel %vm326_vm10, %v338_v56, 0.0 }
 0x23c   :  { %341 = vadd.xlane.f32.xlu0 %v340_v57 }
 0x240   :  { %344 = vadd.xlane.f32.xlu0 %v343_v59 }
 0x2c5   :  { %v342_v0 = vpop.xlane.xlu0 %341 }
 0x2c6   :  { %v346_v1 = vmul.f32 0.03125, %v342_v0 }
 0x2c8   :  { %v348_v2 = vadd.f32 1e-05, %v346_v1 }
 0x2c9   :  { %v345_v3 = vpop.xlane.xlu0 %344 }
 0x2ca   :  { %5369 = vrsqrt.f32 %v348_v2  ;;  %v347_v4 = vmul.f32 0.03125, %v345_v3 }
 0x2cc   :  { %v349_v5 = vadd.f32 1e-05, %v347_v4 }
 0x2ce   :  { %5371 = vrsqrt.f32 %v349_v5 }
 0x2d7   :  { %v5370_v6 = vpop.eup %5369 }
 0x2d8   :  { %v352_v8 = vmul.f32 %v5370_v6, %v336_v55 }
 0x2da   :  { %v360_v10 = vmul.f32 %v4632_v7, %v352_v8 }
 0x2db   :  { %v5372_v11 = vpop.eup %5371 }
 0x2dc   :  { %v353_v12 = vmul.f32 %v5372_v11, %v337_v54  ;;  %v368_v13 = vadd.f32 %v4633_v9, %v360_v10 }
 0x2de   :  { %v361_v14 = vmul.f32 %v4632_v7, %v353_v12  ;;  %4989 = vmatprep.mubr.msk.f32.mxu0 %vm326_vm10, %v368_v13 }
 0x2e0   :  { %v369_v15 = vadd.f32 %v4633_v9, %v361_v14 }
 0x2e2   :  { %4990 = vmatmul.mubr.msk.f32.vlgmr.msra.gmra.mxu0 %vm326_vm10, %v369_v15 }
 0x2e3   :  { %4994 = vmatprep.mubr.msk.f32.mxu0 %vm5603_vm11, %v5602_v16 }
 0x3a2   :  { %v4991_v18 = vpop.f32.mrf.mxu0 }
 0x3a3   :  { %v5813_v19 = vadd.f32 %v4991_v18, %v4638_v17 }
 0x3a4   :  { %v479_v20 = vpop.f32.mrf.mxu0 }
 0x3a5   :  { %v5815_v21 = vadd.f32 %v4638_v17, %v479_v20  ;;  %569 = vrot.lane.b32.xlu1 %v5813_v19, %s5604_s9  ;;  %v489_v27 = vmul.f32 %v5823_v22, %v5813_v19  ;;  %v692_v31 = vmul.f32 %v5847_v29, %v5813_v19 }
 0x3a7   :  { %491 = vrot.lane.b32.xlu0 %v5815_v21, %s5604_s9  ;;  %v488_v28 = vmul.f32 %v5823_v22, %v5815_v21  ;;  %v691_v30 = vmul.f32 %v5847_v29, %v5815_v21 }
 0x417   :  { %v5827_v23 = vpop.permute.xlu1 %569 }
 0x418   :  { %4998 = vmatpush3.xpose.msk.msra.mxu1 %vm326_vm10, %v5827_v23 }
 0x419   :  { %v5831_v24 = vpop.permute.xlu0 %491  ;;  %5002 = vmatprep.subr.mxu1 %v5602_v16 }
 0x41a   :  { %4993 = vmatpush3.xpose.msk.msra.mxu0 %vm326_vm10, %v5831_v24 }
 0x41b   :  { %5000 = vmatmul.mubr.msk.f32.vlgmr.msra.gmra.mxu1 %vm326_vm10, %v489_v27  ;;  %5022 = vmatprep.subr.mxu0 %v5602_v16 }
 0x41c   :  { %5003 = vmatpush3.xpose.msk.msra.mxu1 %vm326_vm10, %v5831_v24  ;;  %5004 = vmatprep.mubr.msk.f32.mxu1 %vm5603_vm11, %v5602_v16 }
 0x41d   :  { %4995 = vmatmul.mubr.msk.f32.vlgmr.msra.gmra.mxu0 %vm326_vm10, %v488_v28  ;;  %5007 = vmatprep.subr.mxu1 %v5602_v16 }
 0x41e   :  { %5024 = vmatprep.mubr.msk.f32.mxu0 %vm5603_vm11, %v5602_v16 }
 0x41f   :  { %5005 = vmatmul.mubr.msk.f32.vlgmr.msra.gmra.mxu1 %vm326_vm10, %v691_v30 }
 0x420   :  { %5008 = vmatpush3.xpose.msk.msra.mxu1 %vm326_vm10, %v5827_v23  ;;  %5009 = vmatprep.mubr.msk.f32.mxu1 %vm5603_vm11, %v5602_v16 }
 0x421   :  { %5012 = vmatprep.subr.mxu1 %v5602_v16 }
 0x423   :  { %5010 = vmatmul.mubr.msk.f32.vlgmr.msra.gmra.mxu1 %vm326_vm10, %v692_v31 }
 0x424   :  { %5014 = vmatprep.mubr.msk.f32.mxu1 %vm5603_vm11, %v5602_v16 }
 0x4db   :  { %v642_v35 = vpop.f32.mrf.mxu1 }
 0x4dc   :  { %v647_v49 = vmul.f32 0.35355338, %v642_v35 }
 0x4dd   :  { %v564_v36 = vpop.f32.mrf.mxu0  ;;  %v5001_v37 = vpop.f32.mrf.mxu1 }
 0x4de   :  { %v646_v42 = vmul.f32 0.35355338, %v564_v36  ;;  %v661_v57 = vadd.f32 %v5877_v48, %v647_v49 }
 0x4df   :  { %v4996_v40 = vpop.f32.mrf.mxu0  ;;  %v762_v41 = vpop.f32.mrf.mxu1 }
 0x4e0   :  { %v839_v43 = vmul.f32 0.35355338, %v762_v41  ;;  %v660_v52 = vadd.f32 %v5873_v44, %v646_v42  ;;  %v666_v58 = vsel %vm662_vm2, %v661_v57, -inf  ;;  %v5923_v40 = vsel %vm388_vm5, 1.0, %v5602_v16 }
 0x4e1   :  { %v5006_v46 = vpop.f32.mrf.mxu1  ;;  %v1179_v42 = vmul.f32 %v5923_v40, %v5815_v21 }
 0x4e2   :  { %v841_v25 = vadd.f32 %v839_v43, %v5873_v44  ;;  %v663_v56 = vsel %vm662_vm2, %v660_v52, -inf }
 0x4e3   :  { %v835_v47 = vpop.f32.mrf.mxu1 }
 0x4e4   :  { %v840_v50 = vmul.f32 0.35355338, %v835_v47  ;;  %v843_v51 = vsel %vm662_vm2, %v841_v25, -inf }
 0x4e5   :  { %844 = vmax.xlane.f32.xlu1 %v843_v51  ;;  %v5011_v53 = vpop.f32.mrf.mxu1 }
 0x4e6   :  { %v842_v54 = vadd.f32 %v840_v50, %v5877_v48  ;;  %v1180_v50 = vmul.f32 %v5923_v40, %v5813_v19 }
 0x4e8   :  { %v846_v55 = vsel %vm662_vm2, %v842_v54, -inf }
 0x4e9   :  { %847 = vmax.xlane.f32.xlu0 %v846_v55  ;;  %664 = vmax.xlane.f32.xlu1 %v663_v56 }
 0x4ed   :  { %667 = vmax.xlane.f32.xlu0 %v666_v58 }
 0x4fa   :  { %866 = vrot.lane.b32.xlu1 %v5847_v29, %s5605_s5 }
 0x503   :  { %686 = vrot.lane.b32.xlu0 %v5823_v22, %s5605_s5 }
 0x56e   :  { %v845_v59 = vpop.xlane.xlu1 %844 }
 0x56f   :  { %v849_v7 = vsub.f32 %v841_v25, %v845_v59 }
 0x571   :  { %v851_v11 = vmul.f32 1.442695, %v849_v7 }
 0x572   :  { %v848_v60 = vpop.xlane.xlu0 %847  ;;  %v665_v61 = vpop.xlane.xlu1 %664 }
 0x573   :  { %v850_v62 = vsub.f32 %v842_v54, %v848_v60  ;;  %v669_v5 = vsub.f32 %v660_v52, %v665_v61 }
 0x575   :  { %v853_v3 = vmul.f32 1.442695, %v850_v62  ;;  %v671_v8 = vmul.f32 1.442695, %v669_v5 }
 0x576   :  { %v668_v63 = vpop.xlane.xlu0 %667  ;;  %v5890_v0 = vpop.permute.xlu1 %866 }
 0x577   :  { %v670_v1 = vsub.f32 %v661_v57, %v668_v63  ;;  %v869_v2 = vmul.f32 %v5890_v0, %v5815_v21  ;;  %v870_v18 = vmul.f32 %v5890_v0, %v5813_v19 }
 0x579   :  { %v673_v4 = vmul.f32 1.442695, %v670_v1  ;;  %872 = vrot.lane.b32.xlu1 %v869_v2, %s5605_s5 }
 0x57a   :  { %v5905_v20 = vpop.permute.xlu0 %686 }
 0x57b   :  { %5373 = vpow2.f32 %v673_v4  ;;  %v689_v27 = vmul.f32 %v5905_v20, %v5815_v21  ;;  %v690_v28 = vmul.f32 %v5905_v20, %v5813_v19 }
 0x57c   :  { %5375 = vpow2.f32 %v853_v3 }
 0x57d   :  { %5377 = vpow2.f32 %v671_v8 }
 0x57e   :  { %5379 = vpow2.f32 %v851_v11 }
 0x588   :  { %v5895_v6 = vpop.eup %5373 }
 0x589   :  { %v678_v9 = vsel %vm662_vm2, %v5895_v6, 0.0  ;;  %v5376_v10 = vpop.eup %5375 }
 0x58a   :  { %679 = vadd.xlane.f32.xlu0 %v678_v9  ;;  %v858_v12 = vsel %vm662_vm2, %v5376_v10, 0.0  ;;  %v5378_v13 = vpop.eup %5377 }
 0x58b   :  { %v675_v14 = vsel %vm662_vm2, %v5378_v13, 0.0  ;;  %v5380_v15 = vpop.eup %5379 }
 0x58c   :  { %v855_v17 = vsel %vm662_vm2, %v5380_v15, 0.0 }
 0x58e   :  { %859 = vadd.xlane.f32.xlu0 %v858_v12 }
 0x59d   :  { %676 = vadd.xlane.f32.xlu1 %v675_v14 }
 0x5a1   :  { %856 = vadd.xlane.f32.xlu1 %v855_v17 }
 0x5a4   :  { %949 = vrot.lane.b32.xlu0 %v870_v18, %s5605_s5 }
 0x5b2   :  { %1026 = vrot.lane.b32.xlu1 %v689_v27, %s5605_s5 }
 0x5b6   :  { %1103 = vrot.lane.b32.xlu1 %v690_v28, %s5605_s5 }
 0x5eb   :  { %v873_v30 = vpop.permute.xlu1 %872 }
 0x5ec   :  { %5013 = vmatpush3.msra.mxu1 %v873_v30 }
 0x5ed   :  { %5017 = vmatprep.subr.mxu1 %v5602_v16 }
 0x613   :  { %v680_v31 = vpop.xlane.xlu0 %679 }
 0x617   :  { %v860_v34 = vpop.xlane.xlu0 %859 }
 0x61b   :  { %v950_v45 = vpop.permute.xlu0 %949 }
 0x626   :  { %v677_v32 = vpop.xlane.xlu1 %676 }
 0x627   :  { %5381 = vrcp.f32 %v677_v32 }
 0x62a   :  { %v857_v35 = vpop.xlane.xlu1 %856 }
 0x62b   :  { %5383 = vrcp.f32 %v857_v35 }
 0x62c   :  { %5385 = vrcp.f32 %v860_v34 }
 0x62d   :  { %5387 = vrcp.f32 %v680_v31 }
 0x62e   :  { %v1027_v36 = vpop.permute.xlu1 %1026 }
 0x62f   :  { %5023 = vmatpush3.msra.mxu0 %v1027_v36 }
 0x630   :  { %5032 = vmatprep.subr.mxu0 %v5602_v16 }
 0x632   :  { %v1104_v47 = vpop.permute.xlu1 %1103 }
 0x634   :  { %v5382_v37 = vpop.eup %5381 }
 0x635   :  { %v683_v38 = vmul.f32 %v5382_v37, %v5378_v13 }
 0x637   :  { %5025 = vmatmul.mubr.msk.f32.vlgmr.msra.gmra.mxu0 %vm662_vm2, %v683_v38  ;;  %v5981_v38 = vsel %vm393_vm8, 1.0, %v5602_v16 }
 0x638   :  { %v5384_v39 = vpop.eup %5383  ;;  %5033 = vmatpush3.xpose.msk.msra.mxu0 %vm326_vm10, %v5831_v24  ;;  %5034 = vmatprep.mubr.msk.f32.mxu0 %vm5603_vm11, %v5602_v16 }
 0x639   :  { %v863_v41 = vmul.f32 %v5384_v39, %v5380_v15  ;;  %5042 = vmatprep.subr.mxu0 %v5602_v16  ;;  %v5386_v43 = vpop.eup %5385  ;;  %v1515_v39 = vmul.f32 %v5981_v38, %v5815_v21 }
 0x63a   :  { %v864_v46 = vmul.f32 %v5386_v43, %v5376_v10  ;;  %v5388_v25 = vpop.eup %5387 }
 0x63b   :  { %5015 = vmatmul.mubr.msk.f32.vlgmr.msra.gmra.mxu1 %vm662_vm2, %v863_v41  ;;  %5035 = vmatmul.mubr.msk.f32.vlgmr.msra.gmra.mxu0 %vm326_vm10, %v1179_v42  ;;  %v684_v49 = vmul.f32 %v5388_v25, %v5895_v6 }
 0x63c   :  { %5018 = vmatpush3.msra.mxu1 %v950_v45  ;;  %5019 = vmatprep.mubr.msk.f32.mxu1 %vm5603_vm11, %v5602_v16 }
 0x63d   :  { %5027 = vmatprep.subr.mxu1 %v5602_v16  ;;  %5044 = vmatprep.mubr.msk.f32.mxu0 %vm5603_vm11, %v5602_v16 }
 0x63f   :  { %5020 = vmatmul.mubr.msk.f32.vlgmr.msra.gmra.mxu1 %vm662_vm2, %v864_v46 }
 0x640   :  { %5028 = vmatpush3.msra.mxu1 %v1104_v47  ;;  %5029 = vmatprep.mubr.msk.f32.mxu1 %vm5603_vm11, %v5602_v16 }
 0x641   :  { %5037 = vmatprep.subr.mxu1 %v5602_v16 }
 0x643   :  { %5030 = vmatmul.mubr.msk.f32.vlgmr.msra.gmra.mxu1 %vm662_vm2, %v684_v49 }
 0x644   :  { %5038 = vmatpush3.xpose.msk.msra.mxu1 %vm326_vm10, %v5827_v23  ;;  %5039 = vmatprep.mubr.msk.f32.mxu1 %vm5603_vm11, %v5602_v16 }
 0x645   :  { %5047 = vmatprep.subr.mxu1 %v5602_v16 }
 0x647   :  { %5040 = vmatmul.mubr.msk.f32.vlgmr.msra.gmra.mxu1 %vm326_vm10, %v1180_v50 }
 0x648   :  { %5049 = vmatprep.mubr.msk.f32.mxu1 %vm5603_vm11, %v5602_v16 }
 0x6f7   :  { %v1098_v51 = vpop.f32.mrf.mxu0 }
 0x6f9   :  { %v5026_v52 = vpop.f32.mrf.mxu0 }
 0x6fb   :  { %v944_v53 = vpop.f32.mrf.mxu1  ;;  %v1250_v54 = vpop.f32.mrf.mxu0 }
 0x6fc   :  { %v5951_v55 = vadd.f32 %v1098_v51, %v944_v53  ;;  %v1327_v56 = vmul.f32 0.35355338, %v1250_v54 }
 0x6fd   :  { %v5016_v57 = vpop.f32.mrf.mxu1  ;;  %v5036_v58 = vpop.f32.mrf.mxu0 }
 0x6fe   :  { %v1329_v59 = vadd.f32 %v1327_v56, %v5873_v44 }
 0x6ff   :  { %v1021_v60 = vpop.f32.mrf.mxu1 }
 0x700   :  { %v1331_v61 = vsel %vm662_vm2, %v1329_v59, -inf }
 0x701   :  { %v5021_v62 = vpop.f32.mrf.mxu1  ;;  %1332 = vmax.xlane.f32.xlu0 %v1331_v61 }
 0x703   :  { %v1175_v63 = vpop.f32.mrf.mxu1 }
 0x704   :  { %v5955_v1 = vadd.f32 %v1175_v63, %v1021_v60 }
 0x705   :  { %v5031_v2 = vpop.f32.mrf.mxu1 }
 0x707   :  { %v1323_v3 = vpop.f32.mrf.mxu1 }
 0x708   :  { %v1328_v4 = vmul.f32 0.35355338, %v1323_v3 }
 0x709   :  { %v5041_v5 = vpop.f32.mrf.mxu1 }
 0x70a   :  { %v1330_v6 = vadd.f32 %v1328_v4, %v5877_v48 }
 0x70c   :  { %v1334_v7 = vsel %vm662_vm2, %v1330_v6, -inf }
 0x70d   :  { %1335 = vmax.xlane.f32.xlu1 %v1334_v7 }
 0x717   :  { %1354 = vrot.lane.b32.xlu0 %v5923_v40, %s5605_s5 }
 0x78a   :  { %v1333_v8 = vpop.xlane.xlu0 %1332 }
 0x78b   :  { %v1337_v9 = vsub.f32 %v1329_v59, %v1333_v8 }
 0x78d   :  { %v1339_v10 = vmul.f32 1.442695, %v1337_v9 }
 0x78e   :  { %v5961_v11 = vpop.permute.xlu0 %1354 }
 0x78f   :  { %5389 = vpow2.f32 %v1339_v10  ;;  %v1358_v12 = vmul.f32 %v5961_v11, %v5813_v19  ;;  %v1357_v30 = vmul.f32 %v5961_v11, %v5815_v21 }
 0x791   :  { %1437 = vrot.lane.b32.xlu0 %v1358_v12, %s5605_s5 }
 0x796   :  { %v1336_v13 = vpop.xlane.xlu1 %1335 }
 0x797   :  { %v1338_v14 = vsub.f32 %v1330_v6, %v1336_v13 }
 0x799   :  { %v1341_v15 = vmul.f32 1.442695, %v1338_v14 }
 0x79b   :  { %5391 = vpow2.f32 %v1341_v15 }
 0x79c   :  { %v5390_v17 = vpop.eup %5389 }
 0x79d   :  { %v1343_v18 = vsel %vm662_vm2, %v5390_v17, 0.0 }
 0x79e   :  { %1344 = vadd.xlane.f32.xlu1 %v1343_v18  ;;  %v1853_v18 = vld [vmem:[%s5670_s24 + $0x10] sm:$0xff] }
 0x7a8   :  { %v5392_v27 = vpop.eup %5391 }
 0x7a9   :  { %v1346_v28 = vsel %vm662_vm2, %v5392_v27, 0.0 }
 0x7aa   :  { %1347 = vadd.xlane.f32.xlu1 %v1346_v28  ;;  %v1851_v28 = vld [vmem:[%s5670_s24] sm:$0xff] }
 0x7bb   :  { %1360 = vrot.lane.b32.xlu1 %v1357_v30, %s5605_s5  ;;  %v1946_v30 = vld [vmem:[%s5680_s6 + $0x18] sm:$0xff] }
 0x803   :  { %v1438_v31 = vpop.permute.xlu0 %1437 }
 0x804   :  { %5048 = vmatpush3.msra.mxu1 %v1438_v31 }
 0x805   :  { %5057 = vmatprep.subr.mxu1 %v5602_v16 }
 0x827   :  { %v1345_v32 = vpop.xlane.xlu1 %1344 }
 0x828   :  { %5393 = vrcp.f32 %v1345_v32 }
 0x833   :  { %v1348_v34 = vpop.xlane.xlu1 %1347 }
 0x834   :  { %5395 = vrcp.f32 %v1348_v34 }
 0x835   :  { %v5394_v35 = vpop.eup %5393 }
 0x836   :  { %v1351_v36 = vmul.f32 %v5394_v35, %v5390_v17  ;;  %v1854_v17 = vld [vmem:[%s5670_s24 + $0x18] sm:$0xff] }
 0x837   :  { %v1361_v37 = vpop.permute.xlu1 %1360 }
 0x838   :  { %5043 = vmatpush3.msra.mxu0 %v1361_v37 }
 0x839   :  { %5045 = vmatmul.mubr.msk.f32.vlgmr.msra.gmra.mxu0 %vm662_vm2, %v1351_v36  ;;  %5052 = vmatprep.subr.mxu0 %v5602_v16 }
 0x83a   :  { %5053 = vmatpush3.xpose.msk.msra.mxu0 %vm326_vm10, %v5831_v24  ;;  %5054 = vmatprep.mubr.msk.f32.mxu0 %vm5603_vm11, %v5602_v16  ;;  %v1516_v24 = vmul.f32 %v5981_v38, %v5813_v19 }
 0x83b   :  { %5062 = vmatprep.subr.mxu0 %v5602_v16 }
 0x83d   :  { %5055 = vmatmul.mubr.msk.f32.vlgmr.msra.gmra.mxu0 %vm326_vm10, %v1515_v39  ;;  %v1945_v39 = vld [vmem:[%s5680_s6 + $0x10] sm:$0xff] }
 0x83e   :  { %5064 = vmatprep.mubr.msk.f32.mxu0 %vm5603_vm11, %v5602_v16 }
 0x841   :  { %v5396_v41 = vpop.eup %5395 }
 0x842   :  { %v1352_v42 = vmul.f32 %v5396_v41, %v5392_v27  ;;  %v1852_v27 = vld [vmem:[%s5670_s24 + $0x8] sm:$0xff] }
 0x843   :  { %v1944_v41 = vld [vmem:[%s5680_s6 + $0x8] sm:$0xff] }
 0x844   :  { %5050 = vmatmul.mubr.msk.f32.vlgmr.msra.gmra.mxu1 %vm662_vm2, %v1352_v42  ;;  %v1943_v42 = vld [vmem:[%s5680_s6] sm:$0xff] }
 0x845   :  { %5058 = vmatpush3.xpose.msk.msra.mxu1 %vm326_vm10, %v5827_v23  ;;  %5059 = vmatprep.mubr.msk.f32.mxu1 %vm5603_vm11, %v5602_v16 }
 0x846   :  { %5067 = vmatprep.subr.mxu1 %v5602_v16 }
 0x848   :  { %5060 = vmatmul.mubr.msk.f32.vlgmr.msra.gmra.mxu1 %vm326_vm10, %v1516_v24 }
 0x849   :  { %5069 = vmatprep.mubr.msk.f32.mxu1 %vm5603_vm11, %v5602_v16 }
 0x8f9   :  { %v1432_v43 = vpop.f32.mrf.mxu0 }
 0x8fa   :  { %v6001_v45 = vadd.f32 %v1432_v43, %v5951_v55  ;;  %v4665_v43 = vld [vmem:[%s6398_s13] ss:$0 sm:$0xff] }
 0x8fb   :  { %v5046_v46 = vpop.f32.mrf.mxu0 }
 0x8fd   :  { %v1586_v25 = vpop.f32.mrf.mxu0 }
 0x8fe   :  { %v1663_v23 = vmul.f32 0.35355338, %v1586_v25 }
 0x8ff   :  { %v5056_v47 = vpop.f32.mrf.mxu0 }
 0x900   :  { %v1665_v49 = vadd.f32 %v1663_v23, %v5873_v44  ;;  %v2060_v23 = vld [vmem:[%s6399_s17 + $0x38] sm:$0xff]  ;;  %v2059_v47 = vld [vmem:[%s6399_s17 + $0x30] sm:$0xff] }
 0x902   :  { %v1667_v50 = vsel %vm662_vm2, %v1665_v49, -inf }
 0x903   :  { %1668 = vmax.xlane.f32.xlu0 %v1667_v50  ;;  %v2057_v50 = vld [vmem:[%s6399_s17 + $0x20] sm:$0xff] }
 0x904   :  { %v1509_v51 = vpop.f32.mrf.mxu1 }
 0x905   :  { %v6006_v52 = vadd.f32 %v1509_v51, %v5955_v1  ;;  %v2056_v51 = vld [vmem:[%s6399_s17 + $0x18] sm:$0xff] }
 0x906   :  { %v5051_v53 = vpop.f32.mrf.mxu1 }
 0x907   :  { %v2054_v53 = vld [vmem:[%s6399_s17 + $0x8] sm:$0xff] }
 0x908   :  { %v1659_v54 = vpop.f32.mrf.mxu1 }
 0x909   :  { %v1664_v56 = vmul.f32 0.35355338, %v1659_v54  ;;  %v2053_v54 = vld [vmem:[%s6399_s17] sm:$0xff] }
 0x90a   :  { %v5061_v57 = vpop.f32.mrf.mxu1 }
 0x90b   :  { %v1666_v55 = vadd.f32 %v1664_v56, %v5877_v48  ;;  %v4668_v56 = vld [vmem:[%s6400_s25] ss:$0 sm:$0xff] }
 0x90d   :  { %v1670_v58 = vsel %vm662_vm2, %v1666_v55, -inf }
 0x90e   :  { %1671 = vmax.xlane.f32.xlu1 %v1670_v58 }
 0x919   :  { %1690 = vrot.lane.b32.xlu0 %v5981_v38, %s5605_s5 }
 0x98c   :  { %v1669_v59 = vpop.xlane.xlu0 %1668 }
 0x98d   :  { %v1673_v60 = vsub.f32 %v1665_v49, %v1669_v59  ;;  %v2058_v49 = vld [vmem:[%s6399_s17 + $0x28] sm:$0xff] }
 0x98f   :  { %v1675_v61 = vmul.f32 1.442695, %v1673_v60 }
 0x990   :  { %v6012_v62 = vpop.permute.xlu0 %1690 }
 0x991   :  { %5397 = vpow2.f32 %v1675_v61  ;;  %v1694_v63 = vmul.f32 %v6012_v62, %v5813_v19  ;;  %v1693_v8 = vmul.f32 %v6012_v62, %v5815_v21 }
 0x993   :  { %1773 = vrot.lane.b32.xlu0 %v1694_v63, %s5605_s5 }
 0x997   :  { %v1672_v1 = vpop.xlane.xlu1 %1671 }
 0x998   :  { %v1674_v2 = vsub.f32 %v1666_v55, %v1672_v1 }
 0x99a   :  { %v1677_v3 = vmul.f32 1.442695, %v1674_v2 }
 0x99c   :  { %5399 = vpow2.f32 %v1677_v3 }
 0x99e   :  { %v5398_v4 = vpop.eup %5397 }
 0x99f   :  { %v1679_v5 = vsel %vm662_vm2, %v5398_v4, 0.0 }
 0x9a0   :  { %1680 = vadd.xlane.f32.xlu1 %v1679_v5 }
 0x9a9   :  { %v5400_v6 = vpop.eup %5399 }
 0x9aa   :  { %v1682_v7 = vsel %vm662_vm2, %v5400_v6, 0.0 }
 0x9ab   :  { %1683 = vadd.xlane.f32.xlu1 %v1682_v7 }
 0x9bc   :  { %1696 = vrot.lane.b32.xlu1 %v1693_v8, %s5605_s5 }
 0xa05   :  { %v1774_v19 = vpop.permute.xlu0 %1773 }
 0xa06   :  { %5068 = vmatpush3.msra.mxu1 %v1774_v19 }
 0xa07   :  { %5124 = vmatprep.subr.mxu1 %v5602_v16 }
 0xa29   :  { %v1681_v9 = vpop.xlane.xlu1 %1680 }
 0xa2a   :  { %5401 = vrcp.f32 %v1681_v9 }
 0xa34   :  { %v1684_v10 = vpop.xlane.xlu1 %1683 }
 0xa35   :  { %5403 = vrcp.f32 %v1684_v10 }
 0xa37   :  { %v5402_v12 = vpop.eup %5401 }
 0xa38   :  { %v1697_v13 = vpop.permute.xlu1 %1696  ;;  %v1687_v14 = vmul.f32 %v5402_v12, %v5398_v4 }
 0xa39   :  { %5063 = vmatpush3.msra.mxu0 %v1697_v13 }
 0xa3a   :  { %5065 = vmatmul.mubr.msk.f32.vlgmr.msra.gmra.mxu0 %vm662_vm2, %v1687_v14  ;;  %5072 = vmatprep.subr.mxu0 %v1854_v17 }
 0xa3b   :  { %5073 = vmatpush3.msra.mxu0 %v1854_v17 }
 0xa3c   :  { %5074 = vmatprep.subr.mxu0 %v1853_v18 }
 0xa3d   :  { %5075 = vmatpush3.msra.mxu0 %v1853_v18 }
 0xa3e   :  { %5076 = vmatprep.subr.mxu0 %v1852_v27 }
 0xa3f   :  { %5077 = vmatpush3.msra.mxu0 %v1852_v27 }
 0xa40   :  { %5078 = vmatprep.subr.mxu0 %v1851_v28 }
 0xa41   :  { %5079 = vmatpush3.msra.mxu0 %v1851_v28 }
 0xa42   :  { %v5404_v21 = vpop.eup %5403  ;;  %5083 = vmatprep.subr.mxu0 %v1946_v30 }
 0xa43   :  { %v1688_v15 = vmul.f32 %v5404_v21, %v5400_v6 }
 0xa45   :  { %5070 = vmatmul.mubr.msk.f32.vlgmr.msra.gmra.mxu1 %vm662_vm2, %v1688_v15  ;;  %v4671_v15 = vld [vmem:[%s6401_s29] ss:$0 sm:$0xff] }
 0xa46   :  { %5126 = vmatprep.mubr.msk.f32.mxu1 %vm5603_vm11, %v5602_v16 }
 0xafa   :  { %v1768_v31 = vpop.f32.mrf.mxu0 }
 0xafb   :  { %v1849_v32 = vadd.f32 %v1768_v31, %v6001_v45 }
 0xafc   :  { %v5066_v34 = vpop.f32.mrf.mxu0 }
 0xafd   :  { %5080 = vmatprep.mubr.msk.f32.mxu0 %vm326_vm10, %v1849_v32 }
 0xb05   :  { %v1845_v35 = vpop.f32.mrf.mxu1 }
 0xb06   :  { %v1850_v36 = vadd.f32 %v1845_v35, %v6006_v52  ;;  %v2055_v52 = vld [vmem:[%s6399_s17 + $0x10] sm:$0xff] }
 0xb07   :  { %v5071_v37 = vpop.f32.mrf.mxu1 }
 0xb08   :  { %5081 = vmatmul.mubr.msk.f32.vlgmr.msra.gmra.mxu0 %vm326_vm10, %v1850_v36 }
 0xb09   :  { %5084 = vmatpush3.msra.mxu0 %v1946_v30 }
 0xb0a   :  { %5085 = vmatprep.subr.mxu0 %v1945_v39 }
 0xb0b   :  { %5086 = vmatpush3.msra.mxu0 %v1945_v39 }
 0xb0c   :  { %5087 = vmatprep.subr.mxu0 %v1944_v41 }
 0xb0d   :  { %5088 = vmatpush3.msra.mxu0 %v1944_v41 }
 0xb0e   :  { %5089 = vmatprep.subr.mxu0 %v1943_v42 }
 0xb0f   :  { %5090 = vmatpush3.msra.mxu0 %v1943_v42 }
 0xb10   :  { %5094 = vmatprep.subr.mxu0 %v2060_v23 }
 0xbc8   :  { %v5082_v24 = vpop.f32.mrf.mxu0 }
 0xbc9   :  { %v1940_v25 = vadd.f32 %v5082_v24, %v4665_v43 }
 0xbca   :  { %v1934_v45 = vpop.f32.mrf.mxu0 }
 0xbcb   :  { %v6040_v46 = vadd.f32 %v4665_v43, %v1934_v45 }
 0xbcd   :  { %5091 = vmatprep.mubr.msk.f32.mxu0 %vm326_vm10, %v6040_v46 }
 0xbce   :  { %5092 = vmatmul.mubr.msk.f32.vlgmr.msra.gmra.mxu0 %vm326_vm10, %v1940_v25 }
 0xbcf   :  { %5095 = vmatpush3.msra.mxu0 %v2060_v23  ;;  %v4678_v23 = vld [vmem:[%s5660_s14 + $0x30] sm:$0xff] }
 0xbd0   :  { %5096 = vmatprep.subr.mxu0 %v2059_v47 }
 0xbd1   :  { %5097 = vmatpush3.msra.mxu0 %v2059_v47  ;;  %v4677_v47 = vld [vmem:[%s5660_s14 + $0x28] sm:$0xff] }
 0xbd2   :  { %5098 = vmatprep.subr.mxu0 %v2058_v49 }
 0xbd3   :  { %5099 = vmatpush3.msra.mxu0 %v2058_v49  ;;  %v4676_v49 = vld [vmem:[%s5660_s14 + $0x20] sm:$0xff] }
 0xbd4   :  { %5100 = vmatprep.subr.mxu0 %v2057_v50 }
 0xbd5   :  { %5101 = vmatpush3.msra.mxu0 %v2057_v50 }
 0xbd6   :  { %5102 = vmatprep.subr.mxu0 %v2056_v51 }
 0xbd7   :  { %5103 = vmatpush3.msra.mxu0 %v2056_v51 }
 0xbd8   :  { %5104 = vmatprep.subr.mxu0 %v2055_v52 }
 0xbd9   :  { %5105 = vmatpush3.msra.mxu0 %v2055_v52 }
 0xbda   :  { %5106 = vmatprep.subr.mxu0 %v2054_v53 }
 0xbdb   :  { %5107 = vmatpush3.msra.mxu0 %v2054_v53 }
 0xbdc   :  { %5108 = vmatprep.subr.mxu0 %v2053_v54 }
 0xbdd   :  { %5109 = vmatpush3.msra.mxu0 %v2053_v54 }
 0xc8e   :  { %v5093_v57 = vpop.f32.mrf.mxu0 }
 0xc8f   :  { %v2032_v55 = vadd.f32 %v5093_v57, %v4668_v56 }
 0xc90   :  { %v2026_v58 = vpop.f32.mrf.mxu0 }
 0xc91   :  { %v2036_v59 = vmul.f32 %v2032_v55, %v2032_v55  ;;  %v2027_v60 = vadd.f32 %v4668_v56, %v2026_v58 }
 0xc93   :  { %v2038_v61 = vmul.f32 %v2036_v59, %v2032_v55  ;;  %v2035_v63 = vmul.f32 %v2027_v60, %v2027_v60  ;;  %v4675_v59 = vld [vmem:[%s6403_s8] ss:$0 sm:$0xff] }
 0xc95   :  { %v2040_v1 = vmul.f32 0.044715, %v2038_v61  ;;  %v2037_v2 = vmul.f32 %v2035_v63, %v2027_v60 }
 0xc97   :  { %v2042_v3 = vadd.f32 %v2040_v1, %v2032_v55  ;;  %v2039_v4 = vmul.f32 0.044715, %v2037_v2 }
 0xc99   :  { %v2044_v5 = vmul.f32 0.7978846, %v2042_v3  ;;  %v2041_v6 = vadd.f32 %v2039_v4, %v2027_v60  ;;  %v4681_v4 = vld [vmem:[%s5665_s19 + $0x1] ss:$0 sm:$0xff]  ;;  %s6405_s19 = sld [smem:[#allocation24_spill]] }
 0xc9b   :  { %5405 = vtanh.f32 %v2044_v5  ;;  %v2043_v7 = vmul.f32 0.7978846, %v2041_v6 }
 0xc9d   :  { %5407 = vtanh.f32 %v2043_v7 }
 0xca8   :  { %v5406_v8 = vpop.eup %5405 }
 0xca9   :  { %v2048_v19 = vadd.f32 1.0, %v5406_v8 }
 0xcaa   :  { %v5408_v9 = vpop.eup %5407 }
 0xcab   :  { %v2047_v10 = vadd.f32 1.0, %v5408_v9  ;;  %v2050_v12 = vmul.f32 0.5, %v2048_v19 }
 0xcad   :  { %v2049_v13 = vmul.f32 0.5, %v2047_v10  ;;  %v2052_v21 = vmul.f32 %v2050_v12, %v2032_v55  ;;  %v4674_v55 = vld [vmem:[%s6402_s3] ss:$0 sm:$0xff] }
 0xcaf   :  { %v2051_v14 = vmul.f32 %v2049_v13, %v2027_v60 }
 0xcb1   :  { %5110 = vmatprep.mubr.msk.f32.mxu0 %vm2068_vm9, %v2051_v14 }
 0xcb2   :  { %5111 = vmatmul.mubr.msk.f32.vlgmr.msra.gmra.mxu0 %vm2068_vm9, %v2052_v21 }
 0xd72   :  { %v5112_v17 = vpop.f32.mrf.mxu0 }
 0xd73   :  { %v2147_v18 = vadd.f32 %v5112_v17, %v4671_v15 }
 0xd74   :  { %v2141_v27 = vpop.f32.mrf.mxu0 }
 0xd75   :  { %v2142_v28 = vadd.f32 %v4671_v15, %v2141_v27  ;;  %v2151_v30 = vadd.f32 %v2147_v18, %v1940_v25  ;;  %v4679_v25 = vld [vmem:[%s5660_s14 + $0x38] sm:$0xff]  ;;  %s6404_s14 = sld [smem:[#allocation15_spill]] }
 0xd76   :  { %5113 = vmatprep.subr.mxu0 %v4679_v25 }
 0xd77   :  { %v2157_v31 = vsel %vm326_vm10, %v2151_v30, 0.0  ;;  %v2150_v32 = vadd.f32 %v2142_v28, %v6040_v46  ;;  %5114 = vmatpush3.msra.mxu0 %v4679_v25 }
 0xd78   :  { %2158 = vadd.xlane.f32.xlu1 %v2157_v31  ;;  %5115 = vmatprep.subr.mxu0 %v4678_v23 }
 0xd79   :  { %v2154_v34 = vsel %vm326_vm10, %v2150_v32, 0.0  ;;  %5116 = vmatpush3.msra.mxu0 %v4678_v23 }
 0xd7a   :  { %2155 = vadd.xlane.f32.xlu0 %v2154_v34  ;;  %5117 = vmatprep.subr.mxu0 %v4677_v47 }
 0xd7b   :  { %5118 = vmatpush3.msra.mxu0 %v4677_v47 }
 0xd7c   :  { %5119 = vmatprep.subr.mxu0 %v4676_v49 }
 0xd7d   :  { %5120 = vmatpush3.msra.mxu0 %v4676_v49 }
 0xd7e   :  { %5134 = vmatprep.subr.mxu0 %v5602_v16 }
 0xe01   :  { %v2159_v35 = vpop.xlane.xlu1 %2158 }
 0xe02   :  { %v2161_v36 = vmul.f32 0.03125, %v2159_v35 }
 0xe03   :  { %v2156_v37 = vpop.xlane.xlu0 %2155 }
 0xe04   :  { %v2160_v39 = vmul.f32 0.03125, %v2156_v37  ;;  %v2163_v41 = vsub.f32 %v2151_v30, %v2161_v36 }
 0xe06   :  { %v2162_v42 = vsub.f32 %v2150_v32, %v2160_v39  ;;  %v2165_v45 = vmul.f32 %v2163_v41, %v2163_v41 }
 0xe08   :  { %v2164_v24 = vmul.f32 %v2162_v42, %v2162_v42  ;;  %v2169_v46 = vsel %vm326_vm10, %v2165_v45, 0.0 }
 0xe0a   :  { %v2166_v43 = vsel %vm326_vm10, %v2164_v24, 0.0 }
 0xe0b   :  { %2167 = vadd.xlane.f32.xlu0 %v2166_v43 }
 0xe0f   :  { %2170 = vadd.xlane.f32.xlu0 %v2169_v46 }
 0xe94   :  { %v2168_v50 = vpop.xlane.xlu0 %2167 }
 0xe95   :  { %v2172_v51 = vmul.f32 0.03125, %v2168_v50 }
 0xe97   :  { %v2174_v52 = vadd.f32 1e-05, %v2172_v51 }
 0xe98   :  { %v2171_v53 = vpop.xlane.xlu0 %2170 }
 0xe99   :  { %5409 = vrsqrt.f32 %v2174_v52  ;;  %v2173_v54 = vmul.f32 0.03125, %v2171_v53 }
 0xe9b   :  { %v2175_v56 = vadd.f32 1e-05, %v2173_v54 }
 0xe9d   :  { %5411 = vrsqrt.f32 %v2175_v56 }
 0xea6   :  { %v5410_v57 = vpop.eup %5409 }
 0xea7   :  { %v2178_v58 = vmul.f32 %v5410_v57, %v2162_v42 }
 0xea9   :  { %v2186_v60 = vmul.f32 %v4674_v55, %v2178_v58 }
 0xeaa   :  { %v5412_v61 = vpop.eup %5411 }
 0xeab   :  { %v2179_v63 = vmul.f32 %v5412_v61, %v2163_v41  ;;  %v2194_v1 = vadd.f32 %v4675_v59, %v2186_v60 }
 0xead   :  { %v2187_v2 = vmul.f32 %v4674_v55, %v2179_v63  ;;  %5121 = vmatprep.mubr.msk.f32.mxu0 %vm326_vm10, %v2194_v1 }
 0xeaf   :  { %v2195_v3 = vadd.f32 %v4675_v59, %v2187_v2 }
 0xeb1   :  { %5122 = vmatmul.mubr.msk.f32.vlgmr.msra.gmra.mxu0 %vm326_vm10, %v2195_v3 }
 0xeb2   :  { %5136 = vmatprep.mubr.msk.f32.mxu0 %vm5603_vm11, %v5602_v16 }
 0xf71   :  { %v5123_v5 = vpop.f32.mrf.mxu0 }
 0xf72   :  { %v6074_v6 = vadd.f32 %v5123_v5, %v4681_v4 }
 0xf73   :  { %v2281_v7 = vpop.f32.mrf.mxu0 }
 0xf74   :  { %v6076_v8 = vadd.f32 %v4681_v4, %v2281_v7  ;;  %2371 = vrot.lane.b32.xlu1 %v6074_v6, %s5604_s9  ;;  %v2291_v13 = vmul.f32 %v5823_v22, %v6074_v6  ;;  %v2477_v14 = vmul.f32 %v5847_v29, %v6074_v6  ;;  %v2475_v5 = vmul.f32 %v6074_v6, %v5905_v20 }
 0xf75   :  { %v2651_v7 = vmul.f32 %v6074_v6, %v5890_v0 }
 0xf76   :  { %2293 = vrot.lane.b32.xlu0 %v6076_v8, %s5604_s9  ;;  %v2290_v9 = vmul.f32 %v5823_v22, %v6076_v8  ;;  %v2476_v10 = vmul.f32 %v5847_v29, %v6076_v8  ;;  %v2650_v45 = vmul.f32 %v6076_v8, %v5890_v0  ;;  %v2474_v4 = vmul.f32 %v6076_v8, %v5905_v20 }
 0xfe6   :  { %v6094_v12 = vpop.permute.xlu1 %2371 }
 0xfe8   :  { %v6082_v19 = vpop.permute.xlu0 %2293 }
 0xfe9   :  { %5125 = vmatpush3.xpose.msk.msra.mxu1 %vm326_vm10, %v6082_v19  ;;  %5135 = vmatpush3.xpose.msk.msra.mxu0 %vm326_vm10, %v6082_v19 }
 0xfea   :  { %5129 = vmatprep.subr.mxu1 %v5602_v16  ;;  %5144 = vmatprep.subr.mxu0 %v5602_v16 }
 0xfec   :  { %5127 = vmatmul.mubr.msk.f32.vlgmr.msra.gmra.mxu1 %vm326_vm10, %v2290_v9  ;;  %5137 = vmatmul.mubr.msk.f32.vlgmr.msra.gmra.mxu0 %vm326_vm10, %v2476_v10 }
 0xfed   :  { %5130 = vmatpush3.xpose.msk.msra.mxu1 %vm326_vm10, %v6094_v12  ;;  %5131 = vmatprep.mubr.msk.f32.mxu1 %vm5603_vm11, %v5602_v16 }
 0xfee   :  { %5139 = vmatprep.subr.mxu1 %v5602_v16  ;;  %5146 = vmatprep.mubr.msk.f32.mxu0 %vm5603_vm11, %v5602_v16 }
 0xff0   :  { %5132 = vmatmul.mubr.msk.f32.vlgmr.msra.gmra.mxu1 %vm326_vm10, %v2291_v13 }
 0xff1   :  { %5140 = vmatpush3.xpose.msk.msra.mxu1 %vm326_vm10, %v6094_v12  ;;  %5141 = vmatprep.mubr.msk.f32.mxu1 %vm5603_vm11, %v5602_v16 }
 0xff2   :  { %5149 = vmatprep.subr.mxu1 %v5602_v16 }
 0xff4   :  { %5142 = vmatmul.mubr.msk.f32.vlgmr.msra.gmra.mxu1 %vm326_vm10, %v2477_v14 }
 0xff5   :  { %5151 = vmatprep.mubr.msk.f32.mxu1 %vm5603_vm11, %v5602_v16 }
0x10ac   :  { %v2366_v22 = vpop.f32.mrf.mxu1  ;;  %v2547_v21 = vpop.f32.mrf.mxu0 }
0x10ad   :  { %v2448_v15 = vmul.f32 0.35355338, %v2366_v22  ;;  %v2624_v17 = vmul.f32 0.35355338, %v2547_v21 }
0x10ae   :  { %v5128_v18 = vpop.f32.mrf.mxu1  ;;  %v5138_v27 = vpop.f32.mrf.mxu0 }
0x10af   :  { %v2626_v28 = vadd.f32 %v2624_v17, %v5873_v44  ;;  %v2450_v29 = vadd.f32 %v2448_v15, %v5873_v44  ;;  %v2960_v18 = vmul.f32 %v5923_v40, %v6076_v8 }
0x10b0   :  { %v2444_v30 = vpop.f32.mrf.mxu1 }
0x10b1   :  { %v2449_v31 = vmul.f32 0.35355338, %v2444_v30  ;;  %v2628_v32 = vsel %vm662_vm2, %v2626_v28, -inf  ;;  %v2452_v37 = vsel %vm662_vm2, %v2450_v29, -inf }
0x10b2   :  { %2629 = vmax.xlane.f32.xlu0 %v2628_v32  ;;  %v5133_v34 = vpop.f32.mrf.mxu1 }
0x10b3   :  { %v2451_v39 = vadd.f32 %v2449_v31, %v5877_v48 }
0x10b4   :  { %v2620_v35 = vpop.f32.mrf.mxu1 }
0x10b5   :  { %v2625_v36 = vmul.f32 0.35355338, %v2620_v35  ;;  %v2455_v24 = vsel %vm662_vm2, %v2451_v39, -inf }
0x10b6   :  { %2453 = vmax.xlane.f32.xlu0 %v2452_v37  ;;  %v5143_v41 = vpop.f32.mrf.mxu1 }
0x10b7   :  { %v2627_v42 = vadd.f32 %v2625_v36, %v5877_v48 }
0x10b9   :  { %v2631_v43 = vsel %vm662_vm2, %v2627_v42, -inf }
0x10ba   :  { %2456 = vmax.xlane.f32.xlu0 %v2455_v24  ;;  %2632 = vmax.xlane.f32.xlu1 %v2631_v43 }
0x10cb   :  { %2653 = vrot.lane.b32.xlu1 %v2650_v45, %s5605_s5 }
0x113b   :  { %v2630_v46 = vpop.xlane.xlu0 %2629 }
0x113c   :  { %v2634_v25 = vsub.f32 %v2626_v28, %v2630_v46 }
0x113e   :  { %v2636_v23 = vmul.f32 1.442695, %v2634_v25 }
0x113f   :  { %v2454_v47 = vpop.xlane.xlu0 %2453 }
0x1140   :  { %5413 = vpow2.f32 %v2636_v23  ;;  %v2458_v49 = vsub.f32 %v2450_v29, %v2454_v47  ;;  %v2961_v29 = vmul.f32 %v5923_v40, %v6074_v6 }
0x1142   :  { %v2460_v50 = vmul.f32 1.442695, %v2458_v49 }
0x1143   :  { %v2457_v51 = vpop.xlane.xlu0 %2456  ;;  %v2633_v52 = vpop.xlane.xlu1 %2632 }
0x1144   :  { %5415 = vpow2.f32 %v2460_v50  ;;  %v2459_v53 = vsub.f32 %v2451_v39, %v2457_v51  ;;  %v2635_v54 = vsub.f32 %v2627_v42, %v2633_v52 }
0x1146   :  { %v2462_v56 = vmul.f32 1.442695, %v2459_v53  ;;  %v2638_v57 = vmul.f32 1.442695, %v2635_v54  ;;  %v3134_v54 = vmul.f32 %v6076_v8, %v5961_v11 }
0x1147   :  { %v2654_v55 = vpop.permute.xlu1 %2653 }
0x1148   :  { %5417 = vpow2.f32 %v2462_v56  ;;  %5145 = vmatpush3.msra.mxu0 %v2654_v55 }
0x1149   :  { %5154 = vmatprep.subr.mxu0 %v5602_v16  ;;  %5419 = vpow2.f32 %v2638_v57 }
0x114d   :  { %v5414_v58 = vpop.eup %5413 }
0x114e   :  { %v2640_v59 = vsel %vm662_vm2, %v5414_v58, 0.0 }
0x114f   :  { %2641 = vadd.xlane.f32.xlu1 %v2640_v59 }
0x1151   :  { %v5416_v60 = vpop.eup %5415 }
0x1152   :  { %v2464_v61 = vsel %vm662_vm2, %v5416_v60, 0.0 }
0x1153   :  { %2465 = vadd.xlane.f32.xlu1 %v2464_v61 }
0x1155   :  { %v5418_v63 = vpop.eup %5417 }
0x1156   :  { %v2467_v1 = vsel %vm662_vm2, %v5418_v63, 0.0  ;;  %v5420_v2 = vpop.eup %5419 }
0x1157   :  { %2468 = vadd.xlane.f32.xlu0 %v2467_v1  ;;  %v2643_v3 = vsel %vm662_vm2, %v5420_v2, 0.0 }
0x115b   :  { %2644 = vadd.xlane.f32.xlu0 %v2643_v3 }
0x1164   :  { %2807 = vrot.lane.b32.xlu1 %v2474_v4, %s5605_s5  ;;  %v3135_v4 = vmul.f32 %v6074_v6, %v5961_v11  ;;  %v3292_v11 = vmul.f32 %v5981_v38, %v6076_v8 }
0x1168   :  { %2884 = vrot.lane.b32.xlu1 %v2475_v5, %s5605_s5 }
0x1171   :  { %2730 = vrot.lane.b32.xlu0 %v2651_v7, %s5605_s5 }
0x11d8   :  { %v2642_v9 = vpop.xlane.xlu1 %2641 }
0x11d9   :  { %5421 = vrcp.f32 %v2642_v9 }
0x11dc   :  { %v2466_v10 = vpop.xlane.xlu1 %2465 }
0x11dd   :  { %5423 = vrcp.f32 %v2466_v10 }
0x11e0   :  { %v2469_v13 = vpop.xlane.xlu0 %2468  ;;  %v2808_v17 = vpop.permute.xlu1 %2807 }
0x11e4   :  { %v2645_v14 = vpop.xlane.xlu0 %2644  ;;  %v2885_v31 = vpop.permute.xlu1 %2884 }
0x11e5   :  { %5425 = vrcp.f32 %v2645_v14 }
0x11e6   :  { %v5422_v22 = vpop.eup %5421  ;;  %5427 = vrcp.f32 %v2469_v13 }
0x11e7   :  { %v2648_v21 = vmul.f32 %v5422_v22, %v5414_v58 }
0x11e8   :  { %v2731_v15 = vpop.permute.xlu0 %2730 }
0x11e9   :  { %5147 = vmatmul.mubr.msk.f32.vlgmr.msra.gmra.mxu0 %vm662_vm2, %v2648_v21  ;;  %5150 = vmatpush3.msra.mxu1 %v2731_v15 }
0x11ea   :  { %v5424_v20 = vpop.eup %5423  ;;  %5155 = vmatpush3.msra.mxu0 %v2808_v17  ;;  %5156 = vmatprep.mubr.msk.f32.mxu0 %vm5603_vm11, %v5602_v16 }
0x11eb   :  { %5164 = vmatprep.subr.mxu0 %v5602_v16  ;;  %v2472_v0 = vmul.f32 %v5424_v20, %v5416_v60  ;;  %5159 = vmatprep.subr.mxu1 %v5602_v16 }
0x11ed   :  { %5157 = vmatmul.mubr.msk.f32.vlgmr.msra.gmra.mxu0 %vm662_vm2, %v2472_v0 }
0x11ee   :  { %5165 = vmatpush3.xpose.msk.msra.mxu0 %vm326_vm10, %v6082_v19  ;;  %5166 = vmatprep.mubr.msk.f32.mxu0 %vm5603_vm11, %v5602_v16 }
0x11ef   :  { %5174 = vmatprep.subr.mxu0 %v5602_v16 }
0x11f1   :  { %5167 = vmatmul.mubr.msk.f32.vlgmr.msra.gmra.mxu0 %vm326_vm10, %v2960_v18 }
0x11f2   :  { %v5426_v27 = vpop.eup %5425  ;;  %5176 = vmatprep.mubr.msk.f32.mxu0 %vm5603_vm11, %v5602_v16 }
0x11f3   :  { %v2649_v28 = vmul.f32 %v5426_v27, %v5420_v2  ;;  %v5428_v30 = vpop.eup %5427 }
0x11f4   :  { %v2473_v32 = vmul.f32 %v5428_v30, %v5418_v63 }
0x11f5   :  { %5152 = vmatmul.mubr.msk.f32.vlgmr.msra.gmra.mxu1 %vm662_vm2, %v2649_v28 }
0x11f6   :  { %5160 = vmatpush3.msra.mxu1 %v2885_v31  ;;  %5161 = vmatprep.mubr.msk.f32.mxu1 %vm5603_vm11, %v5602_v16 }
0x11f7   :  { %5169 = vmatprep.subr.mxu1 %v5602_v16 }
0x11f9   :  { %5162 = vmatmul.mubr.msk.f32.vlgmr.msra.gmra.mxu1 %vm662_vm2, %v2473_v32 }
0x11fa   :  { %5170 = vmatpush3.xpose.msk.msra.mxu1 %vm326_vm10, %v6094_v12  ;;  %5171 = vmatprep.mubr.msk.f32.mxu1 %vm5603_vm11, %v5602_v16 }
0x11fb   :  { %5179 = vmatprep.subr.mxu1 %v5602_v16 }
0x11fd   :  { %5172 = vmatmul.mubr.msk.f32.vlgmr.msra.gmra.mxu1 %vm326_vm10, %v2961_v29 }
0x11fe   :  { %5181 = vmatprep.mubr.msk.f32.mxu1 %vm5603_vm11, %v5602_v16 }
0x12a9   :  { %v2725_v34 = vpop.f32.mrf.mxu0 }
0x12ab   :  { %v5148_v35 = vpop.f32.mrf.mxu0 }
0x12ad   :  { %v2879_v36 = vpop.f32.mrf.mxu0 }
0x12ae   :  { %v6174_v37 = vadd.f32 %v2879_v36, %v2725_v34 }
0x12af   :  { %v5158_v39 = vpop.f32.mrf.mxu0 }
0x12b1   :  { %v3031_v41 = vpop.f32.mrf.mxu0 }
0x12b2   :  { %v3108_v42 = vmul.f32 0.35355338, %v3031_v41 }
0x12b3   :  { %v5168_v24 = vpop.f32.mrf.mxu0 }
0x12b4   :  { %v3110_v43 = vadd.f32 %v3108_v42, %v5873_v44 }
0x12b5   :  { %v2802_v45 = vpop.f32.mrf.mxu1 }
0x12b6   :  { %v3112_v40 = vsel %vm662_vm2, %v3110_v43, -inf }
0x12b7   :  { %3113 = vmax.xlane.f32.xlu0 %v3112_v40  ;;  %v5153_v46 = vpop.f32.mrf.mxu1 }
0x12b8   :  { %v3467_v46 = vmul.f32 %v6074_v6, %v6012_v62 }
0x12b9   :  { %v2956_v25 = vpop.f32.mrf.mxu1 }
0x12ba   :  { %v6178_v23 = vadd.f32 %v2956_v25, %v2802_v45 }
0x12bb   :  { %v5163_v47 = vpop.f32.mrf.mxu1 }
0x12bd   :  { %v3104_v49 = vpop.f32.mrf.mxu1 }
0x12be   :  { %v3109_v50 = vmul.f32 0.35355338, %v3104_v49 }
0x12bf   :  { %v5173_v51 = vpop.f32.mrf.mxu1 }
0x12c0   :  { %v3111_v52 = vadd.f32 %v3109_v50, %v5877_v48  ;;  %v4711_v51 = vld [vmem:[%s5670_s24 + $0x38] sm:$0xff] }
0x12c2   :  { %v3115_v53 = vsel %vm662_vm2, %v3111_v52, -inf }
0x12c3   :  { %3116 = vmax.xlane.f32.xlu1 %v3115_v53  ;;  %v4709_v53 = vld [vmem:[%s5670_s24 + $0x28] sm:$0xff] }
0x12d4   :  { %3137 = vrot.lane.b32.xlu1 %v3134_v54, %s5605_s5  ;;  %v4708_v54 = vld [vmem:[%s5670_s24 + $0x20] sm:$0xff] }
0x1340   :  { %v3114_v56 = vpop.xlane.xlu0 %3113 }
0x1341   :  { %v3118_v57 = vsub.f32 %v3110_v43, %v3114_v56  ;;  %v4719_v56 = vld [vmem:[%s5680_s6 + $0x38] sm:$0xff] }
0x1343   :  { %v3120_v55 = vmul.f32 1.442695, %v3118_v57 }
0x1345   :  { %5429 = vpow2.f32 %v3120_v55 }
0x134c   :  { %v3117_v58 = vpop.xlane.xlu1 %3116 }
0x134d   :  { %v3119_v59 = vsub.f32 %v3111_v52, %v3117_v58  ;;  %v4710_v52 = vld [vmem:[%s5670_s24 + $0x30] sm:$0xff]  ;;  %s6406_s24 = sld [smem:[#allocation22_spill]] }
0x134f   :  { %v3122_v60 = vmul.f32 1.442695, %v3119_v59 }
0x1350   :  { %v3138_v61 = vpop.permute.xlu1 %3137 }
0x1351   :  { %5431 = vpow2.f32 %v3122_v60  ;;  %5175 = vmatpush3.msra.mxu0 %v3138_v61 }
0x1352   :  { %v5430_v63 = vpop.eup %5429  ;;  %5184 = vmatprep.subr.mxu0 %v5602_v16 }
0x1353   :  { %v3124_v1 = vsel %vm662_vm2, %v5430_v63, 0.0 }
0x1354   :  { %3125 = vadd.xlane.f32.xlu0 %v3124_v1  ;;  %v4717_v1 = vld [vmem:[%s5680_s6 + $0x28] sm:$0xff] }
0x135e   :  { %v5432_v2 = vpop.eup %5431 }
0x135f   :  { %v3127_v3 = vsel %vm662_vm2, %v5432_v2, 0.0 }
0x1360   :  { %3128 = vadd.xlane.f32.xlu0 %v3127_v3 }
0x1376   :  { %3214 = vrot.lane.b32.xlu0 %v3135_v4, %s5605_s5  ;;  %v4713_v4 = vld [vmem:[%s6398_s13 + $0x1] ss:$0 sm:$0xff] }
0x13dd   :  { %v3126_v5 = vpop.xlane.xlu0 %3125 }
0x13de   :  { %5433 = vrcp.f32 %v3126_v5 }
0x13e9   :  { %v3129_v7 = vpop.xlane.xlu0 %3128 }
0x13ea   :  { %5435 = vrcp.f32 %v3129_v7 }
0x13eb   :  { %v5434_v9 = vpop.eup %5433 }
0x13ec   :  { %v3132_v10 = vmul.f32 %v5434_v9, %v5430_v63  ;;  %v4718_v63 = vld [vmem:[%s5680_s6 + $0x30] sm:$0xff] }
0x13ed   :  { %v3215_v13 = vpop.permute.xlu0 %3214 }
0x13ee   :  { %5177 = vmatmul.mubr.msk.f32.vlgmr.msra.gmra.mxu0 %vm662_vm2, %v3132_v10  ;;  %5180 = vmatpush3.msra.mxu1 %v3215_v13  ;;  %v4731_v10 = vld [vmem:[%s6399_s17 + $0x78] sm:$0xff]  ;;  %v4730_v13 = vld [vmem:[%s6399_s17 + $0x70] sm:$0xff] }
0x13ef   :  { %5185 = vmatpush3.xpose.msk.msra.mxu0 %vm326_vm10, %v6082_v19  ;;  %5186 = vmatprep.mubr.msk.f32.mxu0 %vm5603_vm11, %v5602_v16  ;;  %v3293_v19 = vmul.f32 %v5981_v38, %v6074_v6 }
0x13f0   :  { %5189 = vmatprep.subr.mxu1 %v5602_v16  ;;  %5194 = vmatprep.subr.mxu0 %v5602_v16 }
0x13f2   :  { %5187 = vmatmul.mubr.msk.f32.vlgmr.msra.gmra.mxu0 %vm326_vm10, %v3292_v11  ;;  %v4729_v11 = vld [vmem:[%s6399_s17 + $0x68] sm:$0xff] }
0x13f3   :  { %5196 = vmatprep.mubr.msk.f32.mxu0 %vm5603_vm11, %v5602_v16 }
0x13f7   :  { %v5436_v14 = vpop.eup %5435 }
0x13f8   :  { %v3133_v22 = vmul.f32 %v5436_v14, %v5432_v2  ;;  %v4716_v2 = vld [vmem:[%s5680_s6 + $0x20] sm:$0xff]  ;;  %s6407_s6 = sld [smem:[#allocation25_spill]] }
0x13f9   :  { %v4728_v14 = vld [vmem:[%s6399_s17 + $0x60] sm:$0xff] }
0x13fa   :  { %5182 = vmatmul.mubr.msk.f32.vlgmr.msra.gmra.mxu1 %vm662_vm2, %v3133_v22  ;;  %v4727_v22 = vld [vmem:[%s6399_s17 + $0x58] sm:$0xff] }
0x13fb   :  { %5190 = vmatpush3.xpose.msk.msra.mxu1 %vm326_vm10, %v6094_v12  ;;  %5191 = vmatprep.mubr.msk.f32.mxu1 %vm5603_vm11, %v5602_v16 }
0x13fc   :  { %5199 = vmatprep.subr.mxu1 %v5602_v16 }
0x13fe   :  { %5192 = vmatmul.mubr.msk.f32.vlgmr.msra.gmra.mxu1 %vm326_vm10, %v3293_v19  ;;  %v4726_v19 = vld [vmem:[%s6399_s17 + $0x50] sm:$0xff] }
0x13ff   :  { %5201 = vmatprep.mubr.msk.f32.mxu1 %vm5603_vm11, %v5602_v16 }
0x14ae   :  { %v3209_v21 = vpop.f32.mrf.mxu0 }
0x14af   :  { %v6215_v15 = vadd.f32 %v3209_v21, %v6174_v37  ;;  %v4725_v21 = vld [vmem:[%s6399_s17 + $0x48] sm:$0xff] }
0x14b0   :  { %v5178_v17 = vpop.f32.mrf.mxu0 }
0x14b1   :  { %v4721_v17 = vld [vmem:[%s6400_s25 + $0x1] ss:$0 sm:$0xff] }
0x14b2   :  { %v3363_v20 = vpop.f32.mrf.mxu0 }
0x14b3   :  { %v3440_v12 = vmul.f32 0.35355338, %v3363_v20 }
0x14b4   :  { %v5188_v0 = vpop.f32.mrf.mxu0 }
0x14b5   :  { %v3442_v18 = vadd.f32 %v3440_v12, %v5873_v44 }
0x14b7   :  { %v3444_v27 = vsel %vm662_vm2, %v3442_v18, -inf }
0x14b8   :  { %3445 = vmax.xlane.f32.xlu1 %v3444_v27 }
0x14ba   :  { %v3286_v38 = vpop.f32.mrf.mxu1 }
0x14bb   :  { %v3291_v28 = vadd.f32 %v3286_v38, %v6178_v23 }
0x14bc   :  { %v5183_v30 = vpop.f32.mrf.mxu1 }
0x14be   :  { %v3436_v31 = vpop.f32.mrf.mxu1 }
0x14bf   :  { %v3441_v32 = vmul.f32 0.35355338, %v3436_v31 }
0x14c0   :  { %v5193_v29 = vpop.f32.mrf.mxu1 }
0x14c1   :  { %v3443_v34 = vadd.f32 %v3441_v32, %v5877_v48  ;;  %v3466_v48 = vmul.f32 %v6076_v8, %v6012_v62 }
0x14c3   :  { %v3447_v35 = vsel %vm662_vm2, %v3443_v34, -inf }
0x14c4   :  { %3448 = vmax.xlane.f32.xlu0 %v3447_v35 }
0x1541   :  { %v3446_v36 = vpop.xlane.xlu1 %3445 }
0x1542   :  { %v3450_v37 = vsub.f32 %v3442_v18, %v3446_v36 }
0x1544   :  { %v3452_v39 = vmul.f32 1.442695, %v3450_v37 }
0x1546   :  { %5437 = vpow2.f32 %v3452_v39 }
0x154d   :  { %v3449_v44 = vpop.xlane.xlu0 %3448 }
0x154e   :  { %v3451_v41 = vsub.f32 %v3443_v34, %v3449_v44 }
0x1550   :  { %v3454_v42 = vmul.f32 1.442695, %v3451_v41 }
0x1552   :  { %5439 = vpow2.f32 %v3454_v42 }
0x1553   :  { %v5438_v24 = vpop.eup %5437 }
0x1554   :  { %v3456_v43 = vsel %vm662_vm2, %v5438_v24, 0.0 }
0x1555   :  { %3457 = vadd.xlane.f32.xlu1 %v3456_v43 }
0x155f   :  { %v5440_v45 = vpop.eup %5439 }
0x1560   :  { %v3459_v40 = vsel %vm662_vm2, %v5440_v45, 0.0 }
0x1561   :  { %3460 = vadd.xlane.f32.xlu0 %v3459_v40  ;;  %v4733_v40 = vld [vmem:[%s6401_s29 + $0x1] ss:$0 sm:$0xff] }
0x1566   :  { %3469 = vrot.lane.b32.xlu1 %v3466_v48, %s5605_s5 }
0x1577   :  { %3546 = vrot.lane.b32.xlu0 %v3467_v46, %s5605_s5 }
0x15de   :  { %v3458_v25 = vpop.xlane.xlu1 %3457 }
0x15df   :  { %5441 = vrcp.f32 %v3458_v25 }
0x15e2   :  { %v3470_v23 = vpop.permute.xlu1 %3469 }
0x15e3   :  { %5195 = vmatpush3.msra.mxu0 %v3470_v23 }
0x15e4   :  { %5204 = vmatprep.subr.mxu0 %v4711_v51 }
0x15ea   :  { %v3461_v47 = vpop.xlane.xlu0 %3460 }
0x15eb   :  { %5443 = vrcp.f32 %v3461_v47 }
0x15ec   :  { %v5442_v49 = vpop.eup %5441 }
0x15ed   :  { %v3464_v50 = vmul.f32 %v5442_v49, %v5438_v24 }
0x15ee   :  { %v3547_v8 = vpop.permute.xlu0 %3546 }
0x15ef   :  { %5197 = vmatmul.mubr.msk.f32.vlgmr.msra.gmra.mxu0 %vm662_vm2, %v3464_v50  ;;  %5200 = vmatpush3.msra.mxu1 %v3547_v8 }
0x15f0   :  { %5205 = vmatpush3.msra.mxu0 %v4711_v51  ;;  %5215 = vmatprep.subr.mxu1 %v4719_v56 }
0x15f1   :  { %5206 = vmatprep.subr.mxu0 %v4710_v52 }
0x15f2   :  { %5207 = vmatpush3.msra.mxu0 %v4710_v52 }
0x15f3   :  { %5208 = vmatprep.subr.mxu0 %v4709_v53 }
0x15f4   :  { %5209 = vmatpush3.msra.mxu0 %v4709_v53 }
0x15f5   :  { %5210 = vmatprep.subr.mxu0 %v4708_v54 }
0x15f6   :  { %5211 = vmatpush3.msra.mxu0 %v4708_v54 }
0x15f7   :  { %5226 = vmatprep.subr.mxu0 %v4731_v10 }
0x15f8   :  { %v5444_v62 = vpop.eup %5443 }
0x15f9   :  { %v3465_v6 = vmul.f32 %v5444_v62, %v5440_v45 }
0x15fb   :  { %5202 = vmatmul.mubr.msk.f32.vlgmr.msra.gmra.mxu1 %vm662_vm2, %v3465_v6 }
0x15fc   :  { %5216 = vmatpush3.msra.mxu1 %v4719_v56 }
0x15fd   :  { %5217 = vmatprep.subr.mxu1 %v4718_v63 }
0x15fe   :  { %5218 = vmatpush3.msra.mxu1 %v4718_v63 }
0x15ff   :  { %5219 = vmatprep.subr.mxu1 %v4717_v1 }
0x1600   :  { %5220 = vmatpush3.msra.mxu1 %v4717_v1 }
0x1601   :  { %5221 = vmatprep.subr.mxu1 %v4716_v2 }
0x1602   :  { %5222 = vmatpush3.msra.mxu1 %v4716_v2 }
0x1603   :  { %5245 = vmatprep.subr.mxu1 %v5602_v16 }
0x16af   :  { %v3541_v57 = vpop.f32.mrf.mxu0 }
0x16b0   :  { %v3622_v55 = vadd.f32 %v3541_v57, %v6215_v15  ;;  %v4724_v15 = vld [vmem:[%s6399_s17 + $0x40] sm:$0xff] }
0x16b1   :  { %v5198_v58 = vpop.f32.mrf.mxu0 }
0x16b2   :  { %5212 = vmatprep.mubr.msk.f32.mxu0 %vm326_vm10, %v3622_v55 }
0x16bb   :  { %v3618_v59 = vpop.f32.mrf.mxu1 }
0x16bc   :  { %v3623_v60 = vadd.f32 %v3618_v59, %v3291_v28  ;;  %v4228_v59 = vld [vmem:[%s6404_s14] sm:$0xff] }
0x16bd   :  { %v5203_v61 = vpop.f32.mrf.mxu1 }
0x16be   :  { %5213 = vmatmul.mubr.msk.f32.vlgmr.msra.gmra.mxu0 %vm326_vm10, %v3623_v60 }
0x16bf   :  { %5227 = vmatpush3.msra.mxu0 %v4731_v10  ;;  %v4739_v10 = vld [vmem:[%s6403_s8 + $0x1] ss:$0 sm:$0xff] }
0x16c0   :  { %5228 = vmatprep.subr.mxu0 %v4730_v13 }
0x16c1   :  { %5229 = vmatpush3.msra.mxu0 %v4730_v13 }
0x16c2   :  { %5230 = vmatprep.subr.mxu0 %v4729_v11 }
0x16c3   :  { %5231 = vmatpush3.msra.mxu0 %v4729_v11 }
0x16c4   :  { %5232 = vmatprep.subr.mxu0 %v4728_v14 }
0x16c5   :  { %5233 = vmatpush3.msra.mxu0 %v4728_v14 }
0x16c6   :  { %5234 = vmatprep.subr.mxu0 %v4727_v22 }
0x16c7   :  { %5235 = vmatpush3.msra.mxu0 %v4727_v22 }
0x16c8   :  { %5236 = vmatprep.subr.mxu0 %v4726_v19 }
0x16c9   :  { %5237 = vmatpush3.msra.mxu0 %v4726_v19 }
0x16ca   :  { %5238 = vmatprep.subr.mxu0 %v4725_v21 }
0x16cb   :  { %5239 = vmatpush3.msra.mxu0 %v4725_v21 }
0x16cc   :  { %5240 = vmatprep.subr.mxu0 %v4724_v15 }
0x16cd   :  { %5241 = vmatpush3.msra.mxu0 %v4724_v15  ;;  %v4311_v15 = vld [vmem:[%s6405_s19 + $0x18] sm:$0xff] }
0x16ce   :  { %5274 = vmatprep.subr.mxu0 %v5602_v16 }
0x177e   :  { %v5214_v3 = vpop.f32.mrf.mxu0 }
0x177f   :  { %v3715_v9 = vadd.f32 %v5214_v3, %v4713_v4 }
0x1780   :  { %v3709_v5 = vpop.f32.mrf.mxu0 }
0x1781   :  { %v6245_v7 = vadd.f32 %v4713_v4, %v3709_v5  ;;  %v4738_v5 = vld [vmem:[%s6402_s3 + $0x1] ss:$0 sm:$0xff] }
0x1783   :  { %5223 = vmatprep.mubr.msk.f32.mxu1 %vm326_vm10, %v6245_v7 }
0x1784   :  { %5224 = vmatmul.mubr.msk.f32.vlgmr.msra.gmra.mxu1 %vm326_vm10, %v3715_v9 }
0x1785   :  { %5249 = vmatprep.mubr.msk.f32.mxu1 %vm5603_vm11, %v5602_v16 }
0x1844   :  { %v5225_v20 = vpop.f32.mrf.mxu1 }
0x1845   :  { %v3809_v12 = vadd.f32 %v5225_v20, %v4721_v17  ;;  %v4310_v20 = vld [vmem:[%s6405_s19 + $0x10] sm:$0xff] }
0x1846   :  { %v3803_v0 = vpop.f32.mrf.mxu1 }
0x1847   :  { %v3813_v18 = vmul.f32 %v3809_v12, %v3809_v12  ;;  %v3804_v27 = vadd.f32 %v4721_v17, %v3803_v0  ;;  %v4308_v0 = vld [vmem:[%s6405_s19] sm:$0xff] }
0x1849   :  { %v3815_v38 = vmul.f32 %v3813_v18, %v3809_v12  ;;  %v3812_v28 = vmul.f32 %v3804_v27, %v3804_v27  ;;  %v3978_v18 = vmul.u32 8, %v5868_v33 }
0x184b   :  { %v3817_v30 = vmul.f32 0.044715, %v3815_v38  ;;  %v3814_v31 = vmul.f32 %v3812_v28, %v3804_v27  ;;  %vm3979_vm15 = vcmp.eq.s32.totalorder %v5787_v26, %v3978_v18 }
0x184c   :  { %vm3981_vm0 = vmand %vm3979_vm15, %vm3980_vm14 }
0x184d   :  { %v3819_v32 = vadd.f32 %v3817_v30, %v3809_v12  ;;  %v3816_v29 = vmul.f32 0.044715, %v3814_v31  ;;  %v4061_v30 = vld [vmem:[%s6406_s24 + $0x18] sm:$0xff]  ;;  %v4060_v31 = vld [vmem:[%s6406_s24 + $0x10] sm:$0xff] }
0x184f   :  { %v3821_v34 = vmul.f32 0.7978846, %v3819_v32  ;;  %v3818_v35 = vadd.f32 %v3816_v29, %v3804_v27  ;;  %v4058_v29 = vld [vmem:[%s6406_s24] sm:$0xff] }
0x1851   :  { %5445 = vtanh.f32 %v3821_v34  ;;  %v3820_v36 = vmul.f32 0.7978846, %v3818_v35  ;;  %v4748_v34 = vld [vmem:[%s6407_s6] ss:$0 sm:$0xff] }
0x1853   :  { %5447 = vtanh.f32 %v3820_v36 }
0x185e   :  { %v5446_v37 = vpop.eup %5445 }
0x185f   :  { %v3825_v39 = vadd.f32 1.0, %v5446_v37 }
0x1860   :  { %v5448_v44 = vpop.eup %5447 }
0x1861   :  { %v3824_v41 = vadd.f32 1.0, %v5448_v44  ;;  %v3827_v42 = vmul.f32 0.5, %v3825_v39 }
0x1863   :  { %v3826_v24 = vmul.f32 0.5, %v3824_v41  ;;  %v3829_v45 = vmul.f32 %v3827_v42, %v3809_v12  ;;  %v4309_v12 = vld [vmem:[%s6405_s19 + $0x8] sm:$0xff] }
0x1865   :  { %v3828_v43 = vmul.f32 %v3826_v24, %v3804_v27  ;;  %v4740_v27 = vsel %vm3981_vm0, 1.0, %v5602_v16 }
0x1867   :  { %5242 = vmatprep.mubr.msk.f32.mxu0 %vm2068_vm9, %v3828_v43 }
0x1868   :  { %5243 = vmatmul.mubr.msk.f32.vlgmr.msra.gmra.mxu0 %vm2068_vm9, %v3829_v45 }
0x1869   :  { %5278 = vmatprep.mubr.msk.f32.mxu0 %vm5603_vm11, %v5602_v16 }
0x1928   :  { %v5244_v48 = vpop.f32.mrf.mxu0 }
0x1929   :  { %v3925_v46 = vadd.f32 %v5244_v48, %v4733_v40 }
0x192a   :  { %v3919_v25 = vpop.f32.mrf.mxu0 }
0x192b   :  { %v3920_v23 = vadd.f32 %v4733_v40, %v3919_v25  ;;  %v3929_v47 = vadd.f32 %v3925_v46, %v3715_v9  ;;  %v4146_v25 = vld [vmem:[%s6408_s12 + $0x18] sm:$0xff] }
0x192d   :  { %v3937_v49 = vsel %vm326_vm10, %v3929_v47, 0.0  ;;  %v3928_v50 = vadd.f32 %v3920_v23, %v6245_v7  ;;  %v4145_v23 = vld [vmem:[%s6408_s12 + $0x10] sm:$0xff] }
0x192e   :  { %3938 = vadd.xlane.f32.xlu1 %v3937_v49  ;;  %v4143_v49 = vld [vmem:[%s6408_s12] sm:$0xff] }
0x192f   :  { %v3934_v8 = vsel %vm326_vm10, %v3928_v50, 0.0 }
0x1930   :  { %3935 = vadd.xlane.f32.xlu0 %v3934_v8 }
0x19b7   :  { %v3939_v62 = vpop.xlane.xlu1 %3938 }
0x19b8   :  { %v3941_v6 = vmul.f32 0.03125, %v3939_v62 }
0x19b9   :  { %v3936_v51 = vpop.xlane.xlu0 %3935 }
0x19ba   :  { %v3943_v52 = vsub.f32 %v3929_v47, %v3941_v6  ;;  %v3940_v53 = vmul.f32 0.03125, %v3936_v51  ;;  %v4144_v47 = vld [vmem:[%s6408_s12 + $0x8] sm:$0xff]  ;;  %v4445_v51 = vld [vmem:[%s5635_s21 + $0x78] sm:$0xff] }
0x19bc   :  { %v3942_v54 = vsub.f32 %v3928_v50, %v3940_v53  ;;  %v3945_v56 = vmul.f32 %v3943_v52, %v3943_v52  ;;  %v4742_v50 = vld [vmem:[#allocation5] ss:$0 sm:$0xff]  ;;  %v4444_v53 = vld [vmem:[%s5635_s21 + $0x70] sm:$0xff] }
0x19be   :  { %v3949_v57 = vsel %vm326_vm10, %v3945_v56, 0.0  ;;  %v3944_v55 = vmul.f32 %v3942_v54, %v3942_v54  ;;  %v4442_v56 = vld [vmem:[%s5635_s21 + $0x60] sm:$0xff] }
0x19bf   :  { %3950 = vadd.xlane.f32.xlu1 %v3949_v57  ;;  %v4441_v57 = vld [vmem:[%s5635_s21 + $0x58] sm:$0xff] }
0x19c0   :  { %v3946_v58 = vsel %vm326_vm10, %v3944_v55, 0.0  ;;  %v4440_v55 = vld [vmem:[%s5635_s21 + $0x50] sm:$0xff] }
0x19c1   :  { %3947 = vadd.xlane.f32.xlu0 %v3946_v58  ;;  %v4439_v58 = vld [vmem:[%s5635_s21 + $0x48] sm:$0xff] }
0x19d0   :  { %4230 = vperm.xlu1 %5368, %v4228_v59   ;;  %v4438_v59 = vld [vmem:[%s5635_s21 + $0x40] sm:$0xff] }
0x1a48   :  { %v3951_v60 = vpop.xlane.xlu1 %3950 }
0x1a49   :  { %v3953_v61 = vmul.f32 0.03125, %v3951_v60  ;;  %v4437_v60 = vld [vmem:[%s5635_s21 + $0x38] sm:$0xff] }
0x1a4a   :  { %v3948_v63 = vpop.xlane.xlu0 %3947 }
0x1a4b   :  { %v3955_v1 = vadd.f32 1e-05, %v3953_v61  ;;  %v3952_v2 = vmul.f32 0.03125, %v3948_v63  ;;  %v4436_v61 = vld [vmem:[%s5635_s21 + $0x30] sm:$0xff] }
0x1a4c   :  { %v4231_v13 = vpop.permute.xlu1 %4230 }
0x1a4d   :  { %5449 = vrsqrt.f32 %v3955_v1  ;;  %v3954_v3 = vadd.f32 1e-05, %v3952_v2  ;;  %vm4232_vm12 = vcmp.eq.s32.totalorder %v4231_v13, %v5787_v26  ;;  %v4059_v26 = vld [vmem:[%s6406_s24 + $0x8] sm:$0xff] }
0x1a4e   :  { %v4746_v17 = vsel %vm4232_vm12, 1.0, %v5602_v16  ;;  %v4431_v13 = vld [vmem:[%s5635_s21 + $0x8] sm:$0xff] }
0x1a4f   :  { %5451 = vrsqrt.f32 %v3954_v3 }
0x1a5a   :  { %v5450_v4 = vpop.eup %5449 }
0x1a5b   :  { %v3959_v7 = vmul.f32 %v5450_v4, %v3943_v52 }
0x1a5c   :  { %v5452_v9 = vpop.eup %5451 }
0x1a5d   :  { %v3967_v11 = vmul.f32 %v4738_v5, %v3959_v7  ;;  %v3958_v14 = vmul.f32 %v5452_v9, %v3942_v54  ;;  %v4443_v54 = vld [vmem:[%s5635_s21 + $0x68] sm:$0xff]  ;;  %v4434_v7 = vld [vmem:[%s5635_s21 + $0x20] sm:$0xff]  ;;  %v4433_v9 = vld [vmem:[%s5635_s21 + $0x18] sm:$0xff] }
0x1a5f   :  { %v3975_v22 = vadd.f32 %v4739_v10, %v3967_v11  ;;  %v3966_v19 = vmul.f32 %v4738_v5, %v3958_v14  ;;  %v4435_v5 = vld [vmem:[%s5635_s21 + $0x28] sm:$0xff]  ;;  %v4430_v11 = vld [vmem:[%s5635_s21] sm:$0xff] }
0x1a60   :  { %v4744_v14 = vld [vmem:[#allocation7] ss:$0 sm:$0xff] }
0x1a61   :  { %5246 = vmatpush3.msra.mxu1 %v3975_v22  ;;  %5275 = vmatpush3.msra.mxu0 %v3975_v22  ;;  %v3974_v21 = vadd.f32 %v4739_v10, %v3966_v19  ;;  %v4432_v10 = vld [vmem:[%s5635_s21 + $0x10] sm:$0xff]  ;;  %s5606_s21 = smov [#allocation10]  }
0x1a62   :  { %5247 = vmatprep.subr.mxu1 %v5602_v16  ;;  %5276 = vmatprep.subr.mxu0 %v5602_v16  ;;  %s4581_s15 = sshll.u32 %s5606_s21, 4  ;;  %s4582_s15 = int_to_ptr.vmem [resolvable:$true] %s4581_s15 }
0x1a63   :  { %5248 = vmatpush3.msra.mxu1 %v3974_v21  ;;  %5277 = vmatpush3.msra.mxu0 %v3974_v21  ;;  %s5539_s16 = scalar_lea.vmem %s4582_s15, 128  ;;  %p5544_p7 = scmp.lt.s32.totalorder %s4582_s15, %s4582_s15 }
0x1a64   :  { %5279 = vmatmul.mubr.msk.f32.vlgmr.msra.gmra.mxu0 %vm3984_vm13, %v4746_v17  ;;  %5281 = vmatprep.subr.mxu0 %v5602_v16  ;;  %p5540_p6 = scmp.ne.s32.totalorder %s4582_s15, %s5539_s16  ;;  %p5545_p8 = scmp.lt.s32.totalorder %s5539_s16, %s5539_s16 }
0x1a65   :  { %5282 = vmatpush3.msra.mxu0 %v4311_v15  ;;  %5289 = vmatprep.mubr.msk.f32.mxu0 %vm5603_vm11, %v5602_v16 }
0x1a66   :  { %5283 = vmatprep.subr.mxu0 %v5602_v16  ;;  %5252 = vmatprep.subr.mxu1 %v5602_v16  ;;  %p5546_p9 = por %p5545_p8, %p5544_p7 }
0x1a67   :  { %5284 = vmatpush3.msra.mxu0 %v4310_v20  ;;  %5250 = vmatmul.mubr.msk.f32.vlgmr.msra.gmra.mxu1 %vm3984_vm13, %v4740_v27  ;;  %v4751_v27 = vld [vmem:[%s5745_s30] ss:$0 sm:$0xff] }
0x1a68   :  { %5285 = vmatprep.subr.mxu0 %v5602_v16  ;;  %5260 = vmatprep.mubr.msk.f32.mxu1 %vm5603_vm11, %v5602_v16  ;;  %p5547_p10 = pnand %p5546_p9, %p5540_p6 }
0x1a69   :  { %5286 = vmatpush3.msra.mxu0 %v4309_v12  ;;  %5253 = vmatpush3.msra.mxu1 %v4061_v30 }
0x1a6a   :  { %5287 = vmatprep.subr.mxu0 %v5602_v16  ;;  %5254 = vmatprep.subr.mxu1 %v5602_v16 }
0x1a6b   :  { %5288 = vmatpush3.msra.mxu0 %v4308_v0  ;;  %5255 = vmatpush3.msra.mxu1 %v4060_v31  ;;  %v4750_v0 = vld [vmem:[%s6409_s11] ss:$0 sm:$0xff] }
0x1a6c   :  { %5256 = vmatprep.subr.mxu1 %v5602_v16 }
0x1a6d   :  { %5257 = vmatpush3.msra.mxu1 %v4059_v26 }
0x1a6e   :  { %5258 = vmatprep.subr.mxu1 %v5602_v16 }
0x1a6f   :  { %5259 = vmatpush3.msra.mxu1 %v4058_v29 }
0x1a70   :  { %5263 = vmatprep.subr.mxu1 %v5602_v16 }
0x1b24   :  { %v4304_v38 = vpop.f32.mrf.mxu0 }
0x1b25   :  { %5290 = vmatmul.mubr.msk.f32.vlgmr.msra.gmra.mxu0 %vm326_vm10, %v4304_v38 }
0x1b26   :  { %v5280_v28 = vpop.f32.mrf.mxu0 }
0x1b27   :  { %v4054_v32 = vpop.f32.mrf.mxu1 }
0x1b28   :  { %5261 = vmatmul.mubr.msk.f32.vlgmr.msra.gmra.mxu1 %vm326_vm10, %v4054_v32 }
0x1b29   :  { %v5251_v33 = vpop.f32.mrf.mxu1  ;;  %5271 = vmatprep.mubr.msk.f32.mxu1 %vm5603_vm11, %v5602_v16  ;;  %5264 = vmatpush3.msra.mxu1 %v4146_v25 }
0x1b2a   :  { %5265 = vmatprep.subr.mxu1 %v5602_v16 }
0x1b2b   :  { %5266 = vmatpush3.msra.mxu1 %v4145_v23 }
0x1b2c   :  { %5267 = vmatprep.subr.mxu1 %v5602_v16 }
0x1b2d   :  { %5268 = vmatpush3.msra.mxu1 %v4144_v47 }
0x1b2e   :  { %5269 = vmatprep.subr.mxu1 %v5602_v16 }
0x1b2f   :  { %5270 = vmatpush3.msra.mxu1 %v4143_v49 }
0x1b30   :  { %5292 = vmatprep.subr.mxu1 %v5602_v16 }
0x1be5   :  { %v4388_v35 = vpop.f32.mrf.mxu0 }
0x1be6   :  { %v4389_v36 = vadd.f32 %v4748_v34, %v4388_v35 }
0x1be7   :  { %v5291_v37 = vpop.f32.mrf.mxu0 }
0x1be8   :  { %v4392_v39 = vmul.f32 %v4389_v36, %v4389_v36  ;;  %v4138_v8 = vpop.f32.mrf.mxu1 }
0x1be9   :  { %v4139_v62 = vadd.f32 %v4742_v50, %v4138_v8 }
0x1bea   :  { %v4393_v44 = vmul.f32 %v4392_v39, %v4389_v36  ;;  %v5262_v6 = vpop.f32.mrf.mxu1 }
0x1bec   :  { %v4394_v41 = vmul.f32 0.044715, %v4393_v44 }
0x1bee   :  { %v4395_v42 = vadd.f32 %v4394_v41, %v4389_v36 }
0x1bf0   :  { %v4396_v24 = vmul.f32 0.7978846, %v4395_v42 }
0x1bf2   :  { %5453 = vtanh.f32 %v4396_v24 }
0x1bf3   :  { %5455 = vtanh.f32 %v4139_v62 }
0x1bff   :  { %v5454_v43 = vpop.eup %5453 }
0x1c00   :  { %v4398_v45 = vadd.f32 1.0, %v5454_v43  ;;  %v5456_v52 = vpop.eup %5455 }
0x1c01   :  { %5272 = vmatmul.mubr.msk.f32.vlgmr.msra.gmra.mxu1 %vm326_vm10, %v5456_v52 }
0x1c02   :  { %v4399_v40 = vmul.f32 0.5, %v4398_v45  ;;  %5293 = vmatpush3.xpose.msk.msra.mxu1 %vm326_vm10, %v4445_v51  ;;  %5324 = vmatprep.mubr.msk.f32.mxu1 %vm5603_vm11, %v5602_v16 }
0x1c03   :  { %5294 = vmatprep.subr.mxu1 %v5602_v16 }
0x1c04   :  { %v4400_v48 = vmul.f32 %v4399_v40, %v4389_v36 }
0x1c06   :  { %v4403_v46 = vsel %vm326_vm10, %v4400_v48, 0.0  ;;  %5295 = vmatpush3.xpose.msk.msra.mxu1 %vm326_vm10, %v4444_v53 }
0x1c07   :  { %4404 = vadd.xlane.f32.xlu0 %v4403_v46  ;;  %5296 = vmatprep.subr.mxu1 %v5602_v16 }
0x1c0a   :  { %5297 = vmatpush3.xpose.msk.msra.mxu1 %vm326_vm10, %v4443_v54 }
0x1c0b   :  { %5298 = vmatprep.subr.mxu1 %v5602_v16 }
0x1c0e   :  { %5299 = vmatpush3.xpose.msk.msra.mxu1 %vm326_vm10, %v4442_v56 }
0x1c0f   :  { %5300 = vmatprep.subr.mxu1 %v5602_v16 }
0x1c12   :  { %5301 = vmatpush3.xpose.msk.msra.mxu1 %vm326_vm10, %v4441_v57 }
0x1c13   :  { %5302 = vmatprep.subr.mxu1 %v5602_v16 }
0x1c16   :  { %5303 = vmatpush3.xpose.msk.msra.mxu1 %vm326_vm10, %v4440_v55 }
0x1c17   :  { %5304 = vmatprep.subr.mxu1 %v5602_v16 }
0x1c1a   :  { %5305 = vmatpush3.xpose.msk.msra.mxu1 %vm326_vm10, %v4439_v58 }
0x1c1b   :  { %5306 = vmatprep.subr.mxu1 %v5602_v16 }
0x1c1e   :  { %5307 = vmatpush3.xpose.msk.msra.mxu1 %vm326_vm10, %v4438_v59 }
0x1c1f   :  { %5308 = vmatprep.subr.mxu1 %v5602_v16 }
0x1c22   :  { %5309 = vmatpush3.xpose.msk.msra.mxu1 %vm326_vm10, %v4437_v60 }
0x1c23   :  { %5310 = vmatprep.subr.mxu1 %v5602_v16 }
0x1c26   :  { %5311 = vmatpush3.xpose.msk.msra.mxu1 %vm326_vm10, %v4436_v61 }
0x1c27   :  { %5312 = vmatprep.subr.mxu1 %v5602_v16 }
0x1c2a   :  { %5313 = vmatpush3.xpose.msk.msra.mxu1 %vm326_vm10, %v4435_v5 }
0x1c2b   :  { %5314 = vmatprep.subr.mxu1 %v5602_v16 }
0x1c2e   :  { %5315 = vmatpush3.xpose.msk.msra.mxu1 %vm326_vm10, %v4434_v7 }
0x1c2f   :  { %5316 = vmatprep.subr.mxu1 %v5602_v16 }
0x1c32   :  { %5317 = vmatpush3.xpose.msk.msra.mxu1 %vm326_vm10, %v4433_v9 }
0x1c33   :  { %5318 = vmatprep.subr.mxu1 %v5602_v16 }
0x1c36   :  { %5319 = vmatpush3.xpose.msk.msra.mxu1 %vm326_vm10, %v4432_v10 }
0x1c37   :  { %5320 = vmatprep.subr.mxu1 %v5602_v16 }
0x1c3a   :  { %5321 = vmatpush3.xpose.msk.msra.mxu1 %vm326_vm10, %v4431_v13 }
0x1c3b   :  { %5322 = vmatprep.subr.mxu1 %v5602_v16  ;;  %v4752_v16 = vld [vmem:[#allocation8] ss:$0 sm:$0xff] }
0x1c3e   :  { %5323 = vmatpush3.xpose.msk.msra.mxu1 %vm326_vm10, %v4430_v11 }
0x1c90   :  { %v4405_v63 = vpop.xlane.xlu0 %4404 }
0x1c91   :  { %v4406_v1 = vmul.f32 0.03125, %v4405_v63 }
0x1c93   :  { %v4407_v2 = vsub.f32 %v4400_v48, %v4406_v1 }
0x1c95   :  { %v4408_v3 = vmul.f32 %v4407_v2, %v4407_v2 }
0x1c97   :  { %v4409_v4 = vsel %vm326_vm10, %v4408_v3, 0.0 }
0x1c98   :  { %4410 = vadd.xlane.f32.xlu0 %v4409_v4 }
0x1cc1   :  { %v4223_v22 = vpop.f32.mrf.mxu1 }
0x1cc2   :  { %v4224_v21 = vadd.f32 %v4744_v14, %v4223_v22 }
0x1cc3   :  { %v5273_v17 = vpop.f32.mrf.mxu1 }
0x1cc4   :  { %4227 = vst [vmem:[%s5760_s4] sm:$0xff] %v4224_v21 }
0x1d21   :  { %v4411_v19 = vpop.xlane.xlu0 %4410 }
0x1d22   :  { %v4412_v15 = vmul.f32 0.03125, %v4411_v19 }
0x1d24   :  { %v4413_v20 = vadd.f32 1e-05, %v4412_v15 }
0x1d26   :  { %5457 = vrsqrt.f32 %v4413_v20 }
0x1d33   :  { %v5458_v12 = vpop.eup %5457 }
0x1d34   :  { %v4415_v18 = vmul.f32 %v5458_v12, %v4407_v2 }
0x1d36   :  { %v4422_v38 = vmul.f32 %v4750_v0, %v4415_v18 }
0x1d38   :  { %v4429_v28 = vadd.f32 %v4751_v27, %v4422_v38 }
0x1d3a   :  { %5325 = vmatmul.mubr.msk.f32.vlgmr.msra.gmra.mxu1 %vm326_vm10, %v4429_v28 }
0x1dfa   :  { %v4570_v30 = vpop.f32.mrf.mxu1 }
0x1dfb   :  { %v4571_v31 = vadd.f32 %v4752_v16, %v4570_v30 }
0x1dfc   :  { %v5326_v32 = vpop.f32.mrf.mxu1 }
0x1dfd   :  { %4574 = vst [vmem:[#allocation10] sm:$0xff] %v4571_v31 }
0x1dfe   :  { %5550 = shalt.err (!%p5547_p10)
}
0x1dff   :  { %4584 = dma.vmem_to_hbm [thread:$0]  %s4582_s15, 128, %s5755_s20, [#allocation4]  }
0x1e00   :  { %5565 = dma.done.wait [#allocation4], 128  }
0x1e01   :  { %5566 = vsyncadd [#allocation4], 4294967168 }
0x1e02   :  { %4592 = vsyncpa [#allocation3], 1 }
0x1e03   :  { %4593 = vsyncpa [#allocation6], 1 }
0x1e04   :  { %4594 = vsyncpa [#allocation9], 1 }
0x1e05   :  { %4595 = vsyncpa [#allocation4], 1 }

</bundles_post_ra>
